<compile_context>
chip_gen: v6e
topology: v6e:2x2x1
jax: 0.10.0
libtpu: 0.0.40
codegen_flags: <defaults>
</compile_context>

<pallas_src>
import functools

import jax
import jax.numpy as jnp
from jax import lax
from jax.experimental import pallas as pl
from jax.experimental.pallas import tpu as pltpu


def _round_up(x, m):
    return (x + m - 1) // m * m


# --------------------------------------------------------------------------
# Kernel
# --------------------------------------------------------------------------
def _lstm_layer_kernel(maxlen_ref, lens_ref, x_ref, wih_ref, whh_ref, b_ref, *refs,
                       fuse_fc, carry_in_regs, unroll):
    """One LSTM layer over one (batch_block, time_block) grid cell.

    maxlen_ref: [n_bb] int32 (SMEM, scalar-prefetched per-batch-block max len)
    lens_ref:   [Bb, 1] int32 valid lengths      x_ref: [Tt, Bb, Dp] bf16
    wih_ref:    [Dp, 4Hp] bf16   whh_ref: [Hp, 4Hp] bf16   b_ref: [1, 4Hp] f32
    fused FC:   wfc_ref [Hp, Cp] bf16, bfc_ref [1, Cp] f32
    out_ref:    [Tt, Bb, Hp] bf16   (or [Tt, Bb, Cp] f32 when fuse_fc)
    scratch:    h_scr / c_scr [Bb, Hp] f32 (carried across the time grid axis),
                gates_scr [Tt*Bb, 4Hp] f32
    """
    if fuse_fc:
        wfc_ref, bfc_ref, out_ref, h_scr, c_scr, gates_scr = refs
    else:
        out_ref, h_scr, c_scr, gates_scr = refs

    bb = pl.program_id(0)                      # batch-block index ("parallel")
    tb = pl.program_id(1)                      # time-block index ("arbitrary")
    block_t, Bb, Dp = x_ref.shape
    Hp = h_scr.shape[-1]
    t0 = tb * block_t

    @pl.when(tb == 0)
    def _():                                   # new batch block -> reset recurrent state
        h_scr[...] = jnp.zeros_like(h_scr)
        c_scr[...] = jnp.zeros_like(c_scr)

    blk_maxlen = maxlen_ref[bb]

    @pl.when(t0 < blk_maxlen)
    def _active():
        # Hoisted input projection: one big MXU matmul for the whole time
        # block, bias added once.
        xb = x_ref[...].reshape(block_t * Bb, Dp)
        gates_scr[...] = (
            jnp.dot(xb, wih_ref[...], preferred_element_type=jnp.float32)
            + b_ref[...])

        # Loop-invariant loads / broadcasts, hoisted out of the serialized loop.
        whh = whh_ref[...]
        lens_b = jnp.broadcast_to(lens_ref[...], (Bb, Hp))   # one lane broadcast
        if fuse_fc:
            wfc = wfc_ref[...]
            bfc = bfc_ref[...]

        def body(t, h, c):
            row = pl.multiple_of(t * Bb, Bb)
            gates = gates_scr[pl.ds(row, Bb), :] + jnp.dot(
                h.astype(whh.dtype), whh, preferred_element_type=jnp.float32)
            # PyTorch gate order: i, f, g, o (each slice is lane-aligned Hp).
            i_g = jax.nn.sigmoid(gates[:, 0 * Hp:1 * Hp])
            f_g = jax.nn.sigmoid(gates[:, 1 * Hp:2 * Hp])
            g_g = jnp.tanh(gates[:, 2 * Hp:3 * Hp])
            o_g = jax.nn.sigmoid(gates[:, 3 * Hp:4 * Hp])
            c_new = f_g * c + i_g * g_g
            h_new = o_g * jnp.tanh(c_new)
            # pack_padded_sequence: freeze state past x_len[b];
            # pad_packed_sequence: padded timesteps emit zeros (-> fc bias).
            valid = (t0 + t) < lens_b           # [Bb, Hp] bool (broadcast hoisted)
            h_keep = jnp.where(valid, h_new, h)
            c_keep = jnp.where(valid, c_new, c)
            h_out = jnp.where(valid, h_new, 0.0)
            if fuse_fc:
                y = jnp.dot(h_out.astype(wfc.dtype), wfc,
                            preferred_element_type=jnp.float32) + bfc
                out_ref[t] = y.astype(out_ref.dtype)
            else:
                out_ref[t] = h_out.astype(out_ref.dtype)
            return h_keep, c_keep

        if carry_in_regs:
            # Keep (h, c) as loop-carry values (vregs); one scratch write-back
            # per time block instead of 2 vld + 2 vst per timestep.
            def step(t, carry):
                return body(t, carry[0], carry[1])
            h_fin, c_fin = lax.fori_loop(0, block_t, step,
                                         (h_scr[...], c_scr[...]), unroll=unroll)
            h_scr[...] = h_fin
            c_scr[...] = c_fin
        else:
            def step(t, carry):
                h_keep, c_keep = body(t, h_scr[...], c_scr[...])
                h_scr[...] = h_keep
                c_scr[...] = c_keep
                return carry
            lax.fori_loop(0, block_t, step, 0, unroll=unroll)

    @pl.when(t0 >= blk_maxlen)
    def _skipped():
        # Every timestep of this block is past every sequence in the batch
        # block: hidden output is exactly zero -> fc bias when fused.
        if fuse_fc:
            out_ref[...] = jnp.broadcast_to(
                bfc_ref[...].reshape(1, 1, -1), out_ref.shape).astype(out_ref.dtype)
        else:
            out_ref[...] = jnp.zeros(out_ref.shape, out_ref.dtype)


# --------------------------------------------------------------------------
# Hardware-aware tiling helpers
# --------------------------------------------------------------------------
def _tpu_info():
    """Returns (vmem_capacity_bytes, device_kind_lowercase) with safe fallbacks."""
    kind = ""
    try:
        kind = jax.devices()[0].device_kind.lower()
    except Exception:
        pass
    cap = 64 << 20                       # safe minimum (v7x per-core VMEM)
    try:
        cap = int(pltpu.get_tpu_info().vmem_capacity_bytes)
    except Exception:
        if ("v5" in kind) or ("v6" in kind):
            cap = 128 << 20
    return cap, kind


def _pick_batch_tiling(B, kind):
    """Cap the per-core batch tile and split across cores on v7x-class chips."""
    B8 = _round_up(max(B, 1), 8)
    block_cap = 128 if "v5" in kind else 256
    is_v7 = ("v7" in kind) or ("tpu7" in kind) or ("7x" in kind)
    min_blocks = 2 if (is_v7 and B8 >= 16) else 1
    block_b = min(block_cap, _round_up(-(-B8 // min_blocks), 8))
    B_pad = _round_up(B8, block_b)
    return block_b, B_pad


def _pick_block_t(T, block_b, Dp_max, Hp, Cp, cap):
    """Pick the time-block size from the VMEM budget and a target row count."""
    budget = int(cap * 0.6)
    # Fixed (block_t-independent) VMEM: single-buffered weights/bias + fused FC
    # weights + h/c scratch.
    fixed = (Dp_max + Hp) * 4 * Hp * 2 + 4 * Hp * 4
    fixed += Hp * Cp * 2 + Cp * 4
    fixed += 2 * block_b * Hp * 4
    # Per-timestep VMEM: double-buffered x block, double-buffered out block
    # (worst of bf16 hidden / f32 fused-FC), gates scratch.
    per_t = block_b * (2 * Dp_max * 2 + 2 * max(Hp * 2, Cp * 4) + 4 * Hp * 4)
    max_bt = max(1, (budget - fixed) // per_t)
    target_rows = 1024 if cap >= (100 << 20) else 512
    bt = min(max_bt, max(8, target_rows // block_b))
    if bt >= 8:
        bt = (bt // 8) * 8
    bt = min(bt, _round_up(T, 8))
    return max(1, bt)


# --------------------------------------------------------------------------
# Wrappers
# --------------------------------------------------------------------------
def _lstm_layer(x_tm, lens_col, blk_maxlen, layer, fc_w_t, fc_b, fuse_fc,
                block_t, block_b, unroll, carry_in_regs, vmem_limit,
                single_buffer_weights):
    T_pad, B_pad, Dp = x_tm.shape
    Hp = layer["w_hh_t"].shape[0]
    n_bb = B_pad // block_b
    n_tb = T_pad // block_t

    if fuse_fc:
        out_dim, out_dtype = fc_w_t.shape[1], jnp.float32
    else:
        out_dim, out_dtype = Hp, jnp.bfloat16

    def const_spec(shape):
        # Weight/bias blocks never change across the grid: single-buffer them.
        imap = lambda bb, tb, ml: (0,) * len(shape)
        if single_buffer_weights:
            return pl.BlockSpec(shape, imap, pipeline_mode=pl.Buffered(1))
        return pl.BlockSpec(shape, imap)

    in_specs = [
        pl.BlockSpec((block_b, 1), lambda bb, tb, ml: (bb, 0)),                # lens
        pl.BlockSpec((block_t, block_b, Dp), lambda bb, tb, ml: (tb, bb, 0)),  # x
        const_spec((Dp, 4 * Hp)),                                              # w_ih^T
        const_spec((Hp, 4 * Hp)),                                              # w_hh^T
        const_spec((1, 4 * Hp)),                                               # bias
    ]
    args = [lens_col, x_tm, layer["w_ih_t"], layer["w_hh_t"], layer["b"]]
    if fuse_fc:
        in_specs += [const_spec((Hp, out_dim)), const_spec((1, out_dim))]
        args += [fc_w_t, fc_b]

    grid_spec = pltpu.PrefetchScalarGridSpec(
        num_scalar_prefetch=1,
        grid=(n_bb, n_tb),
        in_specs=in_specs,
        out_specs=pl.BlockSpec((block_t, block_b, out_dim),
                               lambda bb, tb, ml: (tb, bb, 0)),
        scratch_shapes=[
            pltpu.VMEM((block_b, Hp), jnp.float32),                 # h state
            pltpu.VMEM((block_b, Hp), jnp.float32),                 # c state
            pltpu.VMEM((block_t * block_b, 4 * Hp), jnp.float32),   # gates
        ])

    return pl.pallas_call(
        functools.partial(_lstm_layer_kernel, fuse_fc=fuse_fc,
                          carry_in_regs=carry_in_regs, unroll=unroll),
        out_shape=jax.ShapeDtypeStruct((T_pad, B_pad, out_dim), out_dtype),
        grid_spec=grid_spec,
        compiler_params=pltpu.CompilerParams(
            dimension_semantics=("parallel", "arbitrary"),
            vmem_limit_bytes=vmem_limit),
    )(blk_maxlen, *args)


def lstm_classifier_forward(packed, x, x_len, max_length=None, block_t=None):
    """Pallas equivalent of LSTMClassifier.forward.

    x: [B, T, input_size] (batch-first), x_len: [B] int lengths.
    Returns [B, total_length, n_class] (total_length = max_length or T).
    """
    B, T, D = x.shape
    C, Cp, Hp = packed["C"], packed["C_pad"], packed["H_pad"]
    total_length = T if max_length is None else max_length

    # pad_packed_sequence(total_length=...) requires total_length >= longest seq.
    if max_length is not None:
        try:
            longest = int(jax.device_get(jnp.max(x_len)))
        except Exception:
            longest = None
        if longest is not None and max_length < longest:
            raise ValueError(
                f"max_length ({max_length}) < longest sequence ({longest})")

    cap, kind = _tpu_info()
    block_b, B_pad = _pick_batch_tiling(B, kind)
    D_pad = packed["layers"][0]["d_in_pad"]
    if block_t is None:
        block_t = _pick_block_t(T, block_b, max(D_pad, Hp), Hp, Cp, cap)
    T_pad = _round_up(T, block_t)

    carry_in_regs = (block_b * Hp * 8) <= (64 << 10)      # h+c f32 fit in ~16 vregs
    if Hp <= 256 and block_b <= 16:
        unroll = 8
    elif Hp >= 512 or block_b >= 64:
        unroll = 2
    else:
        unroll = 4
    vmem_limit = int(min(cap * 0.9, 120 << 20))

    # bf16 before the XLA-side transpose/pad: halves HBM traffic feeding layer 0.
    x_tm = jnp.transpose(x.astype(jnp.bfloat16), (1, 0, 2))          # [T, B, D]
    x_tm = jnp.pad(x_tm, ((0, T_pad - T), (0, B_pad - B), (0, D_pad - D)))
    lens_pad = jnp.pad(x_len.astype(jnp.int32), (0, B_pad - B))
    lens_col = lens_pad.reshape(B_pad, 1)
    blk_maxlen = jnp.max(lens_pad.reshape(B_pad // block_b, block_b), axis=1)

    h_seq = x_tm
    n_layers = len(packed["layers"])
    for li, layer in enumerate(packed["layers"]):
        fuse_fc = (li == n_layers - 1)          # fuse FC head into the last layer
        call = functools.partial(
            _lstm_layer, h_seq, lens_col, blk_maxlen, layer,
            packed["fc_w_t"], packed["fc_b"], fuse_fc,
            block_t, block_b, unroll, carry_in_regs, vmem_limit)
        try:
            h_seq = call(single_buffer_weights=True)
        except Exception:
            # Fallback if this JAX build rejects Buffered(1) single-buffering.
            h_seq = call(single_buffer_weights=False)

    y = jnp.transpose(h_seq, (1, 0, 2))[:B, :, :C]                    # [B, T_pad, C] f32
    if total_length <= T_pad:
        y = y[:, :total_length, :]
    else:
        # pad_packed_sequence(total_length > T): hidden padded with zeros -> fc bias.
        tail = jnp.broadcast_to(packed["fc_b_raw"][None, None, :],
                                (B, total_length - T_pad, C))
        y = jnp.concatenate([y, tail], axis=1)
    return y


# --------------------------------------------------------------------------
# Parameters (PyTorch layout -> padded / transposed / bf16 kernel layout)
# --------------------------------------------------------------------------
def init_raw_params(key, input_size, hidden_units, lstm_layers, n_class):
    """Deterministic synthetic parameters with nn.LSTM / nn.Linear shapes."""
    params = {"lstm": []}
    k = 1.0 / float(hidden_units) ** 0.5
    d_in = input_size
    for _ in range(lstm_layers):
        key, k1, k2, k3, k4 = jax.random.split(key, 5)
        params["lstm"].append({
            "w_ih": jax.random.uniform(k1, (4 * hidden_units, d_in), jnp.float32, -k, k),
            "w_hh": jax.random.uniform(k2, (4 * hidden_units, hidden_units), jnp.float32, -k, k),
            "b_ih": jax.random.uniform(k3, (4 * hidden_units,), jnp.float32, -k, k),
            "b_hh": jax.random.uniform(k4, (4 * hidden_units,), jnp.float32, -k, k),
        })
        d_in = hidden_units
    key, k1, k2 = jax.random.split(key, 3)
    params["fc_w"] = jax.random.uniform(k1, (n_class, hidden_units), jnp.float32, -k, k)
    params["fc_b"] = jax.random.uniform(k2, (n_class,), jnp.float32, -k, k)
    return params


def _pad_gates(w, H, Hp, d, dp):
    # w: [4H, d] gate-stacked (i,f,g,o) -> zero-pad each gate block -> [dp, 4Hp].
    w4 = w.reshape(4, H, d)
    w4 = jnp.pad(w4, ((0, 0), (0, Hp - H), (0, dp - d)))
    return w4.reshape(4 * Hp, dp).T


def pack_params(raw, input_size, hidden_units, n_class):
    H, C = hidden_units, n_class
    Hp, Cp = _round_up(H, 128), _round_up(C, 128)
    packed = {"H": H, "H_pad": Hp, "C": C, "C_pad": Cp, "layers": [],
              "fc_b_raw": raw["fc_b"].astype(jnp.float32)}
    d_in = input_size
    for lyr in raw["lstm"]:
        dp = _round_up(d_in, 128)
        packed["layers"].append({
            "d_in": d_in, "d_in_pad": dp,
            "w_ih_t": _pad_gates(lyr["w_ih"], H, Hp, d_in, dp).astype(jnp.bfloat16),
            "w_hh_t": _pad_gates(lyr["w_hh"], H, Hp, H, Hp).astype(jnp.bfloat16),
            "b": jnp.pad((lyr["b_ih"] + lyr["b_hh"]).reshape(4, H),
                         ((0, 0), (0, Hp - H))).reshape(1, 4 * Hp).astype(jnp.float32),
        })
        d_in = H
    packed["fc_w_t"] = jnp.pad(raw["fc_w"],
                               ((0, Cp - C), (0, Hp - H))).T.astype(jnp.bfloat16)
    packed["fc_b"] = jnp.pad(raw["fc_b"], (0, Cp - C)).reshape(1, Cp).astype(jnp.float32)
    return packed


# --------------------------------------------------------------------------
# Pure-JAX reference (same bf16-operand / f32-accumulate math, lax.scan)
# --------------------------------------------------------------------------
def reference_forward(raw, x, x_len):
    B, T, _ = x.shape

    def bdot(a, b):
        return jnp.dot(a.astype(jnp.bfloat16), b.astype(jnp.bfloat16),
                       preferred_element_type=jnp.float32)

    h_seq = jnp.transpose(x, (1, 0, 2)).astype(jnp.float32)       # [T, B, D]
    mask = (jnp.arange(T)[:, None] < x_len[None, :].astype(jnp.int32))[:, :, None]
    for layer in raw["lstm"]:
        H = layer["w_hh"].shape[1]
        w_ih_t, w_hh_t = layer["w_ih"].T, layer["w_hh"].T
        b = (layer["b_ih"] + layer["b_hh"])[None, :]

        def step(carry, inp, w_ih_t=w_ih_t, w_hh_t=w_hh_t, b=b, H=H):
            h, c = carry
            x_t, m = inp
            gates = (bdot(x_t, w_ih_t) + b) + bdot(h, w_hh_t)
            i = jax.nn.sigmoid(gates[:, :H])
            f = jax.nn.sigmoid(gates[:, H:2 * H])
            g = jnp.tanh(gates[:, 2 * H:3 * H])
            o = jax.nn.sigmoid(gates[:, 3 * H:])
            c_new = f * c + i * g
            h_new = o * jnp.tanh(c_new)
            h = jnp.where(m, h_new, h)
            c = jnp.where(m, c_new, c)
            return (h, c), jnp.where(m, h_new, 0.0)

        init = (jnp.zeros((B, H), jnp.float32), jnp.zeros((B, H), jnp.float32))
        _, h_seq = lax.scan(step, init, (h_seq, mask))
    y = bdot(h_seq, raw["fc_w"].T) + raw["fc_b"][None, :]
    return jnp.transpose(y, (1, 0, 2))


if __name__ == "__main__":
    input_size, hidden_units, lstm_layers, n_class = 16, 32, 2, 4
    B, T = 2, 8

    key = jax.random.PRNGKey(0)
    kp, kx, kx2 = jax.random.split(key, 3)
    raw = init_raw_params(kp, input_size, hidden_units, lstm_layers, n_class)
    packed = pack_params(raw, input_size, hidden_units, n_class)

    # Test 1: basic forward with padding in the batch.
    x = jax.random.normal(kx, (B, T, input_size), jnp.float32)
    x_len = jnp.array([T, 5], dtype=jnp.int32)   # second sequence is padded
    y = lstm_classifier_forward(packed, x, x_len, max_length=T)
    jax.block_until_ready(y)
    y_ref = reference_forward(raw, x, x_len)
    assert y.shape == (B, T, n_class), y.shape
    err1 = float(jnp.max(jnp.abs(y - y_ref)))
    assert jnp.allclose(y, y_ref, atol=5e-3, rtol=5e-3), \
        f"Pallas != reference (max abs err {err1})"

    # Test 2: multiple time blocks + fully-padded tail blocks (exercises the
    # scalar-prefetch length gating and cross-block state carry).
    T2 = 24
    x2 = jax.random.normal(kx2, (B, T2, input_size), jnp.float32)
    x2_len = jnp.array([10, 3], dtype=jnp.int32)
    y2 = lstm_classifier_forward(packed, x2, x2_len, max_length=T2, block_t=8)
    jax.block_until_ready(y2)
    y2_ref = reference_forward(raw, x2, x2_len)
    assert y2.shape == (B, T2, n_class), y2.shape
    err2 = float(jnp.max(jnp.abs(y2 - y2_ref)))
    assert jnp.allclose(y2, y2_ref, atol=5e-3, rtol=5e-3), \
        f"Pallas != reference on ragged test (max abs err {err2})"

    print("KERNEL_OK")
</pallas_src>

<mosaic_0001>
module attributes {stable_mosaic.version = 11 : i64} {
  func.func @_lstm_layer_kernel(%arg0: i32, %arg1: i32, %arg2: memref<1xi32, #tpu.memory_space<smem>>, %arg3: memref<8x1xi32, #tpu.memory_space<vmem>>, %arg4: memref<8x8x128xbf16, #tpu.memory_space<vmem>>, %arg5: memref<128x512xbf16, #tpu.memory_space<vmem>>, %arg6: memref<128x512xbf16, #tpu.memory_space<vmem>>, %arg7: memref<1x512xf32, #tpu.memory_space<vmem>>, %arg8: memref<8x8x128xbf16, #tpu.memory_space<vmem>>, %arg9: memref<8x128xf32, #tpu.memory_space<vmem>>, %arg10: memref<8x128xf32, #tpu.memory_space<vmem>>, %arg11: memref<64x512xf32, #tpu.memory_space<vmem>>) attributes {dimension_semantics = [#tpu.dimension_semantics<parallel>, #tpu.dimension_semantics<arbitrary>], iteration_bounds = array<i64: 1, 1>, scalar_prefetch = 1 : i64, scratch_operands = 3 : i64, tpu.core_type = #tpu.core_type<tc>, window_params = [{transform_indices = @transform_0, window_bounds = array<i64: 8, 1>}, {transform_indices = @transform_1, window_bounds = array<i64: 8, 8, 128>}, {pipeline_mode = #tpu.pipeline_mode<synchronous>, transform_indices = @transform_2, window_bounds = array<i64: 128, 512>}, {pipeline_mode = #tpu.pipeline_mode<synchronous>, transform_indices = @transform_3, window_bounds = array<i64: 128, 512>}, {pipeline_mode = #tpu.pipeline_mode<synchronous>, transform_indices = @transform_4, window_bounds = array<i64: 1, 512>}, {transform_indices = @transform_5, window_bounds = array<i64: 8, 8, 128>}]} {
    %c8_i32 = arith.constant 8 : i32
    %0 = arith.muli %arg1, %c8_i32 : i32
    %c0_i32 = arith.constant 0 : i32
    %1 = arith.cmpi eq, %arg1, %c0_i32 : i32
    %2 = arith.extui %1 : i1 to i32
    %c0_i32_0 = arith.constant 0 : i32
    %3 = arith.cmpi ne, %2, %c0_i32_0 : i32
    scf.if %3 {
      %cst = arith.constant 0.000000e+00 : f32
      %12 = vector.broadcast %cst : f32 to vector<8x128xf32>
      %c0 = arith.constant 0 : index
      %c0_3 = arith.constant 0 : index
      %13 = vector.load %arg9[%c0, %c0_3] : memref<8x128xf32, #tpu.memory_space<vmem>>, vector<8x128xf32>
      tpu.vector_store %arg9[%c0, %c0_3], %12 {strides = array<i32>} : memref<8x128xf32, #tpu.memory_space<vmem>>, vector<8x128xf32>,
      %cst_4 = arith.constant 0.000000e+00 : f32
      %14 = vector.broadcast %cst_4 : f32 to vector<8x128xf32>
      %c0_5 = arith.constant 0 : index
      %c0_6 = arith.constant 0 : index
      %15 = vector.load %arg10[%c0_5, %c0_6] : memref<8x128xf32, #tpu.memory_space<vmem>>, vector<8x128xf32>
      tpu.vector_store %arg10[%c0_5, %c0_6], %14 {strides = array<i32>} : memref<8x128xf32, #tpu.memory_space<vmem>>, vector<8x128xf32>,
    } else {
    }
    %4 = arith.index_cast %arg0 : i32 to index
    %5 = memref.load %arg2[%4] : memref<1xi32, #tpu.memory_space<smem>>
    %6 = arith.cmpi slt, %0, %5 : i32
    %7 = arith.extui %6 : i1 to i32
    %c0_i32_1 = arith.constant 0 : i32
    %8 = arith.cmpi ne, %7, %c0_i32_1 : i32
    scf.if %8 {
      %c0 = arith.constant 0 : index
      %c0_3 = arith.constant 0 : index
      %c0_4 = arith.constant 0 : index
      %12 = vector.load %arg4[%c0, %c0_3, %c0_4] : memref<8x8x128xbf16, #tpu.memory_space<vmem>>, vector<8x8x128xbf16>
      %13 = vector.shape_cast %12 : vector<8x8x128xbf16> to vector<64x128xbf16>
      %c0_5 = arith.constant 0 : index
      %c0_6 = arith.constant 0 : index
      %14 = vector.load %arg5[%c0_5, %c0_6] : memref<128x512xbf16, #tpu.memory_space<vmem>>, vector<128x512xbf16>
      %cst = arith.constant dense<0.000000e+00> : vector<64x512xf32>
      %15 = tpu.matmul %13, %14, %cst {dimension_numbers = #tpu.dot_dimension_numbers<[1], [0], [0], [1], [0, 0, 1, 1], [], []>} : vector<64x128xbf16>, vector<128x512xbf16>, vector<64x512xf32> -> vector<64x512xf32>
      %c0_7 = arith.constant 0 : index
      %c0_8 = arith.constant 0 : index
      %16 = vector.load %arg7[%c0_7, %c0_8] : memref<1x512xf32, #tpu.memory_space<vmem>>, vector<1x512xf32>
      %17 = vector.broadcast %16 : vector<1x512xf32> to vector<64x512xf32>
      %18 = arith.addf %15, %17 : vector<64x512xf32>
      %c0_9 = arith.constant 0 : index
      %c0_10 = arith.constant 0 : index
      %19 = vector.load %arg11[%c0_9, %c0_10] : memref<64x512xf32, #tpu.memory_space<vmem>>, vector<64x512xf32>
      tpu.vector_store %arg11[%c0_9, %c0_10], %18 {strides = array<i32>} : memref<64x512xf32, #tpu.memory_space<vmem>>, vector<64x512xf32>,
      %c0_11 = arith.constant 0 : index
      %c0_12 = arith.constant 0 : index
      %20 = vector.load %arg6[%c0_11, %c0_12] : memref<128x512xbf16, #tpu.memory_space<vmem>>, vector<128x512xbf16>
      %c0_13 = arith.constant 0 : index
      %c0_14 = arith.constant 0 : index
      %21 = vector.load %arg3[%c0_13, %c0_14] : memref<8x1xi32, #tpu.memory_space<vmem>>, vector<8x1xi32>
      %22 = vector.shape_cast %21 : vector<8x1xi32> to vector<8x1xi32>
      %23 = vector.broadcast %22 : vector<8x1xi32> to vector<8x128xi32>
      %c0_15 = arith.constant 0 : index
      %c0_16 = arith.constant 0 : index
      %24 = vector.load %arg9[%c0_15, %c0_16] : memref<8x128xf32, #tpu.memory_space<vmem>>, vector<8x128xf32>
      %c0_17 = arith.constant 0 : index
      %c0_18 = arith.constant 0 : index
      %25 = vector.load %arg10[%c0_17, %c0_18] : memref<8x128xf32, #tpu.memory_space<vmem>>, vector<8x128xf32>
      %c0_i32_19 = arith.constant 0 : i32
      %c8_i32_20 = arith.constant 8 : i32
      %26 = arith.muli %c0_i32_19, %c8_i32_20 : i32
      %27 = tpu.assume_multiple %26, 8 : i32
      %28 = arith.index_cast %27 : i32 to index
      %c0_21 = arith.constant 0 : index
      %29 = vector.load %arg11[%28, %c0_21] : memref<64x512xf32, #tpu.memory_space<vmem>>, vector<8x512xf32>
      %30 = arith.truncf %24 : vector<8x128xf32> to vector<8x128xbf16>
      %cst_22 = arith.constant dense<0.000000e+00> : vector<8x512xf32>
      %31 = tpu.matmul %30, %20, %cst_22 {dimension_numbers = #tpu.dot_dimension_numbers<[1], [0], [0], [1], [0, 0, 1, 1], [], []>} : vector<8x128xbf16>, vector<128x512xbf16>, vector<8x512xf32> -> vector<8x512xf32>
      %32 = arith.addf %29, %31 : vector<8x512xf32>
      %33 = vector.extract_strided_slice %32 {offsets = [0, 0], sizes = [8, 128], strides = [1, 1]} : vector<8x512xf32> to vector<8x128xf32>
      %34 = arith.negf %33 : vector<8x128xf32>
      %35 = math.exp %34 : vector<8x128xf32>
      %cst_23 = arith.constant 1.000000e+00 : f32
      %36 = vector.broadcast %cst_23 : f32 to vector<8x128xf32>
      %37 = arith.addf %36, %35 : vector<8x128xf32>
      %38 = arith.divf %36, %37 : vector<8x128xf32>
      %39 = vector.extract_strided_slice %32 {offsets = [0, 128], sizes = [8, 128], strides = [1, 1]} : vector<8x512xf32> to vector<8x128xf32>
      %40 = arith.negf %39 : vector<8x128xf32>
      %41 = math.exp %40 : vector<8x128xf32>
      %cst_24 = arith.constant 1.000000e+00 : f32
      %42 = vector.broadcast %cst_24 : f32 to vector<8x128xf32>
      %43 = arith.addf %42, %41 : vector<8x128xf32>
      %44 = arith.divf %42, %43 : vector<8x128xf32>
      %45 = vector.extract_strided_slice %32 {offsets = [0, 256], sizes = [8, 128], strides = [1, 1]} : vector<8x512xf32> to vector<8x128xf32>
      %46 = math.tanh %45 : vector<8x128xf32>
      %47 = vector.extract_strided_slice %32 {offsets = [0, 384], sizes = [8, 128], strides = [1, 1]} : vector<8x512xf32> to vector<8x128xf32>
      %48 = arith.negf %47 : vector<8x128xf32>
      %49 = math.exp %48 : vector<8x128xf32>
      %cst_25 = arith.constant 1.000000e+00 : f32
      %50 = vector.broadcast %cst_25 : f32 to vector<8x128xf32>
      %51 = arith.addf %50, %49 : vector<8x128xf32>
      %52 = arith.divf %50, %51 : vector<8x128xf32>
      %53 = arith.mulf %44, %25 : vector<8x128xf32>
      %54 = arith.mulf %38, %46 : vector<8x128xf32>
      %55 = arith.addf %53, %54 : vector<8x128xf32>
      %56 = math.tanh %55 : vector<8x128xf32>
      %57 = arith.mulf %52, %56 : vector<8x128xf32>
      %58 = arith.addi %0, %c0_i32_19 : i32
      %59 = vector.broadcast %58 : i32 to vector<8x128xi32>
      %60 = arith.cmpi slt, %59, %23 : vector<8x128xi32>
      %61 = arith.select %60, %57, %24 : vector<8x128xi1>, vector<8x128xf32>
      %62 = arith.select %60, %55, %25 : vector<8x128xi1>, vector<8x128xf32>
      %cst_26 = arith.constant 0.000000e+00 : f32
      %63 = vector.broadcast %cst_26 : f32 to vector<8x128xf32>
      %64 = arith.select %60, %57, %63 : vector<8x128xi1>, vector<8x128xf32>
      %65 = arith.truncf %64 : vector<8x128xf32> to vector<8x128xbf16>
      %66 = arith.index_cast %c0_i32_19 : i32 to index
      %c0_27 = arith.constant 0 : index
      %c0_28 = arith.constant 0 : index
      %67 = vector.load %arg8[%66, %c0_27, %c0_28] : memref<8x8x128xbf16, #tpu.memory_space<vmem>>, vector<1x8x128xbf16>
      %68 = vector.shape_cast %67 : vector<1x8x128xbf16> to vector<8x128xbf16>
      %69 = vector.shape_cast %65 : vector<8x128xbf16> to vector<1x8x128xbf16>
      tpu.vector_store %arg8[%66, %c0_27, %c0_28], %69 {strides = array<i32>} : memref<8x8x128xbf16, #tpu.memory_space<vmem>>, vector<1x8x128xbf16>,
      %c1_i32 = arith.constant 1 : i32
      %c8_i32_29 = arith.constant 8 : i32
      %70 = arith.muli %c1_i32, %c8_i32_29 : i32
      %71 = tpu.assume_multiple %70, 8 : i32
      %72 = arith.index_cast %71 : i32 to index
      %c0_30 = arith.constant 0 : index
      %73 = vector.load %arg11[%72, %c0_30] : memref<64x512xf32, #tpu.memory_space<vmem>>, vector<8x512xf32>
      %74 = arith.truncf %61 : vector<8x128xf32> to vector<8x128xbf16>
      %cst_31 = arith.constant dense<0.000000e+00> : vector<8x512xf32>
      %75 = tpu.matmul %74, %20, %cst_31 {dimension_numbers = #tpu.dot_dimension_numbers<[1], [0], [0], [1], [0, 0, 1, 1], [], []>} : vector<8x128xbf16>, vector<128x512xbf16>, vector<8x512xf32> -> vector<8x512xf32>
      %76 = arith.addf %73, %75 : vector<8x512xf32>
      %77 = vector.extract_strided_slice %76 {offsets = [0, 0], sizes = [8, 128], strides = [1, 1]} : vector<8x512xf32> to vector<8x128xf32>
      %78 = arith.negf %77 : vector<8x128xf32>
      %79 = math.exp %78 : vector<8x128xf32>
      %cst_32 = arith.constant 1.000000e+00 : f32
      %80 = vector.broadcast %cst_32 : f32 to vector<8x128xf32>
      %81 = arith.addf %80, %79 : vector<8x128xf32>
      %82 = arith.divf %80, %81 : vector<8x128xf32>
      %83 = vector.extract_strided_slice %76 {offsets = [0, 128], sizes = [8, 128], strides = [1, 1]} : vector<8x512xf32> to vector<8x128xf32>
      %84 = arith.negf %83 : vector<8x128xf32>
      %85 = math.exp %84 : vector<8x128xf32>
      %cst_33 = arith.constant 1.000000e+00 : f32
      %86 = vector.broadcast %cst_33 : f32 to vector<8x128xf32>
      %87 = arith.addf %86, %85 : vector<8x128xf32>
      %88 = arith.divf %86, %87 : vector<8x128xf32>
      %89 = vector.extract_strided_slice %76 {offsets = [0, 256], sizes = [8, 128], strides = [1, 1]} : vector<8x512xf32> to vector<8x128xf32>
      %90 = math.tanh %89 : vector<8x128xf32>
      %91 = vector.extract_strided_slice %76 {offsets = [0, 384], sizes = [8, 128], strides = [1, 1]} : vector<8x512xf32> to vector<8x128xf32>
      %92 = arith.negf %91 : vector<8x128xf32>
      %93 = math.exp %92 : vector<8x128xf32>
      %cst_34 = arith.constant 1.000000e+00 : f32
      %94 = vector.broadcast %cst_34 : f32 to vector<8x128xf32>
      %95 = arith.addf %94, %93 : vector<8x128xf32>
      %96 = arith.divf %94, %95 : vector<8x128xf32>
      %97 = arith.mulf %88, %62 : vector<8x128xf32>
      %98 = arith.mulf %82, %90 : vector<8x128xf32>
      %99 = arith.addf %97, %98 : vector<8x128xf32>
      %100 = math.tanh %99 : vector<8x128xf32>
      %101 = arith.mulf %96, %100 : vector<8x128xf32>
      %102 = arith.addi %0, %c1_i32 : i32
      %103 = vector.broadcast %102 : i32 to vector<8x128xi32>
      %104 = arith.cmpi slt, %103, %23 : vector<8x128xi32>
      %105 = arith.select %104, %101, %61 : vector<8x128xi1>, vector<8x128xf32>
      %106 = arith.select %104, %99, %62 : vector<8x128xi1>, vector<8x128xf32>
      %cst_35 = arith.constant 0.000000e+00 : f32
      %107 = vector.broadcast %cst_35 : f32 to vector<8x128xf32>
      %108 = arith.select %104, %101, %107 : vector<8x128xi1>, vector<8x128xf32>
      %109 = arith.truncf %108 : vector<8x128xf32> to vector<8x128xbf16>
      %110 = arith.index_cast %c1_i32 : i32 to index
      %c0_36 = arith.constant 0 : index
      %c0_37 = arith.constant 0 : index
      %111 = vector.load %arg8[%110, %c0_36, %c0_37] : memref<8x8x128xbf16, #tpu.memory_space<vmem>>, vector<1x8x128xbf16>
      %112 = vector.shape_cast %111 : vector<1x8x128xbf16> to vector<8x128xbf16>
      %113 = vector.shape_cast %109 : vector<8x128xbf16> to vector<1x8x128xbf16>
      tpu.vector_store %arg8[%110, %c0_36, %c0_37], %113 {strides = array<i32>} : memref<8x8x128xbf16, #tpu.memory_space<vmem>>, vector<1x8x128xbf16>,
      %c2_i32 = arith.constant 2 : i32
      %c8_i32_38 = arith.constant 8 : i32
      %114 = arith.muli %c2_i32, %c8_i32_38 : i32
      %115 = tpu.assume_multiple %114, 8 : i32
      %116 = arith.index_cast %115 : i32 to index
      %c0_39 = arith.constant 0 : index
      %117 = vector.load %arg11[%116, %c0_39] : memref<64x512xf32, #tpu.memory_space<vmem>>, vector<8x512xf32>
      %118 = arith.truncf %105 : vector<8x128xf32> to vector<8x128xbf16>
      %cst_40 = arith.constant dense<0.000000e+00> : vector<8x512xf32>
      %119 = tpu.matmul %118, %20, %cst_40 {dimension_numbers = #tpu.dot_dimension_numbers<[1], [0], [0], [1], [0, 0, 1, 1], [], []>} : vector<8x128xbf16>, vector<128x512xbf16>, vector<8x512xf32> -> vector<8x512xf32>
      %120 = arith.addf %117, %119 : vector<8x512xf32>
      %121 = vector.extract_strided_slice %120 {offsets = [0, 0], sizes = [8, 128], strides = [1, 1]} : vector<8x512xf32> to vector<8x128xf32>
      %122 = arith.negf %121 : vector<8x128xf32>
      %123 = math.exp %122 : vector<8x128xf32>
      %cst_41 = arith.constant 1.000000e+00 : f32
      %124 = vector.broadcast %cst_41 : f32 to vector<8x128xf32>
      %125 = arith.addf %124, %123 : vector<8x128xf32>
      %126 = arith.divf %124, %125 : vector<8x128xf32>
      %127 = vector.extract_strided_slice %120 {offsets = [0, 128], sizes = [8, 128], strides = [1, 1]} : vector<8x512xf32> to vector<8x128xf32>
      %128 = arith.negf %127 : vector<8x128xf32>
      %129 = math.exp %128 : vector<8x128xf32>
      %cst_42 = arith.constant 1.000000e+00 : f32
      %130 = vector.broadcast %cst_42 : f32 to vector<8x128xf32>
      %131 = arith.addf %130, %129 : vector<8x128xf32>
      %132 = arith.divf %130, %131 : vector<8x128xf32>
      %133 = vector.extract_strided_slice %120 {offsets = [0, 256], sizes = [8, 128], strides = [1, 1]} : vector<8x512xf32> to vector<8x128xf32>
      %134 = math.tanh %133 : vector<8x128xf32>
      %135 = vector.extract_strided_slice %120 {offsets = [0, 384], sizes = [8, 128], strides = [1, 1]} : vector<8x512xf32> to vector<8x128xf32>
      %136 = arith.negf %135 : vector<8x128xf32>
      %137 = math.exp %136 : vector<8x128xf32>
      %cst_43 = arith.constant 1.000000e+00 : f32
      %138 = vector.broadcast %cst_43 : f32 to vector<8x128xf32>
      %139 = arith.addf %138, %137 : vector<8x128xf32>
      %140 = arith.divf %138, %139 : vector<8x128xf32>
      %141 = arith.mulf %132, %106 : vector<8x128xf32>
      %142 = arith.mulf %126, %134 : vector<8x128xf32>
      %143 = arith.addf %141, %142 : vector<8x128xf32>
      %144 = math.tanh %143 : vector<8x128xf32>
      %145 = arith.mulf %140, %144 : vector<8x128xf32>
      %146 = arith.addi %0, %c2_i32 : i32
      %147 = vector.broadcast %146 : i32 to vector<8x128xi32>
      %148 = arith.cmpi slt, %147, %23 : vector<8x128xi32>
      %149 = arith.select %148, %145, %105 : vector<8x128xi1>, vector<8x128xf32>
      %150 = arith.select %148, %143, %106 : vector<8x128xi1>, vector<8x128xf32>
      %cst_44 = arith.constant 0.000000e+00 : f32
      %151 = vector.broadcast %cst_44 : f32 to vector<8x128xf32>
      %152 = arith.select %148, %145, %151 : vector<8x128xi1>, vector<8x128xf32>
      %153 = arith.truncf %152 : vector<8x128xf32> to vector<8x128xbf16>
      %154 = arith.index_cast %c2_i32 : i32 to index
      %c0_45 = arith.constant 0 : index
      %c0_46 = arith.constant 0 : index
      %155 = vector.load %arg8[%154, %c0_45, %c0_46] : memref<8x8x128xbf16, #tpu.memory_space<vmem>>, vector<1x8x128xbf16>
      %156 = vector.shape_cast %155 : vector<1x8x128xbf16> to vector<8x128xbf16>
      %157 = vector.shape_cast %153 : vector<8x128xbf16> to vector<1x8x128xbf16>
      tpu.vector_store %arg8[%154, %c0_45, %c0_46], %157 {strides = array<i32>} : memref<8x8x128xbf16, #tpu.memory_space<vmem>>, vector<1x8x128xbf16>,
      %c3_i32 = arith.constant 3 : i32
      %c8_i32_47 = arith.constant 8 : i32
      %158 = arith.muli %c3_i32, %c8_i32_47 : i32
      %159 = tpu.assume_multiple %158, 8 : i32
      %160 = arith.index_cast %159 : i32 to index
      %c0_48 = arith.constant 0 : index
      %161 = vector.load %arg11[%160, %c0_48] : memref<64x512xf32, #tpu.memory_space<vmem>>, vector<8x512xf32>
      %162 = arith.truncf %149 : vector<8x128xf32> to vector<8x128xbf16>
      %cst_49 = arith.constant dense<0.000000e+00> : vector<8x512xf32>
      %163 = tpu.matmul %162, %20, %cst_49 {dimension_numbers = #tpu.dot_dimension_numbers<[1], [0], [0], [1], [0, 0, 1, 1], [], []>} : vector<8x128xbf16>, vector<128x512xbf16>, vector<8x512xf32> -> vector<8x512xf32>
      %164 = arith.addf %161, %163 : vector<8x512xf32>
      %165 = vector.extract_strided_slice %164 {offsets = [0, 0], sizes = [8, 128], strides = [1, 1]} : vector<8x512xf32> to vector<8x128xf32>
      %166 = arith.negf %165 : vector<8x128xf32>
      %167 = math.exp %166 : vector<8x128xf32>
      %cst_50 = arith.constant 1.000000e+00 : f32
      %168 = vector.broadcast %cst_50 : f32 to vector<8x128xf32>
      %169 = arith.addf %168, %167 : vector<8x128xf32>
      %170 = arith.divf %168, %169 : vector<8x128xf32>
      %171 = vector.extract_strided_slice %164 {offsets = [0, 128], sizes = [8, 128], strides = [1, 1]} : vector<8x512xf32> to vector<8x128xf32>
      %172 = arith.negf %171 : vector<8x128xf32>
      %173 = math.exp %172 : vector<8x128xf32>
      %cst_51 = arith.constant 1.000000e+00 : f32
      %174 = vector.broadcast %cst_51 : f32 to vector<8x128xf32>
      %175 = arith.addf %174, %173 : vector<8x128xf32>
      %176 = arith.divf %174, %175 : vector<8x128xf32>
      %177 = vector.extract_strided_slice %164 {offsets = [0, 256], sizes = [8, 128], strides = [1, 1]} : vector<8x512xf32> to vector<8x128xf32>
      %178 = math.tanh %177 : vector<8x128xf32>
      %179 = vector.extract_strided_slice %164 {offsets = [0, 384], sizes = [8, 128], strides = [1, 1]} : vector<8x512xf32> to vector<8x128xf32>
      %180 = arith.negf %179 : vector<8x128xf32>
      %181 = math.exp %180 : vector<8x128xf32>
      %cst_52 = arith.constant 1.000000e+00 : f32
      %182 = vector.broadcast %cst_52 : f32 to vector<8x128xf32>
      %183 = arith.addf %182, %181 : vector<8x128xf32>
      %184 = arith.divf %182, %183 : vector<8x128xf32>
      %185 = arith.mulf %176, %150 : vector<8x128xf32>
      %186 = arith.mulf %170, %178 : vector<8x128xf32>
      %187 = arith.addf %185, %186 : vector<8x128xf32>
      %188 = math.tanh %187 : vector<8x128xf32>
      %189 = arith.mulf %184, %188 : vector<8x128xf32>
      %190 = arith.addi %0, %c3_i32 : i32
      %191 = vector.broadcast %190 : i32 to vector<8x128xi32>
      %192 = arith.cmpi slt, %191, %23 : vector<8x128xi32>
      %193 = arith.select %192, %189, %149 : vector<8x128xi1>, vector<8x128xf32>
      %194 = arith.select %192, %187, %150 : vector<8x128xi1>, vector<8x128xf32>
      %cst_53 = arith.constant 0.000000e+00 : f32
      %195 = vector.broadcast %cst_53 : f32 to vector<8x128xf32>
      %196 = arith.select %192, %189, %195 : vector<8x128xi1>, vector<8x128xf32>
      %197 = arith.truncf %196 : vector<8x128xf32> to vector<8x128xbf16>
      %198 = arith.index_cast %c3_i32 : i32 to index
      %c0_54 = arith.constant 0 : index
      %c0_55 = arith.constant 0 : index
      %199 = vector.load %arg8[%198, %c0_54, %c0_55] : memref<8x8x128xbf16, #tpu.memory_space<vmem>>, vector<1x8x128xbf16>
      %200 = vector.shape_cast %199 : vector<1x8x128xbf16> to vector<8x128xbf16>
      %201 = vector.shape_cast %197 : vector<8x128xbf16> to vector<1x8x128xbf16>
      tpu.vector_store %arg8[%198, %c0_54, %c0_55], %201 {strides = array<i32>} : memref<8x8x128xbf16, #tpu.memory_space<vmem>>, vector<1x8x128xbf16>,
      %c4_i32 = arith.constant 4 : i32
      %c8_i32_56 = arith.constant 8 : i32
      %202 = arith.muli %c4_i32, %c8_i32_56 : i32
      %203 = tpu.assume_multiple %202, 8 : i32
      %204 = arith.index_cast %203 : i32 to index
      %c0_57 = arith.constant 0 : index
      %205 = vector.load %arg11[%204, %c0_57] : memref<64x512xf32, #tpu.memory_space<vmem>>, vector<8x512xf32>
      %206 = arith.truncf %193 : vector<8x128xf32> to vector<8x128xbf16>
      %cst_58 = arith.constant dense<0.000000e+00> : vector<8x512xf32>
      %207 = tpu.matmul %206, %20, %cst_58 {dimension_numbers = #tpu.dot_dimension_numbers<[1], [0], [0], [1], [0, 0, 1, 1], [], []>} : vector<8x128xbf16>, vector<128x512xbf16>, vector<8x512xf32> -> vector<8x512xf32>
      %208 = arith.addf %205, %207 : vector<8x512xf32>
      %209 = vector.extract_strided_slice %208 {offsets = [0, 0], sizes = [8, 128], strides = [1, 1]} : vector<8x512xf32> to vector<8x128xf32>
      %210 = arith.negf %209 : vector<8x128xf32>
      %211 = math.exp %210 : vector<8x128xf32>
      %cst_59 = arith.constant 1.000000e+00 : f32
      %212 = vector.broadcast %cst_59 : f32 to vector<8x128xf32>
      %213 = arith.addf %212, %211 : vector<8x128xf32>
      %214 = arith.divf %212, %213 : vector<8x128xf32>
      %215 = vector.extract_strided_slice %208 {offsets = [0, 128], sizes = [8, 128], strides = [1, 1]} : vector<8x512xf32> to vector<8x128xf32>
      %216 = arith.negf %215 : vector<8x128xf32>
      %217 = math.exp %216 : vector<8x128xf32>
      %cst_60 = arith.constant 1.000000e+00 : f32
      %218 = vector.broadcast %cst_60 : f32 to vector<8x128xf32>
      %219 = arith.addf %218, %217 : vector<8x128xf32>
      %220 = arith.divf %218, %219 : vector<8x128xf32>
      %221 = vector.extract_strided_slice %208 {offsets = [0, 256], sizes = [8, 128], strides = [1, 1]} : vector<8x512xf32> to vector<8x128xf32>
      %222 = math.tanh %221 : vector<8x128xf32>
      %223 = vector.extract_strided_slice %208 {offsets = [0, 384], sizes = [8, 128], strides = [1, 1]} : vector<8x512xf32> to vector<8x128xf32>
      %224 = arith.negf %223 : vector<8x128xf32>
      %225 = math.exp %224 : vector<8x128xf32>
      %cst_61 = arith.constant 1.000000e+00 : f32
      %226 = vector.broadcast %cst_61 : f32 to vector<8x128xf32>
      %227 = arith.addf %226, %225 : vector<8x128xf32>
      %228 = arith.divf %226, %227 : vector<8x128xf32>
      %229 = arith.mulf %220, %194 : vector<8x128xf32>
      %230 = arith.mulf %214, %222 : vector<8x128xf32>
      %231 = arith.addf %229, %230 : vector<8x128xf32>
      %232 = math.tanh %231 : vector<8x128xf32>
      %233 = arith.mulf %228, %232 : vector<8x128xf32>
      %234 = arith.addi %0, %c4_i32 : i32
      %235 = vector.broadcast %234 : i32 to vector<8x128xi32>
      %236 = arith.cmpi slt, %235, %23 : vector<8x128xi32>
      %237 = arith.select %236, %233, %193 : vector<8x128xi1>, vector<8x128xf32>
      %238 = arith.select %236, %231, %194 : vector<8x128xi1>, vector<8x128xf32>
      %cst_62 = arith.constant 0.000000e+00 : f32
      %239 = vector.broadcast %cst_62 : f32 to vector<8x128xf32>
      %240 = arith.select %236, %233, %239 : vector<8x128xi1>, vector<8x128xf32>
      %241 = arith.truncf %240 : vector<8x128xf32> to vector<8x128xbf16>
      %242 = arith.index_cast %c4_i32 : i32 to index
      %c0_63 = arith.constant 0 : index
      %c0_64 = arith.constant 0 : index
      %243 = vector.load %arg8[%242, %c0_63, %c0_64] : memref<8x8x128xbf16, #tpu.memory_space<vmem>>, vector<1x8x128xbf16>
      %244 = vector.shape_cast %243 : vector<1x8x128xbf16> to vector<8x128xbf16>
      %245 = vector.shape_cast %241 : vector<8x128xbf16> to vector<1x8x128xbf16>
      tpu.vector_store %arg8[%242, %c0_63, %c0_64], %245 {strides = array<i32>} : memref<8x8x128xbf16, #tpu.memory_space<vmem>>, vector<1x8x128xbf16>,
      %c5_i32 = arith.constant 5 : i32
      %c8_i32_65 = arith.constant 8 : i32
      %246 = arith.muli %c5_i32, %c8_i32_65 : i32
      %247 = tpu.assume_multiple %246, 8 : i32
      %248 = arith.index_cast %247 : i32 to index
      %c0_66 = arith.constant 0 : index
      %249 = vector.load %arg11[%248, %c0_66] : memref<64x512xf32, #tpu.memory_space<vmem>>, vector<8x512xf32>
      %250 = arith.truncf %237 : vector<8x128xf32> to vector<8x128xbf16>
      %cst_67 = arith.constant dense<0.000000e+00> : vector<8x512xf32>
      %251 = tpu.matmul %250, %20, %cst_67 {dimension_numbers = #tpu.dot_dimension_numbers<[1], [0], [0], [1], [0, 0, 1, 1], [], []>} : vector<8x128xbf16>, vector<128x512xbf16>, vector<8x512xf32> -> vector<8x512xf32>
      %252 = arith.addf %249, %251 : vector<8x512xf32>
      %253 = vector.extract_strided_slice %252 {offsets = [0, 0], sizes = [8, 128], strides = [1, 1]} : vector<8x512xf32> to vector<8x128xf32>
      %254 = arith.negf %253 : vector<8x128xf32>
      %255 = math.exp %254 : vector<8x128xf32>
      %cst_68 = arith.constant 1.000000e+00 : f32
      %256 = vector.broadcast %cst_68 : f32 to vector<8x128xf32>
      %257 = arith.addf %256, %255 : vector<8x128xf32>
      %258 = arith.divf %256, %257 : vector<8x128xf32>
      %259 = vector.extract_strided_slice %252 {offsets = [0, 128], sizes = [8, 128], strides = [1, 1]} : vector<8x512xf32> to vector<8x128xf32>
      %260 = arith.negf %259 : vector<8x128xf32>
      %261 = math.exp %260 : vector<8x128xf32>
      %cst_69 = arith.constant 1.000000e+00 : f32
      %262 = vector.broadcast %cst_69 : f32 to vector<8x128xf32>
      %263 = arith.addf %262, %261 : vector<8x128xf32>
      %264 = arith.divf %262, %263 : vector<8x128xf32>
      %265 = vector.extract_strided_slice %252 {offsets = [0, 256], sizes = [8, 128], strides = [1, 1]} : vector<8x512xf32> to vector<8x128xf32>
      %266 = math.tanh %265 : vector<8x128xf32>
      %267 = vector.extract_strided_slice %252 {offsets = [0, 384], sizes = [8, 128], strides = [1, 1]} : vector<8x512xf32> to vector<8x128xf32>
      %268 = arith.negf %267 : vector<8x128xf32>
      %269 = math.exp %268 : vector<8x128xf32>
      %cst_70 = arith.constant 1.000000e+00 : f32
      %270 = vector.broadcast %cst_70 : f32 to vector<8x128xf32>
      %271 = arith.addf %270, %269 : vector<8x128xf32>
      %272 = arith.divf %270, %271 : vector<8x128xf32>
      %273 = arith.mulf %264, %238 : vector<8x128xf32>
      %274 = arith.mulf %258, %266 : vector<8x128xf32>
      %275 = arith.addf %273, %274 : vector<8x128xf32>
      %276 = math.tanh %275 : vector<8x128xf32>
      %277 = arith.mulf %272, %276 : vector<8x128xf32>
      %278 = arith.addi %0, %c5_i32 : i32
      %279 = vector.broadcast %278 : i32 to vector<8x128xi32>
      %280 = arith.cmpi slt, %279, %23 : vector<8x128xi32>
      %281 = arith.select %280, %277, %237 : vector<8x128xi1>, vector<8x128xf32>
      %282 = arith.select %280, %275, %238 : vector<8x128xi1>, vector<8x128xf32>
      %cst_71 = arith.constant 0.000000e+00 : f32
      %283 = vector.broadcast %cst_71 : f32 to vector<8x128xf32>
      %284 = arith.select %280, %277, %283 : vector<8x128xi1>, vector<8x128xf32>
      %285 = arith.truncf %284 : vector<8x128xf32> to vector<8x128xbf16>
      %286 = arith.index_cast %c5_i32 : i32 to index
      %c0_72 = arith.constant 0 : index
      %c0_73 = arith.constant 0 : index
      %287 = vector.load %arg8[%286, %c0_72, %c0_73] : memref<8x8x128xbf16, #tpu.memory_space<vmem>>, vector<1x8x128xbf16>
      %288 = vector.shape_cast %287 : vector<1x8x128xbf16> to vector<8x128xbf16>
      %289 = vector.shape_cast %285 : vector<8x128xbf16> to vector<1x8x128xbf16>
      tpu.vector_store %arg8[%286, %c0_72, %c0_73], %289 {strides = array<i32>} : memref<8x8x128xbf16, #tpu.memory_space<vmem>>, vector<1x8x128xbf16>,
      %c6_i32 = arith.constant 6 : i32
      %c8_i32_74 = arith.constant 8 : i32
      %290 = arith.muli %c6_i32, %c8_i32_74 : i32
      %291 = tpu.assume_multiple %290, 8 : i32
      %292 = arith.index_cast %291 : i32 to index
      %c0_75 = arith.constant 0 : index
      %293 = vector.load %arg11[%292, %c0_75] : memref<64x512xf32, #tpu.memory_space<vmem>>, vector<8x512xf32>
      %294 = arith.truncf %281 : vector<8x128xf32> to vector<8x128xbf16>
      %cst_76 = arith.constant dense<0.000000e+00> : vector<8x512xf32>
      %295 = tpu.matmul %294, %20, %cst_76 {dimension_numbers = #tpu.dot_dimension_numbers<[1], [0], [0], [1], [0, 0, 1, 1], [], []>} : vector<8x128xbf16>, vector<128x512xbf16>, vector<8x512xf32> -> vector<8x512xf32>
      %296 = arith.addf %293, %295 : vector<8x512xf32>
      %297 = vector.extract_strided_slice %296 {offsets = [0, 0], sizes = [8, 128], strides = [1, 1]} : vector<8x512xf32> to vector<8x128xf32>
      %298 = arith.negf %297 : vector<8x128xf32>
      %299 = math.exp %298 : vector<8x128xf32>
      %cst_77 = arith.constant 1.000000e+00 : f32
      %300 = vector.broadcast %cst_77 : f32 to vector<8x128xf32>
      %301 = arith.addf %300, %299 : vector<8x128xf32>
      %302 = arith.divf %300, %301 : vector<8x128xf32>
      %303 = vector.extract_strided_slice %296 {offsets = [0, 128], sizes = [8, 128], strides = [1, 1]} : vector<8x512xf32> to vector<8x128xf32>
      %304 = arith.negf %303 : vector<8x128xf32>
      %305 = math.exp %304 : vector<8x128xf32>
      %cst_78 = arith.constant 1.000000e+00 : f32
      %306 = vector.broadcast %cst_78 : f32 to vector<8x128xf32>
      %307 = arith.addf %306, %305 : vector<8x128xf32>
      %308 = arith.divf %306, %307 : vector<8x128xf32>
      %309 = vector.extract_strided_slice %296 {offsets = [0, 256], sizes = [8, 128], strides = [1, 1]} : vector<8x512xf32> to vector<8x128xf32>
      %310 = math.tanh %309 : vector<8x128xf32>
      %311 = vector.extract_strided_slice %296 {offsets = [0, 384], sizes = [8, 128], strides = [1, 1]} : vector<8x512xf32> to vector<8x128xf32>
      %312 = arith.negf %311 : vector<8x128xf32>
      %313 = math.exp %312 : vector<8x128xf32>
      %cst_79 = arith.constant 1.000000e+00 : f32
      %314 = vector.broadcast %cst_79 : f32 to vector<8x128xf32>
      %315 = arith.addf %314, %313 : vector<8x128xf32>
      %316 = arith.divf %314, %315 : vector<8x128xf32>
      %317 = arith.mulf %308, %282 : vector<8x128xf32>
      %318 = arith.mulf %302, %310 : vector<8x128xf32>
      %319 = arith.addf %317, %318 : vector<8x128xf32>
      %320 = math.tanh %319 : vector<8x128xf32>
      %321 = arith.mulf %316, %320 : vector<8x128xf32>
      %322 = arith.addi %0, %c6_i32 : i32
      %323 = vector.broadcast %322 : i32 to vector<8x128xi32>
      %324 = arith.cmpi slt, %323, %23 : vector<8x128xi32>
      %325 = arith.select %324, %321, %281 : vector<8x128xi1>, vector<8x128xf32>
      %326 = arith.select %324, %319, %282 : vector<8x128xi1>, vector<8x128xf32>
      %cst_80 = arith.constant 0.000000e+00 : f32
      %327 = vector.broadcast %cst_80 : f32 to vector<8x128xf32>
      %328 = arith.select %324, %321, %327 : vector<8x128xi1>, vector<8x128xf32>
      %329 = arith.truncf %328 : vector<8x128xf32> to vector<8x128xbf16>
      %330 = arith.index_cast %c6_i32 : i32 to index
      %c0_81 = arith.constant 0 : index
      %c0_82 = arith.constant 0 : index
      %331 = vector.load %arg8[%330, %c0_81, %c0_82] : memref<8x8x128xbf16, #tpu.memory_space<vmem>>, vector<1x8x128xbf16>
      %332 = vector.shape_cast %331 : vector<1x8x128xbf16> to vector<8x128xbf16>
      %333 = vector.shape_cast %329 : vector<8x128xbf16> to vector<1x8x128xbf16>
      tpu.vector_store %arg8[%330, %c0_81, %c0_82], %333 {strides = array<i32>} : memref<8x8x128xbf16, #tpu.memory_space<vmem>>, vector<1x8x128xbf16>,
      %c7_i32 = arith.constant 7 : i32
      %c8_i32_83 = arith.constant 8 : i32
      %334 = arith.muli %c7_i32, %c8_i32_83 : i32
      %335 = tpu.assume_multiple %334, 8 : i32
      %336 = arith.index_cast %335 : i32 to index
      %c0_84 = arith.constant 0 : index
      %337 = vector.load %arg11[%336, %c0_84] : memref<64x512xf32, #tpu.memory_space<vmem>>, vector<8x512xf32>
      %338 = arith.truncf %325 : vector<8x128xf32> to vector<8x128xbf16>
      %cst_85 = arith.constant dense<0.000000e+00> : vector<8x512xf32>
      %339 = tpu.matmul %338, %20, %cst_85 {dimension_numbers = #tpu.dot_dimension_numbers<[1], [0], [0], [1], [0, 0, 1, 1], [], []>} : vector<8x128xbf16>, vector<128x512xbf16>, vector<8x512xf32> -> vector<8x512xf32>
      %340 = arith.addf %337, %339 : vector<8x512xf32>
      %341 = vector.extract_strided_slice %340 {offsets = [0, 0], sizes = [8, 128], strides = [1, 1]} : vector<8x512xf32> to vector<8x128xf32>
      %342 = arith.negf %341 : vector<8x128xf32>
      %343 = math.exp %342 : vector<8x128xf32>
      %cst_86 = arith.constant 1.000000e+00 : f32
      %344 = vector.broadcast %cst_86 : f32 to vector<8x128xf32>
      %345 = arith.addf %344, %343 : vector<8x128xf32>
      %346 = arith.divf %344, %345 : vector<8x128xf32>
      %347 = vector.extract_strided_slice %340 {offsets = [0, 128], sizes = [8, 128], strides = [1, 1]} : vector<8x512xf32> to vector<8x128xf32>
      %348 = arith.negf %347 : vector<8x128xf32>
      %349 = math.exp %348 : vector<8x128xf32>
      %cst_87 = arith.constant 1.000000e+00 : f32
      %350 = vector.broadcast %cst_87 : f32 to vector<8x128xf32>
      %351 = arith.addf %350, %349 : vector<8x128xf32>
      %352 = arith.divf %350, %351 : vector<8x128xf32>
      %353 = vector.extract_strided_slice %340 {offsets = [0, 256], sizes = [8, 128], strides = [1, 1]} : vector<8x512xf32> to vector<8x128xf32>
      %354 = math.tanh %353 : vector<8x128xf32>
      %355 = vector.extract_strided_slice %340 {offsets = [0, 384], sizes = [8, 128], strides = [1, 1]} : vector<8x512xf32> to vector<8x128xf32>
      %356 = arith.negf %355 : vector<8x128xf32>
      %357 = math.exp %356 : vector<8x128xf32>
      %cst_88 = arith.constant 1.000000e+00 : f32
      %358 = vector.broadcast %cst_88 : f32 to vector<8x128xf32>
      %359 = arith.addf %358, %357 : vector<8x128xf32>
      %360 = arith.divf %358, %359 : vector<8x128xf32>
      %361 = arith.mulf %352, %326 : vector<8x128xf32>
      %362 = arith.mulf %346, %354 : vector<8x128xf32>
      %363 = arith.addf %361, %362 : vector<8x128xf32>
      %364 = math.tanh %363 : vector<8x128xf32>
      %365 = arith.mulf %360, %364 : vector<8x128xf32>
      %366 = arith.addi %0, %c7_i32 : i32
      %367 = vector.broadcast %366 : i32 to vector<8x128xi32>
      %368 = arith.cmpi slt, %367, %23 : vector<8x128xi32>
      %369 = arith.select %368, %365, %325 : vector<8x128xi1>, vector<8x128xf32>
      %370 = arith.select %368, %363, %326 : vector<8x128xi1>, vector<8x128xf32>
      %cst_89 = arith.constant 0.000000e+00 : f32
      %371 = vector.broadcast %cst_89 : f32 to vector<8x128xf32>
      %372 = arith.select %368, %365, %371 : vector<8x128xi1>, vector<8x128xf32>
      %373 = arith.truncf %372 : vector<8x128xf32> to vector<8x128xbf16>
      %374 = arith.index_cast %c7_i32 : i32 to index
      %c0_90 = arith.constant 0 : index
      %c0_91 = arith.constant 0 : index
      %375 = vector.load %arg8[%374, %c0_90, %c0_91] : memref<8x8x128xbf16, #tpu.memory_space<vmem>>, vector<1x8x128xbf16>
      %376 = vector.shape_cast %375 : vector<1x8x128xbf16> to vector<8x128xbf16>
      %377 = vector.shape_cast %373 : vector<8x128xbf16> to vector<1x8x128xbf16>
      tpu.vector_store %arg8[%374, %c0_90, %c0_91], %377 {strides = array<i32>} : memref<8x8x128xbf16, #tpu.memory_space<vmem>>, vector<1x8x128xbf16>,
      %c8_i32_92 = arith.constant 8 : i32
      %c0_93 = arith.constant 0 : index
      %c0_94 = arith.constant 0 : index
      %378 = vector.load %arg9[%c0_93, %c0_94] : memref<8x128xf32, #tpu.memory_space<vmem>>, vector<8x128xf32>
      tpu.vector_store %arg9[%c0_93, %c0_94], %369 {strides = array<i32>} : memref<8x128xf32, #tpu.memory_space<vmem>>, vector<8x128xf32>,
      %c0_95 = arith.constant 0 : index
      %c0_96 = arith.constant 0 : index
      %379 = vector.load %arg10[%c0_95, %c0_96] : memref<8x128xf32, #tpu.memory_space<vmem>>, vector<8x128xf32>
      tpu.vector_store %arg10[%c0_95, %c0_96], %370 {strides = array<i32>} : memref<8x128xf32, #tpu.memory_space<vmem>>, vector<8x128xf32>,
    } else {
    }
    %9 = arith.cmpi sge, %0, %5 : i32
    %10 = arith.extui %9 : i1 to i32
    %c0_i32_2 = arith.constant 0 : i32
    %11 = arith.cmpi ne, %10, %c0_i32_2 : i32
    scf.if %11 {
      %cst = arith.constant 0.000000e+00 : bf16
      %12 = vector.broadcast %cst : bf16 to vector<8x8x128xbf16>
      %c0 = arith.constant 0 : index
      %c0_3 = arith.constant 0 : index
      %c0_4 = arith.constant 0 : index
      %13 = vector.load %arg8[%c0, %c0_3, %c0_4] : memref<8x8x128xbf16, #tpu.memory_space<vmem>>, vector<8x8x128xbf16>
      tpu.vector_store %arg8[%c0, %c0_3, %c0_4], %12 {strides = array<i32>} : memref<8x8x128xbf16, #tpu.memory_space<vmem>>, vector<8x8x128xbf16>,
    } else {
    }
    return
  }
  func.func @transform_0(%arg0: i32, %arg1: i32, %arg2: memref<1xi32, #tpu.memory_space<smem>>) -> (i32, i32) {
    %c0_i32 = arith.constant 0 : i32
    %c0_i32_0 = arith.constant 0 : i32
    return %arg0, %c0_i32 : i32, i32
  }
  func.func @transform_1(%arg0: i32, %arg1: i32, %arg2: memref<1xi32, #tpu.memory_space<smem>>) -> (i32, i32, i32) {
    %c0_i32 = arith.constant 0 : i32
    %c0_i32_0 = arith.constant 0 : i32
    return %arg1, %arg0, %c0_i32 : i32, i32, i32
  }
  func.func @transform_2(%arg0: i32, %arg1: i32, %arg2: memref<1xi32, #tpu.memory_space<smem>>) -> (i32, i32) {
    %c0_i32 = arith.constant 0 : i32
    %c0_i32_0 = arith.constant 0 : i32
    %c0_i32_1 = arith.constant 0 : i32
    return %c0_i32, %c0_i32_0 : i32, i32
  }
  func.func @transform_3(%arg0: i32, %arg1: i32, %arg2: memref<1xi32, #tpu.memory_space<smem>>) -> (i32, i32) {
    %c0_i32 = arith.constant 0 : i32
    %c0_i32_0 = arith.constant 0 : i32
    %c0_i32_1 = arith.constant 0 : i32
    return %c0_i32, %c0_i32_0 : i32, i32
  }
  func.func @transform_4(%arg0: i32, %arg1: i32, %arg2: memref<1xi32, #tpu.memory_space<smem>>) -> (i32, i32) {
    %c0_i32 = arith.constant 0 : i32
    %c0_i32_0 = arith.constant 0 : i32
    %c0_i32_1 = arith.constant 0 : i32
    return %c0_i32, %c0_i32_0 : i32, i32
  }
  func.func @transform_5(%arg0: i32, %arg1: i32, %arg2: memref<1xi32, #tpu.memory_space<smem>>) -> (i32, i32, i32) {
    %c0_i32 = arith.constant 0 : i32
    %c0_i32_0 = arith.constant 0 : i32
    return %arg1, %arg0, %c0_i32 : i32, i32, i32
  }
}

module attributes {stable_mosaic.version = 11 : i64} {
  func.func @_lstm_layer_kernel(%arg0: i32, %arg1: i32, %arg2: memref<1xi32, #tpu.memory_space<smem>>, %arg3: memref<8x1xi32, #tpu.memory_space<vmem>>, %arg4: memref<8x8x128xbf16, #tpu.memory_space<vmem>>, %arg5: memref<128x512xbf16, #tpu.memory_space<vmem>>, %arg6: memref<128x512xbf16, #tpu.memory_space<vmem>>, %arg7: memref<1x512xf32, #tpu.memory_space<vmem>>, %arg8: memref<8x8x128xbf16, #tpu.memory_space<vmem>>, %arg9: memref<8x128xf32, #tpu.memory_space<vmem>>, %arg10: memref<8x128xf32, #tpu.memory_space<vmem>>, %arg11: memref<64x512xf32, #tpu.memory_space<vmem>>) attributes {dimension_semantics = [#tpu.dimension_semantics<parallel>, #tpu.dimension_semantics<arbitrary>], iteration_bounds = array<i64: 1, 1>, scalar_prefetch = 1 : i64, scratch_operands = 3 : i64, tpu.core_type = #tpu.core_type<tc>, window_params = [{transform_indices = @transform_0, window_bounds = array<i64: 8, 1>}, {transform_indices = @transform_1, window_bounds = array<i64: 8, 8, 128>}, {pipeline_mode = #tpu.pipeline_mode<synchronous>, transform_indices = @transform_2, window_bounds = array<i64: 128, 512>}, {pipeline_mode = #tpu.pipeline_mode<synchronous>, transform_indices = @transform_3, window_bounds = array<i64: 128, 512>}, {pipeline_mode = #tpu.pipeline_mode<synchronous>, transform_indices = @transform_4, window_bounds = array<i64: 1, 512>}, {transform_indices = @transform_5, window_bounds = array<i64: 8, 8, 128>}]} {
    %c8_i32 = arith.constant 8 : i32
    %0 = arith.muli %arg1, %c8_i32 : i32
    %c0_i32 = arith.constant 0 : i32
    %1 = arith.cmpi eq, %arg1, %c0_i32 : i32
    %2 = arith.extui %1 : i1 to i32
    %c0_i32_0 = arith.constant 0 : i32
    %3 = arith.cmpi ne, %2, %c0_i32_0 : i32
    scf.if %3 {
      %cst = arith.constant 0.000000e+00 : f32
      %12 = vector.broadcast %cst : f32 to vector<8x128xf32>
      %c0 = arith.constant 0 : index
      %c0_3 = arith.constant 0 : index
      %13 = vector.load %arg9[%c0, %c0_3] : memref<8x128xf32, #tpu.memory_space<vmem>>, vector<8x128xf32>
      tpu.vector_store %arg9[%c0, %c0_3], %12 {strides = array<i32>} : memref<8x128xf32, #tpu.memory_space<vmem>>, vector<8x128xf32>,
      %cst_4 = arith.constant 0.000000e+00 : f32
      %14 = vector.broadcast %cst_4 : f32 to vector<8x128xf32>
      %c0_5 = arith.constant 0 : index
      %c0_6 = arith.constant 0 : index
      %15 = vector.load %arg10[%c0_5, %c0_6] : memref<8x128xf32, #tpu.memory_space<vmem>>, vector<8x128xf32>
      tpu.vector_store %arg10[%c0_5, %c0_6], %14 {strides = array<i32>} : memref<8x128xf32, #tpu.memory_space<vmem>>, vector<8x128xf32>,
    } else {
    }
    %4 = arith.index_cast %arg0 : i32 to index
    %5 = memref.load %arg2[%4] : memref<1xi32, #tpu.memory_space<smem>>
    %6 = arith.cmpi slt, %0, %5 : i32
    %7 = arith.extui %6 : i1 to i32
    %c0_i32_1 = arith.constant 0 : i32
    %8 = arith.cmpi ne, %7, %c0_i32_1 : i32
    scf.if %8 {
      %c0 = arith.constant 0 : index
      %c0_3 = arith.constant 0 : index
      %c0_4 = arith.constant 0 : index
      %12 = vector.load %arg4[%c0, %c0_3, %c0_4] : memref<8x8x128xbf16, #tpu.memory_space<vmem>>, vector<8x8x128xbf16>
      %13 = vector.shape_cast %12 : vector<8x8x128xbf16> to vector<64x128xbf16>
      %c0_5 = arith.constant 0 : index
      %c0_6 = arith.constant 0 : index
      %14 = vector.load %arg5[%c0_5, %c0_6] : memref<128x512xbf16, #tpu.memory_space<vmem>>, vector<128x512xbf16>
      %cst = arith.constant dense<0.000000e+00> : vector<64x512xf32>
      %15 = tpu.matmul %13, %14, %cst {dimension_numbers = #tpu.dot_dimension_numbers<[1], [0], [0], [1], [0, 0, 1, 1], [], []>} : vector<64x128xbf16>, vector<128x512xbf16>, vector<64x512xf32> -> vector<64x512xf32>
      %c0_7 = arith.constant 0 : index
      %c0_8 = arith.constant 0 : index
      %16 = vector.load %arg7[%c0_7, %c0_8] : memref<1x512xf32, #tpu.memory_space<vmem>>, vector<1x512xf32>
      %17 = vector.broadcast %16 : vector<1x512xf32> to vector<64x512xf32>
      %18 = arith.addf %15, %17 : vector<64x512xf32>
      %c0_9 = arith.constant 0 : index
      %c0_10 = arith.constant 0 : index
      %19 = vector.load %arg11[%c0_9, %c0_10] : memref<64x512xf32, #tpu.memory_space<vmem>>, vector<64x512xf32>
      tpu.vector_store %arg11[%c0_9, %c0_10], %18 {strides = array<i32>} : memref<64x512xf32, #tpu.memory_space<vmem>>, vector<64x512xf32>,
      %c0_11 = arith.constant 0 : index
      %c0_12 = arith.constant 0 : index
      %20 = vector.load %arg6[%c0_11, %c0_12] : memref<128x512xbf16, #tpu.memory_space<vmem>>, vector<128x512xbf16>
      %c0_13 = arith.constant 0 : index
      %c0_14 = arith.constant 0 : index
      %21 = vector.load %arg3[%c0_13, %c0_14] : memref<8x1xi32, #tpu.memory_space<vmem>>, vector<8x1xi32>
      %22 = vector.shape_cast %21 : vector<8x1xi32> to vector<8x1xi32>
      %23 = vector.broadcast %22 : vector<8x1xi32> to vector<8x128xi32>
      %c0_15 = arith.constant 0 : index
      %c0_16 = arith.constant 0 : index
      %24 = vector.load %arg9[%c0_15, %c0_16] : memref<8x128xf32, #tpu.memory_space<vmem>>, vector<8x128xf32>
      %c0_17 = arith.constant 0 : index
      %c0_18 = arith.constant 0 : index
      %25 = vector.load %arg10[%c0_17, %c0_18] : memref<8x128xf32, #tpu.memory_space<vmem>>, vector<8x128xf32>
      %c0_i32_19 = arith.constant 0 : i32
      %c8_i32_20 = arith.constant 8 : i32
      %26 = arith.muli %c0_i32_19, %c8_i32_20 : i32
      %27 = tpu.assume_multiple %26, 8 : i32
      %28 = arith.index_cast %27 : i32 to index
      %c0_21 = arith.constant 0 : index
      %29 = vector.load %arg11[%28, %c0_21] : memref<64x512xf32, #tpu.memory_space<vmem>>, vector<8x512xf32>
      %30 = arith.truncf %24 : vector<8x128xf32> to vector<8x128xbf16>
      %cst_22 = arith.constant dense<0.000000e+00> : vector<8x512xf32>
      %31 = tpu.matmul %30, %20, %cst_22 {dimension_numbers = #tpu.dot_dimension_numbers<[1], [0], [0], [1], [0, 0, 1, 1], [], []>} : vector<8x128xbf16>, vector<128x512xbf16>, vector<8x512xf32> -> vector<8x512xf32>
      %32 = arith.addf %29, %31 : vector<8x512xf32>
      %33 = vector.extract_strided_slice %32 {offsets = [0, 0], sizes = [8, 128], strides = [1, 1]} : vector<8x512xf32> to vector<8x128xf32>
      %34 = arith.negf %33 : vector<8x128xf32>
      %35 = math.exp %34 : vector<8x128xf32>
      %cst_23 = arith.constant 1.000000e+00 : f32
      %36 = vector.broadcast %cst_23 : f32 to vector<8x128xf32>
      %37 = arith.addf %36, %35 : vector<8x128xf32>
      %38 = arith.divf %36, %37 : vector<8x128xf32>
      %39 = vector.extract_strided_slice %32 {offsets = [0, 128], sizes = [8, 128], strides = [1, 1]} : vector<8x512xf32> to vector<8x128xf32>
      %40 = arith.negf %39 : vector<8x128xf32>
      %41 = math.exp %40 : vector<8x128xf32>
      %cst_24 = arith.constant 1.000000e+00 : f32
      %42 = vector.broadcast %cst_24 : f32 to vector<8x128xf32>
      %43 = arith.addf %42, %41 : vector<8x128xf32>
      %44 = arith.divf %42, %43 : vector<8x128xf32>
      %45 = vector.extract_strided_slice %32 {offsets = [0, 256], sizes = [8, 128], strides = [1, 1]} : vector<8x512xf32> to vector<8x128xf32>
      %46 = math.tanh %45 : vector<8x128xf32>
      %47 = vector.extract_strided_slice %32 {offsets = [0, 384], sizes = [8, 128], strides = [1, 1]} : vector<8x512xf32> to vector<8x128xf32>
      %48 = arith.negf %47 : vector<8x128xf32>
      %49 = math.exp %48 : vector<8x128xf32>
      %cst_25 = arith.constant 1.000000e+00 : f32
      %50 = vector.broadcast %cst_25 : f32 to vector<8x128xf32>
      %51 = arith.addf %50, %49 : vector<8x128xf32>
      %52 = arith.divf %50, %51 : vector<8x128xf32>
      %53 = arith.mulf %44, %25 : vector<8x128xf32>
      %54 = arith.mulf %38, %46 : vector<8x128xf32>
      %55 = arith.addf %53, %54 : vector<8x128xf32>
      %56 = math.tanh %55 : vector<8x128xf32>
      %57 = arith.mulf %52, %56 : vector<8x128xf32>
      %58 = arith.addi %0, %c0_i32_19 : i32
      %59 = vector.broadcast %58 : i32 to vector<8x128xi32>
      %60 = arith.cmpi slt, %59, %23 : vector<8x128xi32>
      %61 = arith.select %60, %57, %24 : vector<8x128xi1>, vector<8x128xf32>
      %62 = arith.select %60, %55, %25 : vector<8x128xi1>, vector<8x128xf32>
      %cst_26 = arith.constant 0.000000e+00 : f32
      %63 = vector.broadcast %cst_26 : f32 to vector<8x128xf32>
      %64 = arith.select %60, %57, %63 : vector<8x128xi1>, vector<8x128xf32>
      %65 = arith.truncf %64 : vector<8x128xf32> to vector<8x128xbf16>
      %66 = arith.index_cast %c0_i32_19 : i32 to index
      %c0_27 = arith.constant 0 : index
      %c0_28 = arith.constant 0 : index
      %67 = vector.load %arg8[%66, %c0_27, %c0_28] : memref<8x8x128xbf16, #tpu.memory_space<vmem>>, vector<1x8x128xbf16>
      %68 = vector.shape_cast %67 : vector<1x8x128xbf16> to vector<8x128xbf16>
      %69 = vector.shape_cast %65 : vector<8x128xbf16> to vector<1x8x128xbf16>
      tpu.vector_store %arg8[%66, %c0_27, %c0_28], %69 {strides = array<i32>} : memref<8x8x128xbf16, #tpu.memory_space<vmem>>, vector<1x8x128xbf16>,
      %c1_i32 = arith.constant 1 : i32
      %c8_i32_29 = arith.constant 8 : i32
      %70 = arith.muli %c1_i32, %c8_i32_29 : i32
      %71 = tpu.assume_multiple %70, 8 : i32
      %72 = arith.index_cast %71 : i32 to index
      %c0_30 = arith.constant 0 : index
      %73 = vector.load %arg11[%72, %c0_30] : memref<64x512xf32, #tpu.memory_space<vmem>>, vector<8x512xf32>
      %74 = arith.truncf %61 : vector<8x128xf32> to vector<8x128xbf16>
      %cst_31 = arith.constant dense<0.000000e+00> : vector<8x512xf32>
      %75 = tpu.matmul %74, %20, %cst_31 {dimension_numbers = #tpu.dot_dimension_numbers<[1], [0], [0], [1], [0, 0, 1, 1], [], []>} : vector<8x128xbf16>, vector<128x512xbf16>, vector<8x512xf32> -> vector<8x512xf32>
      %76 = arith.addf %73, %75 : vector<8x512xf32>
      %77 = vector.extract_strided_slice %76 {offsets = [0, 0], sizes = [8, 128], strides = [1, 1]} : vector<8x512xf32> to vector<8x128xf32>
      %78 = arith.negf %77 : vector<8x128xf32>
      %79 = math.exp %78 : vector<8x128xf32>
      %cst_32 = arith.constant 1.000000e+00 : f32
      %80 = vector.broadcast %cst_32 : f32 to vector<8x128xf32>
      %81 = arith.addf %80, %79 : vector<8x128xf32>
      %82 = arith.divf %80, %81 : vector<8x128xf32>
      %83 = vector.extract_strided_slice %76 {offsets = [0, 128], sizes = [8, 128], strides = [1, 1]} : vector<8x512xf32> to vector<8x128xf32>
      %84 = arith.negf %83 : vector<8x128xf32>
      %85 = math.exp %84 : vector<8x128xf32>
      %cst_33 = arith.constant 1.000000e+00 : f32
      %86 = vector.broadcast %cst_33 : f32 to vector<8x128xf32>
      %87 = arith.addf %86, %85 : vector<8x128xf32>
      %88 = arith.divf %86, %87 : vector<8x128xf32>
      %89 = vector.extract_strided_slice %76 {offsets = [0, 256], sizes = [8, 128], strides = [1, 1]} : vector<8x512xf32> to vector<8x128xf32>
      %90 = math.tanh %89 : vector<8x128xf32>
      %91 = vector.extract_strided_slice %76 {offsets = [0, 384], sizes = [8, 128], strides = [1, 1]} : vector<8x512xf32> to vector<8x128xf32>
      %92 = arith.negf %91 : vector<8x128xf32>
      %93 = math.exp %92 : vector<8x128xf32>
      %cst_34 = arith.constant 1.000000e+00 : f32
      %94 = vector.broadcast %cst_34 : f32 to vector<8x128xf32>
      %95 = arith.addf %94, %93 : vector<8x128xf32>
      %96 = arith.divf %94, %95 : vector<8x128xf32>
      %97 = arith.mulf %88, %62 : vector<8x128xf32>
      %98 = arith.mulf %82, %90 : vector<8x128xf32>
      %99 = arith.addf %97, %98 : vector<8x128xf32>
      %100 = math.tanh %99 : vector<8x128xf32>
      %101 = arith.mulf %96, %100 : vector<8x128xf32>
      %102 = arith.addi %0, %c1_i32 : i32
      %103 = vector.broadcast %102 : i32 to vector<8x128xi32>
      %104 = arith.cmpi slt, %103, %23 : vector<8x128xi32>
      %105 = arith.select %104, %101, %61 : vector<8x128xi1>, vector<8x128xf32>
      %106 = arith.select %104, %99, %62 : vector<8x128xi1>, vector<8x128xf32>
      %cst_35 = arith.constant 0.000000e+00 : f32
      %107 = vector.broadcast %cst_35 : f32 to vector<8x128xf32>
      %108 = arith.select %104, %101, %107 : vector<8x128xi1>, vector<8x128xf32>
      %109 = arith.truncf %108 : vector<8x128xf32> to vector<8x128xbf16>
      %110 = arith.index_cast %c1_i32 : i32 to index
      %c0_36 = arith.constant 0 : index
      %c0_37 = arith.constant 0 : index
      %111 = vector.load %arg8[%110, %c0_36, %c0_37] : memref<8x8x128xbf16, #tpu.memory_space<vmem>>, vector<1x8x128xbf16>
      %112 = vector.shape_cast %111 : vector<1x8x128xbf16> to vector<8x128xbf16>
      %113 = vector.shape_cast %109 : vector<8x128xbf16> to vector<1x8x128xbf16>
      tpu.vector_store %arg8[%110, %c0_36, %c0_37], %113 {strides = array<i32>} : memref<8x8x128xbf16, #tpu.memory_space<vmem>>, vector<1x8x128xbf16>,
      %c2_i32 = arith.constant 2 : i32
      %c8_i32_38 = arith.constant 8 : i32
      %114 = arith.muli %c2_i32, %c8_i32_38 : i32
      %115 = tpu.assume_multiple %114, 8 : i32
      %116 = arith.index_cast %115 : i32 to index
      %c0_39 = arith.constant 0 : index
      %117 = vector.load %arg11[%116, %c0_39] : memref<64x512xf32, #tpu.memory_space<vmem>>, vector<8x512xf32>
      %118 = arith.truncf %105 : vector<8x128xf32> to vector<8x128xbf16>
      %cst_40 = arith.constant dense<0.000000e+00> : vector<8x512xf32>
      %119 = tpu.matmul %118, %20, %cst_40 {dimension_numbers = #tpu.dot_dimension_numbers<[1], [0], [0], [1], [0, 0, 1, 1], [], []>} : vector<8x128xbf16>, vector<128x512xbf16>, vector<8x512xf32> -> vector<8x512xf32>
      %120 = arith.addf %117, %119 : vector<8x512xf32>
      %121 = vector.extract_strided_slice %120 {offsets = [0, 0], sizes = [8, 128], strides = [1, 1]} : vector<8x512xf32> to vector<8x128xf32>
      %122 = arith.negf %121 : vector<8x128xf32>
      %123 = math.exp %122 : vector<8x128xf32>
      %cst_41 = arith.constant 1.000000e+00 : f32
      %124 = vector.broadcast %cst_41 : f32 to vector<8x128xf32>
      %125 = arith.addf %124, %123 : vector<8x128xf32>
      %126 = arith.divf %124, %125 : vector<8x128xf32>
      %127 = vector.extract_strided_slice %120 {offsets = [0, 128], sizes = [8, 128], strides = [1, 1]} : vector<8x512xf32> to vector<8x128xf32>
      %128 = arith.negf %127 : vector<8x128xf32>
      %129 = math.exp %128 : vector<8x128xf32>
      %cst_42 = arith.constant 1.000000e+00 : f32
      %130 = vector.broadcast %cst_42 : f32 to vector<8x128xf32>
      %131 = arith.addf %130, %129 : vector<8x128xf32>
      %132 = arith.divf %130, %131 : vector<8x128xf32>
      %133 = vector.extract_strided_slice %120 {offsets = [0, 256], sizes = [8, 128], strides = [1, 1]} : vector<8x512xf32> to vector<8x128xf32>
      %134 = math.tanh %133 : vector<8x128xf32>
      %135 = vector.extract_strided_slice %120 {offsets = [0, 384], sizes = [8, 128], strides = [1, 1]} : vector<8x512xf32> to vector<8x128xf32>
      %136 = arith.negf %135 : vector<8x128xf32>
      %137 = math.exp %136 : vector<8x128xf32>
      %cst_43 = arith.constant 1.000000e+00 : f32
      %138 = vector.broadcast %cst_43 : f32 to vector<8x128xf32>
      %139 = arith.addf %138, %137 : vector<8x128xf32>
      %140 = arith.divf %138, %139 : vector<8x128xf32>
      %141 = arith.mulf %132, %106 : vector<8x128xf32>
      %142 = arith.mulf %126, %134 : vector<8x128xf32>
      %143 = arith.addf %141, %142 : vector<8x128xf32>
      %144 = math.tanh %143 : vector<8x128xf32>
      %145 = arith.mulf %140, %144 : vector<8x128xf32>
      %146 = arith.addi %0, %c2_i32 : i32
      %147 = vector.broadcast %146 : i32 to vector<8x128xi32>
      %148 = arith.cmpi slt, %147, %23 : vector<8x128xi32>
      %149 = arith.select %148, %145, %105 : vector<8x128xi1>, vector<8x128xf32>
      %150 = arith.select %148, %143, %106 : vector<8x128xi1>, vector<8x128xf32>
      %cst_44 = arith.constant 0.000000e+00 : f32
      %151 = vector.broadcast %cst_44 : f32 to vector<8x128xf32>
      %152 = arith.select %148, %145, %151 : vector<8x128xi1>, vector<8x128xf32>
      %153 = arith.truncf %152 : vector<8x128xf32> to vector<8x128xbf16>
      %154 = arith.index_cast %c2_i32 : i32 to index
      %c0_45 = arith.constant 0 : index
      %c0_46 = arith.constant 0 : index
      %155 = vector.load %arg8[%154, %c0_45, %c0_46] : memref<8x8x128xbf16, #tpu.memory_space<vmem>>, vector<1x8x128xbf16>
      %156 = vector.shape_cast %155 : vector<1x8x128xbf16> to vector<8x128xbf16>
      %157 = vector.shape_cast %153 : vector<8x128xbf16> to vector<1x8x128xbf16>
      tpu.vector_store %arg8[%154, %c0_45, %c0_46], %157 {strides = array<i32>} : memref<8x8x128xbf16, #tpu.memory_space<vmem>>, vector<1x8x128xbf16>,
      %c3_i32 = arith.constant 3 : i32
      %c8_i32_47 = arith.constant 8 : i32
      %158 = arith.muli %c3_i32, %c8_i32_47 : i32
      %159 = tpu.assume_multiple %158, 8 : i32
      %160 = arith.index_cast %159 : i32 to index
      %c0_48 = arith.constant 0 : index
      %161 = vector.load %arg11[%160, %c0_48] : memref<64x512xf32, #tpu.memory_space<vmem>>, vector<8x512xf32>
      %162 = arith.truncf %149 : vector<8x128xf32> to vector<8x128xbf16>
      %cst_49 = arith.constant dense<0.000000e+00> : vector<8x512xf32>
      %163 = tpu.matmul %162, %20, %cst_49 {dimension_numbers = #tpu.dot_dimension_numbers<[1], [0], [0], [1], [0, 0, 1, 1], [], []>} : vector<8x128xbf16>, vector<128x512xbf16>, vector<8x512xf32> -> vector<8x512xf32>
      %164 = arith.addf %161, %163 : vector<8x512xf32>
      %165 = vector.extract_strided_slice %164 {offsets = [0, 0], sizes = [8, 128], strides = [1, 1]} : vector<8x512xf32> to vector<8x128xf32>
      %166 = arith.negf %165 : vector<8x128xf32>
      %167 = math.exp %166 : vector<8x128xf32>
      %cst_50 = arith.constant 1.000000e+00 : f32
      %168 = vector.broadcast %cst_50 : f32 to vector<8x128xf32>
      %169 = arith.addf %168, %167 : vector<8x128xf32>
      %170 = arith.divf %168, %169 : vector<8x128xf32>
      %171 = vector.extract_strided_slice %164 {offsets = [0, 128], sizes = [8, 128], strides = [1, 1]} : vector<8x512xf32> to vector<8x128xf32>
      %172 = arith.negf %171 : vector<8x128xf32>
      %173 = math.exp %172 : vector<8x128xf32>
      %cst_51 = arith.constant 1.000000e+00 : f32
      %174 = vector.broadcast %cst_51 : f32 to vector<8x128xf32>
      %175 = arith.addf %174, %173 : vector<8x128xf32>
      %176 = arith.divf %174, %175 : vector<8x128xf32>
      %177 = vector.extract_strided_slice %164 {offsets = [0, 256], sizes = [8, 128], strides = [1, 1]} : vector<8x512xf32> to vector<8x128xf32>
      %178 = math.tanh %177 : vector<8x128xf32>
      %179 = vector.extract_strided_slice %164 {offsets = [0, 384], sizes = [8, 128], strides = [1, 1]} : vector<8x512xf32> to vector<8x128xf32>
      %180 = arith.negf %179 : vector<8x128xf32>
      %181 = math.exp %180 : vector<8x128xf32>
      %cst_52 = arith.constant 1.000000e+00 : f32
      %182 = vector.broadcast %cst_52 : f32 to vector<8x128xf32>
      %183 = arith.addf %182, %181 : vector<8x128xf32>
      %184 = arith.divf %182, %183 : vector<8x128xf32>
      %185 = arith.mulf %176, %150 : vector<8x128xf32>
      %186 = arith.mulf %170, %178 : vector<8x128xf32>
      %187 = arith.addf %185, %186 : vector<8x128xf32>
      %188 = math.tanh %187 : vector<8x128xf32>
      %189 = arith.mulf %184, %188 : vector<8x128xf32>
      %190 = arith.addi %0, %c3_i32 : i32
      %191 = vector.broadcast %190 : i32 to vector<8x128xi32>
      %192 = arith.cmpi slt, %191, %23 : vector<8x128xi32>
      %193 = arith.select %192, %189, %149 : vector<8x128xi1>, vector<8x128xf32>
      %194 = arith.select %192, %187, %150 : vector<8x128xi1>, vector<8x128xf32>
      %cst_53 = arith.constant 0.000000e+00 : f32
      %195 = vector.broadcast %cst_53 : f32 to vector<8x128xf32>
      %196 = arith.select %192, %189, %195 : vector<8x128xi1>, vector<8x128xf32>
      %197 = arith.truncf %196 : vector<8x128xf32> to vector<8x128xbf16>
      %198 = arith.index_cast %c3_i32 : i32 to index
      %c0_54 = arith.constant 0 : index
      %c0_55 = arith.constant 0 : index
      %199 = vector.load %arg8[%198, %c0_54, %c0_55] : memref<8x8x128xbf16, #tpu.memory_space<vmem>>, vector<1x8x128xbf16>
      %200 = vector.shape_cast %199 : vector<1x8x128xbf16> to vector<8x128xbf16>
      %201 = vector.shape_cast %197 : vector<8x128xbf16> to vector<1x8x128xbf16>
      tpu.vector_store %arg8[%198, %c0_54, %c0_55], %201 {strides = array<i32>} : memref<8x8x128xbf16, #tpu.memory_space<vmem>>, vector<1x8x128xbf16>,
      %c4_i32 = arith.constant 4 : i32
      %c8_i32_56 = arith.constant 8 : i32
      %202 = arith.muli %c4_i32, %c8_i32_56 : i32
      %203 = tpu.assume_multiple %202, 8 : i32
      %204 = arith.index_cast %203 : i32 to index
      %c0_57 = arith.constant 0 : index
      %205 = vector.load %arg11[%204, %c0_57] : memref<64x512xf32, #tpu.memory_space<vmem>>, vector<8x512xf32>
      %206 = arith.truncf %193 : vector<8x128xf32> to vector<8x128xbf16>
      %cst_58 = arith.constant dense<0.000000e+00> : vector<8x512xf32>
      %207 = tpu.matmul %206, %20, %cst_58 {dimension_numbers = #tpu.dot_dimension_numbers<[1], [0], [0], [1], [0, 0, 1, 1], [], []>} : vector<8x128xbf16>, vector<128x512xbf16>, vector<8x512xf32> -> vector<8x512xf32>
      %208 = arith.addf %205, %207 : vector<8x512xf32>
      %209 = vector.extract_strided_slice %208 {offsets = [0, 0], sizes = [8, 128], strides = [1, 1]} : vector<8x512xf32> to vector<8x128xf32>
      %210 = arith.negf %209 : vector<8x128xf32>
      %211 = math.exp %210 : vector<8x128xf32>
      %cst_59 = arith.constant 1.000000e+00 : f32
      %212 = vector.broadcast %cst_59 : f32 to vector<8x128xf32>
      %213 = arith.addf %212, %211 : vector<8x128xf32>
      %214 = arith.divf %212, %213 : vector<8x128xf32>
      %215 = vector.extract_strided_slice %208 {offsets = [0, 128], sizes = [8, 128], strides = [1, 1]} : vector<8x512xf32> to vector<8x128xf32>
      %216 = arith.negf %215 : vector<8x128xf32>
      %217 = math.exp %216 : vector<8x128xf32>
      %cst_60 = arith.constant 1.000000e+00 : f32
      %218 = vector.broadcast %cst_60 : f32 to vector<8x128xf32>
      %219 = arith.addf %218, %217 : vector<8x128xf32>
      %220 = arith.divf %218, %219 : vector<8x128xf32>
      %221 = vector.extract_strided_slice %208 {offsets = [0, 256], sizes = [8, 128], strides = [1, 1]} : vector<8x512xf32> to vector<8x128xf32>
      %222 = math.tanh %221 : vector<8x128xf32>
      %223 = vector.extract_strided_slice %208 {offsets = [0, 384], sizes = [8, 128], strides = [1, 1]} : vector<8x512xf32> to vector<8x128xf32>
      %224 = arith.negf %223 : vector<8x128xf32>
      %225 = math.exp %224 : vector<8x128xf32>
      %cst_61 = arith.constant 1.000000e+00 : f32
      %226 = vector.broadcast %cst_61 : f32 to vector<8x128xf32>
      %227 = arith.addf %226, %225 : vector<8x128xf32>
      %228 = arith.divf %226, %227 : vector<8x128xf32>
      %229 = arith.mulf %220, %194 : vector<8x128xf32>
      %230 = arith.mulf %214, %222 : vector<8x128xf32>
      %231 = arith.addf %229, %230 : vector<8x128xf32>
      %232 = math.tanh %231 : vector<8x128xf32>
      %233 = arith.mulf %228, %232 : vector<8x128xf32>
      %234 = arith.addi %0, %c4_i32 : i32
      %235 = vector.broadcast %234 : i32 to vector<8x128xi32>
      %236 = arith.cmpi slt, %235, %23 : vector<8x128xi32>
      %237 = arith.select %236, %233, %193 : vector<8x128xi1>, vector<8x128xf32>
      %238 = arith.select %236, %231, %194 : vector<8x128xi1>, vector<8x128xf32>
      %cst_62 = arith.constant 0.000000e+00 : f32
      %239 = vector.broadcast %cst_62 : f32 to vector<8x128xf32>
      %240 = arith.select %236, %233, %239 : vector<8x128xi1>, vector<8x128xf32>
      %241 = arith.truncf %240 : vector<8x128xf32> to vector<8x128xbf16>
      %242 = arith.index_cast %c4_i32 : i32 to index
      %c0_63 = arith.constant 0 : index
      %c0_64 = arith.constant 0 : index
      %243 = vector.load %arg8[%242, %c0_63, %c0_64] : memref<8x8x128xbf16, #tpu.memory_space<vmem>>, vector<1x8x128xbf16>
      %244 = vector.shape_cast %243 : vector<1x8x128xbf16> to vector<8x128xbf16>
      %245 = vector.shape_cast %241 : vector<8x128xbf16> to vector<1x8x128xbf16>
      tpu.vector_store %arg8[%242, %c0_63, %c0_64], %245 {strides = array<i32>} : memref<8x8x128xbf16, #tpu.memory_space<vmem>>, vector<1x8x128xbf16>,
      %c5_i32 = arith.constant 5 : i32
      %c8_i32_65 = arith.constant 8 : i32
      %246 = arith.muli %c5_i32, %c8_i32_65 : i32
      %247 = tpu.assume_multiple %246, 8 : i32
      %248 = arith.index_cast %247 : i32 to index
      %c0_66 = arith.constant 0 : index
      %249 = vector.load %arg11[%248, %c0_66] : memref<64x512xf32, #tpu.memory_space<vmem>>, vector<8x512xf32>
      %250 = arith.truncf %237 : vector<8x128xf32> to vector<8x128xbf16>
      %cst_67 = arith.constant dense<0.000000e+00> : vector<8x512xf32>
      %251 = tpu.matmul %250, %20, %cst_67 {dimension_numbers = #tpu.dot_dimension_numbers<[1], [0], [0], [1], [0, 0, 1, 1], [], []>} : vector<8x128xbf16>, vector<128x512xbf16>, vector<8x512xf32> -> vector<8x512xf32>
      %252 = arith.addf %249, %251 : vector<8x512xf32>
      %253 = vector.extract_strided_slice %252 {offsets = [0, 0], sizes = [8, 128], strides = [1, 1]} : vector<8x512xf32> to vector<8x128xf32>
      %254 = arith.negf %253 : vector<8x128xf32>
      %255 = math.exp %254 : vector<8x128xf32>
      %cst_68 = arith.constant 1.000000e+00 : f32
      %256 = vector.broadcast %cst_68 : f32 to vector<8x128xf32>
      %257 = arith.addf %256, %255 : vector<8x128xf32>
      %258 = arith.divf %256, %257 : vector<8x128xf32>
      %259 = vector.extract_strided_slice %252 {offsets = [0, 128], sizes = [8, 128], strides = [1, 1]} : vector<8x512xf32> to vector<8x128xf32>
      %260 = arith.negf %259 : vector<8x128xf32>
      %261 = math.exp %260 : vector<8x128xf32>
      %cst_69 = arith.constant 1.000000e+00 : f32
      %262 = vector.broadcast %cst_69 : f32 to vector<8x128xf32>
      %263 = arith.addf %262, %261 : vector<8x128xf32>
      %264 = arith.divf %262, %263 : vector<8x128xf32>
      %265 = vector.extract_strided_slice %252 {offsets = [0, 256], sizes = [8, 128], strides = [1, 1]} : vector<8x512xf32> to vector<8x128xf32>
      %266 = math.tanh %265 : vector<8x128xf32>
      %267 = vector.extract_strided_slice %252 {offsets = [0, 384], sizes = [8, 128], strides = [1, 1]} : vector<8x512xf32> to vector<8x128xf32>
      %268 = arith.negf %267 : vector<8x128xf32>
      %269 = math.exp %268 : vector<8x128xf32>
      %cst_70 = arith.constant 1.000000e+00 : f32
      %270 = vector.broadcast %cst_70 : f32 to vector<8x128xf32>
      %271 = arith.addf %270, %269 : vector<8x128xf32>
      %272 = arith.divf %270, %271 : vector<8x128xf32>
      %273 = arith.mulf %264, %238 : vector<8x128xf32>
      %274 = arith.mulf %258, %266 : vector<8x128xf32>
      %275 = arith.addf %273, %274 : vector<8x128xf32>
      %276 = math.tanh %275 : vector<8x128xf32>
      %277 = arith.mulf %272, %276 : vector<8x128xf32>
      %278 = arith.addi %0, %c5_i32 : i32
      %279 = vector.broadcast %278 : i32 to vector<8x128xi32>
      %280 = arith.cmpi slt, %279, %23 : vector<8x128xi32>
      %281 = arith.select %280, %277, %237 : vector<8x128xi1>, vector<8x128xf32>
      %282 = arith.select %280, %275, %238 : vector<8x128xi1>, vector<8x128xf32>
      %cst_71 = arith.constant 0.000000e+00 : f32
      %283 = vector.broadcast %cst_71 : f32 to vector<8x128xf32>
      %284 = arith.select %280, %277, %283 : vector<8x128xi1>, vector<8x128xf32>
      %285 = arith.truncf %284 : vector<8x128xf32> to vector<8x128xbf16>
      %286 = arith.index_cast %c5_i32 : i32 to index
      %c0_72 = arith.constant 0 : index
      %c0_73 = arith.constant 0 : index
      %287 = vector.load %arg8[%286, %c0_72, %c0_73] : memref<8x8x128xbf16, #tpu.memory_space<vmem>>, vector<1x8x128xbf16>
      %288 = vector.shape_cast %287 : vector<1x8x128xbf16> to vector<8x128xbf16>
      %289 = vector.shape_cast %285 : vector<8x128xbf16> to vector<1x8x128xbf16>
      tpu.vector_store %arg8[%286, %c0_72, %c0_73], %289 {strides = array<i32>} : memref<8x8x128xbf16, #tpu.memory_space<vmem>>, vector<1x8x128xbf16>,
      %c6_i32 = arith.constant 6 : i32
      %c8_i32_74 = arith.constant 8 : i32
      %290 = arith.muli %c6_i32, %c8_i32_74 : i32
      %291 = tpu.assume_multiple %290, 8 : i32
      %292 = arith.index_cast %291 : i32 to index
      %c0_75 = arith.constant 0 : index
      %293 = vector.load %arg11[%292, %c0_75] : memref<64x512xf32, #tpu.memory_space<vmem>>, vector<8x512xf32>
      %294 = arith.truncf %281 : vector<8x128xf32> to vector<8x128xbf16>
      %cst_76 = arith.constant dense<0.000000e+00> : vector<8x512xf32>
      %295 = tpu.matmul %294, %20, %cst_76 {dimension_numbers = #tpu.dot_dimension_numbers<[1], [0], [0], [1], [0, 0, 1, 1], [], []>} : vector<8x128xbf16>, vector<128x512xbf16>, vector<8x512xf32> -> vector<8x512xf32>
      %296 = arith.addf %293, %295 : vector<8x512xf32>
      %297 = vector.extract_strided_slice %296 {offsets = [0, 0], sizes = [8, 128], strides = [1, 1]} : vector<8x512xf32> to vector<8x128xf32>
      %298 = arith.negf %297 : vector<8x128xf32>
      %299 = math.exp %298 : vector<8x128xf32>
      %cst_77 = arith.constant 1.000000e+00 : f32
      %300 = vector.broadcast %cst_77 : f32 to vector<8x128xf32>
      %301 = arith.addf %300, %299 : vector<8x128xf32>
      %302 = arith.divf %300, %301 : vector<8x128xf32>
      %303 = vector.extract_strided_slice %296 {offsets = [0, 128], sizes = [8, 128], strides = [1, 1]} : vector<8x512xf32> to vector<8x128xf32>
      %304 = arith.negf %303 : vector<8x128xf32>
      %305 = math.exp %304 : vector<8x128xf32>
      %cst_78 = arith.constant 1.000000e+00 : f32
      %306 = vector.broadcast %cst_78 : f32 to vector<8x128xf32>
      %307 = arith.addf %306, %305 : vector<8x128xf32>
      %308 = arith.divf %306, %307 : vector<8x128xf32>
      %309 = vector.extract_strided_slice %296 {offsets = [0, 256], sizes = [8, 128], strides = [1, 1]} : vector<8x512xf32> to vector<8x128xf32>
      %310 = math.tanh %309 : vector<8x128xf32>
      %311 = vector.extract_strided_slice %296 {offsets = [0, 384], sizes = [8, 128], strides = [1, 1]} : vector<8x512xf32> to vector<8x128xf32>
      %312 = arith.negf %311 : vector<8x128xf32>
      %313 = math.exp %312 : vector<8x128xf32>
      %cst_79 = arith.constant 1.000000e+00 : f32
      %314 = vector.broadcast %cst_79 : f32 to vector<8x128xf32>
      %315 = arith.addf %314, %313 : vector<8x128xf32>
      %316 = arith.divf %314, %315 : vector<8x128xf32>
      %317 = arith.mulf %308, %282 : vector<8x128xf32>
      %318 = arith.mulf %302, %310 : vector<8x128xf32>
      %319 = arith.addf %317, %318 : vector<8x128xf32>
      %320 = math.tanh %319 : vector<8x128xf32>
      %321 = arith.mulf %316, %320 : vector<8x128xf32>
      %322 = arith.addi %0, %c6_i32 : i32
      %323 = vector.broadcast %322 : i32 to vector<8x128xi32>
      %324 = arith.cmpi slt, %323, %23 : vector<8x128xi32>
      %325 = arith.select %324, %321, %281 : vector<8x128xi1>, vector<8x128xf32>
      %326 = arith.select %324, %319, %282 : vector<8x128xi1>, vector<8x128xf32>
      %cst_80 = arith.constant 0.000000e+00 : f32
      %327 = vector.broadcast %cst_80 : f32 to vector<8x128xf32>
      %328 = arith.select %324, %321, %327 : vector<8x128xi1>, vector<8x128xf32>
      %329 = arith.truncf %328 : vector<8x128xf32> to vector<8x128xbf16>
      %330 = arith.index_cast %c6_i32 : i32 to index
      %c0_81 = arith.constant 0 : index
      %c0_82 = arith.constant 0 : index
      %331 = vector.load %arg8[%330, %c0_81, %c0_82] : memref<8x8x128xbf16, #tpu.memory_space<vmem>>, vector<1x8x128xbf16>
      %332 = vector.shape_cast %331 : vector<1x8x128xbf16> to vector<8x128xbf16>
      %333 = vector.shape_cast %329 : vector<8x128xbf16> to vector<1x8x128xbf16>
      tpu.vector_store %arg8[%330, %c0_81, %c0_82], %333 {strides = array<i32>} : memref<8x8x128xbf16, #tpu.memory_space<vmem>>, vector<1x8x128xbf16>,
      %c7_i32 = arith.constant 7 : i32
      %c8_i32_83 = arith.constant 8 : i32
      %334 = arith.muli %c7_i32, %c8_i32_83 : i32
      %335 = tpu.assume_multiple %334, 8 : i32
      %336 = arith.index_cast %335 : i32 to index
      %c0_84 = arith.constant 0 : index
      %337 = vector.load %arg11[%336, %c0_84] : memref<64x512xf32, #tpu.memory_space<vmem>>, vector<8x512xf32>
      %338 = arith.truncf %325 : vector<8x128xf32> to vector<8x128xbf16>
      %cst_85 = arith.constant dense<0.000000e+00> : vector<8x512xf32>
      %339 = tpu.matmul %338, %20, %cst_85 {dimension_numbers = #tpu.dot_dimension_numbers<[1], [0], [0], [1], [0, 0, 1, 1], [], []>} : vector<8x128xbf16>, vector<128x512xbf16>, vector<8x512xf32> -> vector<8x512xf32>
      %340 = arith.addf %337, %339 : vector<8x512xf32>
      %341 = vector.extract_strided_slice %340 {offsets = [0, 0], sizes = [8, 128], strides = [1, 1]} : vector<8x512xf32> to vector<8x128xf32>
      %342 = arith.negf %341 : vector<8x128xf32>
      %343 = math.exp %342 : vector<8x128xf32>
      %cst_86 = arith.constant 1.000000e+00 : f32
      %344 = vector.broadcast %cst_86 : f32 to vector<8x128xf32>
      %345 = arith.addf %344, %343 : vector<8x128xf32>
      %346 = arith.divf %344, %345 : vector<8x128xf32>
      %347 = vector.extract_strided_slice %340 {offsets = [0, 128], sizes = [8, 128], strides = [1, 1]} : vector<8x512xf32> to vector<8x128xf32>
      %348 = arith.negf %347 : vector<8x128xf32>
      %349 = math.exp %348 : vector<8x128xf32>
      %cst_87 = arith.constant 1.000000e+00 : f32
      %350 = vector.broadcast %cst_87 : f32 to vector<8x128xf32>
      %351 = arith.addf %350, %349 : vector<8x128xf32>
      %352 = arith.divf %350, %351 : vector<8x128xf32>
      %353 = vector.extract_strided_slice %340 {offsets = [0, 256], sizes = [8, 128], strides = [1, 1]} : vector<8x512xf32> to vector<8x128xf32>
      %354 = math.tanh %353 : vector<8x128xf32>
      %355 = vector.extract_strided_slice %340 {offsets = [0, 384], sizes = [8, 128], strides = [1, 1]} : vector<8x512xf32> to vector<8x128xf32>
      %356 = arith.negf %355 : vector<8x128xf32>
      %357 = math.exp %356 : vector<8x128xf32>
      %cst_88 = arith.constant 1.000000e+00 : f32
      %358 = vector.broadcast %cst_88 : f32 to vector<8x128xf32>
      %359 = arith.addf %358, %357 : vector<8x128xf32>
      %360 = arith.divf %358, %359 : vector<8x128xf32>
      %361 = arith.mulf %352, %326 : vector<8x128xf32>
      %362 = arith.mulf %346, %354 : vector<8x128xf32>
      %363 = arith.addf %361, %362 : vector<8x128xf32>
      %364 = math.tanh %363 : vector<8x128xf32>
      %365 = arith.mulf %360, %364 : vector<8x128xf32>
      %366 = arith.addi %0, %c7_i32 : i32
      %367 = vector.broadcast %366 : i32 to vector<8x128xi32>
      %368 = arith.cmpi slt, %367, %23 : vector<8x128xi32>
      %369 = arith.select %368, %365, %325 : vector<8x128xi1>, vector<8x128xf32>
      %370 = arith.select %368, %363, %326 : vector<8x128xi1>, vector<8x128xf32>
      %cst_89 = arith.constant 0.000000e+00 : f32
      %371 = vector.broadcast %cst_89 : f32 to vector<8x128xf32>
      %372 = arith.select %368, %365, %371 : vector<8x128xi1>, vector<8x128xf32>
      %373 = arith.truncf %372 : vector<8x128xf32> to vector<8x128xbf16>
      %374 = arith.index_cast %c7_i32 : i32 to index
      %c0_90 = arith.constant 0 : index
      %c0_91 = arith.constant 0 : index
      %375 = vector.load %arg8[%374, %c0_90, %c0_91] : memref<8x8x128xbf16, #tpu.memory_space<vmem>>, vector<1x8x128xbf16>
      %376 = vector.shape_cast %375 : vector<1x8x128xbf16> to vector<8x128xbf16>
      %377 = vector.shape_cast %373 : vector<8x128xbf16> to vector<1x8x128xbf16>
      tpu.vector_store %arg8[%374, %c0_90, %c0_91], %377 {strides = array<i32>} : memref<8x8x128xbf16, #tpu.memory_space<vmem>>, vector<1x8x128xbf16>,
      %c8_i32_92 = arith.constant 8 : i32
      %c0_93 = arith.constant 0 : index
      %c0_94 = arith.constant 0 : index
      %378 = vector.load %arg9[%c0_93, %c0_94] : memref<8x128xf32, #tpu.memory_space<vmem>>, vector<8x128xf32>
      tpu.vector_store %arg9[%c0_93, %c0_94], %369 {strides = array<i32>} : memref<8x128xf32, #tpu.memory_space<vmem>>, vector<8x128xf32>,
      %c0_95 = arith.constant 0 : index
      %c0_96 = arith.constant 0 : index
      %379 = vector.load %arg10[%c0_95, %c0_96] : memref<8x128xf32, #tpu.memory_space<vmem>>, vector<8x128xf32>
      tpu.vector_store %arg10[%c0_95, %c0_96], %370 {strides = array<i32>} : memref<8x128xf32, #tpu.memory_space<vmem>>, vector<8x128xf32>,
    } else {
    }
    %9 = arith.cmpi sge, %0, %5 : i32
    %10 = arith.extui %9 : i1 to i32
    %c0_i32_2 = arith.constant 0 : i32
    %11 = arith.cmpi ne, %10, %c0_i32_2 : i32
    scf.if %11 {
      %cst = arith.constant 0.000000e+00 : bf16
      %12 = vector.broadcast %cst : bf16 to vector<8x8x128xbf16>
      %c0 = arith.constant 0 : index
      %c0_3 = arith.constant 0 : index
      %c0_4 = arith.constant 0 : index
      %13 = vector.load %arg8[%c0, %c0_3, %c0_4] : memref<8x8x128xbf16, #tpu.memory_space<vmem>>, vector<8x8x128xbf16>
      tpu.vector_store %arg8[%c0, %c0_3, %c0_4], %12 {strides = array<i32>} : memref<8x8x128xbf16, #tpu.memory_space<vmem>>, vector<8x8x128xbf16>,
    } else {
    }
    return
  }
  func.func @transform_0(%arg0: i32, %arg1: i32, %arg2: memref<1xi32, #tpu.memory_space<smem>>) -> (i32, i32) {
    %c0_i32 = arith.constant 0 : i32
    %c0_i32_0 = arith.constant 0 : i32
    return %arg0, %c0_i32 : i32, i32
  }
  func.func @transform_1(%arg0: i32, %arg1: i32, %arg2: memref<1xi32, #tpu.memory_space<smem>>) -> (i32, i32, i32) {
    %c0_i32 = arith.constant 0 : i32
    %c0_i32_0 = arith.constant 0 : i32
    return %arg1, %arg0, %c0_i32 : i32, i32, i32
  }
  func.func @transform_2(%arg0: i32, %arg1: i32, %arg2: memref<1xi32, #tpu.memory_space<smem>>) -> (i32, i32) {
    %c0_i32 = arith.constant 0 : i32
    %c0_i32_0 = arith.constant 0 : i32
    %c0_i32_1 = arith.constant 0 : i32
    return %c0_i32, %c0_i32_0 : i32, i32
  }
  func.func @transform_3(%arg0: i32, %arg1: i32, %arg2: memref<1xi32, #tpu.memory_space<smem>>) -> (i32, i32) {
    %c0_i32 = arith.constant 0 : i32
    %c0_i32_0 = arith.constant 0 : i32
    %c0_i32_1 = arith.constant 0 : i32
    return %c0_i32, %c0_i32_0 : i32, i32
  }
  func.func @transform_4(%arg0: i32, %arg1: i32, %arg2: memref<1xi32, #tpu.memory_space<smem>>) -> (i32, i32) {
    %c0_i32 = arith.constant 0 : i32
    %c0_i32_0 = arith.constant 0 : i32
    %c0_i32_1 = arith.constant 0 : i32
    return %c0_i32, %c0_i32_0 : i32, i32
  }
  func.func @transform_5(%arg0: i32, %arg1: i32, %arg2: memref<1xi32, #tpu.memory_space<smem>>) -> (i32, i32, i32) {
    %c0_i32 = arith.constant 0 : i32
    %c0_i32_0 = arith.constant 0 : i32
    return %arg1, %arg0, %c0_i32 : i32, i32, i32
  }
}

</mosaic_0001>

<bundles_post_ra>
// kernel: tpu_custom_call.1
= control target key start
LH: loop header
LB: loop body
LE: loop exit
PB: predicated region body
PF: predicated region fallthrough
CT: control target
= control target key end

     0   :  { %12 = vsyncpa [#allocation8], 0  ;;  %s2884_s0 = inlined_call_operand.<no memory space> [shape: s32[1], index: 0, kind: input, shape index: {}]   ;;  %s2885_s1 = inlined_call_operand.vmem [shape: s32[8,1], index: 1, kind: input, shape index: {}]   ;;  %s2886_s2 = inlined_call_operand.hbm [shape: bf16[8,8,128], index: 2, kind: input, shape index: {}]   ;;  %s2887_s3 = inlined_call_operand.hbm [shape: bf16[128,512], index: 3, kind: input, shape index: {}]   ;;  %s2888_s4 = inlined_call_operand.hbm [shape: bf16[128,512], index: 4, kind: input, shape index: {}]   ;;  %s2889_s5 = inlined_call_operand.vmem [shape: f32[1,512], index: 5, kind: input, shape index: {}]   ;;  %s2890_s6 = inlined_call_operand.hbm [shape: bf16[8,8,128], index: 6, kind: output, shape index: {}]  }
   0x1   :  { %13 = vsyncpa [#allocation11], 0 }
   0x2   :  { %14 = vsyncpa [#allocation9], 0  ;;  %s2214_s21 = smov [#allocation10]  }
   0x3   :  { %s34_s22 = sshll.u32 %s2214_s21, 4  ;;  %s35_s22 = int_to_ptr.vmem [resolvable:$true] %s34_s22 }
   0x4   :  { %s2136_s23 = scalar_lea.vmem %s35_s22, 4096  ;;  %p2141_p1 = scmp.lt.s32.totalorder %s35_s22, %s35_s22 }
   0x5   :  { %p2137_p0 = scmp.ne.s32.totalorder %s35_s22, %s2136_s23  ;;  %p2142_p2 = scmp.lt.s32.totalorder %s2136_s23, %s2136_s23 }
   0x7   :  { %p2143_p3 = por %p2142_p2, %p2141_p1 }
   0x9   :  { %p2144_p4 = pnand %p2143_p3, %p2137_p0 }
   0xb   :  { %2147 = shalt.err (!%p2144_p4)
}
   0xc   :  { %s2215_s24 = smov 256   ;;  %s2216_s25 = smov 16  }
   0xd   :  { %40 = dma.hbm_to_vmem [thread:$0]  %s2887_s3, 4096, %s35_s22, [#allocation11], %s2215_s24, %s2215_s24, %s2216_s25  }
   0xe   :  { %s2217_s28 = smov [#allocation7]  }
   0xf   :  { %s22_s29 = sshll.u32 %s2217_s28, 4  ;;  %s23_s29 = int_to_ptr.vmem [resolvable:$true] %s22_s29 }
  0x10   :  { %s2156_s30 = scalar_lea.vmem %s23_s29, 512  ;;  %p2161_p6 = scmp.lt.s32.totalorder %s23_s29, %s23_s29 }
  0x11   :  { %p2157_p5 = scmp.ne.s32.totalorder %s23_s29, %s2156_s30  ;;  %p2162_p7 = scmp.lt.s32.totalorder %s2156_s30, %s2156_s30 }
  0x13   :  { %p2163_p8 = por %p2162_p7, %p2161_p6 }
  0x15   :  { %p2164_p9 = pnand %p2163_p8, %p2157_p5 }
  0x17   :  { %2167 = shalt.err (!%p2164_p9)
}
  0x18   :  { %s2218_s7 = smov 64   ;;  %s2219_s8 = smov 4  }
  0x19   :  { %28 = dma.hbm_to_vmem [thread:$0]  %s2886_s2, 512, %s23_s29, [#allocation8], %s2218_s7, %s2218_s7, %s2219_s8  }
  0x1a   :  { %s2220_s3 = smov [#allocation12]  }
  0x1b   :  { %s46_s11 = sshll.u32 %s2220_s3, 4  ;;  %s47_s11 = int_to_ptr.vmem [resolvable:$true] %s46_s11 }
  0x1c   :  { %s2176_s12 = scalar_lea.vmem %s47_s11, 4096  ;;  %p2181_p11 = scmp.lt.s32.totalorder %s47_s11, %s47_s11 }
  0x1d   :  { %p2177_p10 = scmp.ne.s32.totalorder %s47_s11, %s2176_s12  ;;  %p2182_p12 = scmp.lt.s32.totalorder %s2176_s12, %s2176_s12 }
  0x1f   :  { %p2183_p13 = por %p2182_p12, %p2181_p11 }
  0x21   :  { %p2184_p0 = pnand %p2183_p13, %p2177_p10 }
  0x23   :  { %2187 = shalt.err (!%p2184_p0)
}
  0x24   :  { %52 = dma.hbm_to_vmem [thread:$0]  %s2888_s4, 4096, %s47_s11, [#allocation11], %s2215_s24, %s2215_s24, %s2216_s25  }
  0x25   :  { %2208 = dma.done.wait [#allocation8], 512  }
  0x26   :  { %2209 = vsyncadd [#allocation8], 4294966784 }
  0x27   :  { %2210 = dma.done.wait [#allocation11], 8192  }
  0x28   :  { %2211 = vsyncadd [#allocation11], 4294959104  ;;  %v2221_v0 = vmov 0.0   ;;  %p1753_p1 = scmp.le.s32.totalorder %s2884_s0, 0 }
  0x29   :  { %70 = vst [vmem:[#allocation2] sm:$0xff] %v2221_v0  ;;  %71 = vst [vmem:[#allocation3] sm:$0xff] %v2221_v0 }
  0x2a   :  { %76 = sbr.rel (%p1753_p1) target bundleno = 2130 (0x852), region = 41 }
  0x2f   :  { %v1868_v1 = vld [vmem:[#allocation10 + $0xe4] ss:$16 sps:$4 sm:$0xff]   ;;  %v1870_v2 = vld [vmem:[#allocation10 + $0xec] ss:$16 sps:$4 sm:$0xff]   ;;  %v2891_v3 = vmov 0  }
  0x30   :  { %355 = vmatprep.mubr.bf16.mxu0 %v2891_v3  ;;  %428 = vmatprep.mubr.bf16.mxu1 %v2891_v3  ;;  %v1872_v4 = vld [vmem:[#allocation10 + $0xe0] ss:$16 sps:$4 sm:$0xff]   ;;  %v1873_v5 = vld [vmem:[#allocation10 + $0xe8] ss:$16 sps:$4 sm:$0xff]   ;;  %v1874_v6 = vld [vmem:[#allocation10 + $0xc4] ss:$16 sps:$4 sm:$0xff]  }
  0x31   :  { %323 = vmatprep.subr.bf16.mxu0 %v1868_v1  ;;  %1867 = vset.pattern.permute.xlu0 %v2891_v3  ;;  %v1876_v7 = vld [vmem:[#allocation10 + $0xcc] ss:$16 sps:$4 sm:$0xff]   ;;  %v1878_v8 = vld [vmem:[#allocation10 + $0xc0] ss:$16 sps:$4 sm:$0xff]   ;;  %v1879_v9 = vld [vmem:[#allocation10 + $0xc8] ss:$16 sps:$4 sm:$0xff]  }
  0x32   :  { %396 = vmatprep.subr.bf16.mxu1 %v1870_v2  ;;  %324 = vmatpush1.bf16.msra.mxu0 %v1872_v4  ;;  %v1880_v10 = vld [vmem:[#allocation10 + $0xa4] ss:$16 sps:$4 sm:$0xff]   ;;  %v1882_v11 = vld [vmem:[#allocation10 + $0xac] ss:$16 sps:$4 sm:$0xff]   ;;  %v1884_v12 = vld [vmem:[#allocation10 + $0xa0] ss:$16 sps:$4 sm:$0xff]  }
  0x33   :  { %397 = vmatpush1.bf16.msra.mxu1 %v1873_v5  ;;  %325 = vmatprep.subr.bf16.mxu0 %v1874_v6  ;;  %v1885_v13 = vld [vmem:[#allocation10 + $0xa8] ss:$16 sps:$4 sm:$0xff]   ;;  %v1886_v14 = vld [vmem:[#allocation10 + $0x84] ss:$16 sps:$4 sm:$0xff]   ;;  %v1888_v15 = vld [vmem:[#allocation10 + $0x8c] ss:$16 sps:$4 sm:$0xff]  }
  0x34   :  { %398 = vmatprep.subr.bf16.mxu1 %v1876_v7  ;;  %v1890_v16 = vld [vmem:[#allocation10 + $0x80] ss:$16 sps:$4 sm:$0xff]   ;;  %v1891_v17 = vld [vmem:[#allocation10 + $0x88] ss:$16 sps:$4 sm:$0xff]   ;;  %v1892_v18 = vld [vmem:[#allocation10 + $0x64] ss:$16 sps:$4 sm:$0xff]  }
  0x35   :  { %v1894_v19 = vld [vmem:[#allocation10 + $0x6c] ss:$16 sps:$4 sm:$0xff]   ;;  %v1896_v20 = vld [vmem:[#allocation10 + $0x60] ss:$16 sps:$4 sm:$0xff]   ;;  %v1897_v21 = vld [vmem:[#allocation10 + $0x68] ss:$16 sps:$4 sm:$0xff]  }
  0x36   :  { %326 = vmatpush1.bf16.msra.mxu0 %v1878_v8  ;;  %v1898_v22 = vld [vmem:[#allocation10 + $0x44] ss:$16 sps:$4 sm:$0xff]   ;;  %v1900_v23 = vld [vmem:[#allocation10 + $0x4c] ss:$16 sps:$4 sm:$0xff]   ;;  %v1902_v24 = vld [vmem:[#allocation10 + $0x40] ss:$16 sps:$4 sm:$0xff]  }
  0x37   :  { %399 = vmatpush1.bf16.msra.mxu1 %v1879_v9  ;;  %327 = vmatprep.subr.bf16.mxu0 %v1880_v10  ;;  %v1903_v25 = vld [vmem:[#allocation10 + $0x48] ss:$16 sps:$4 sm:$0xff]   ;;  %v1904_v26 = vld [vmem:[#allocation10 + $0x24] ss:$16 sps:$4 sm:$0xff]   ;;  %v1906_v27 = vld [vmem:[#allocation10 + $0x2c] ss:$16 sps:$4 sm:$0xff]   ;;  %v119_v10 = vlaneseq }
  0x38   :  { %400 = vmatprep.subr.bf16.mxu1 %v1882_v11  ;;  %v1908_v28 = vld [vmem:[#allocation10 + $0x20] ss:$16 sps:$4 sm:$0xff]   ;;  %v1909_v29 = vld [vmem:[#allocation10 + $0x28] ss:$16 sps:$4 sm:$0xff]   ;;  %v1910_v30 = vld [vmem:[#allocation10 + $0x4] ss:$16 sps:$4 sm:$0xff]  }
  0x39   :  { %v1912_v31 = vld [vmem:[#allocation10 + $0xc] ss:$16 sps:$4 sm:$0xff]   ;;  %v1914_v32 = vld [vmem:[#allocation10] ss:$16 sps:$4 sm:$0xff]   ;;  %v1915_v33 = vld [vmem:[#allocation10 + $0x8] ss:$16 sps:$4 sm:$0xff]  }
  0x3a   :  { %328 = vmatpush1.bf16.msra.mxu0 %v1884_v12  ;;  %v2278_v34 = vld [vmem:[#allocation12 + $0xe4] ss:$16 sps:$4 sm:$0xff]   ;;  %v2280_v35 = vld [vmem:[#allocation12 + $0xec] ss:$16 sps:$4 sm:$0xff]   ;;  %v2282_v37 = vld [vmem:[#allocation12 + $0xe0] ss:$16 sps:$4 sm:$0xff]  }
  0x3b   :  { %401 = vmatpush1.bf16.msra.mxu1 %v1885_v13  ;;  %329 = vmatprep.subr.bf16.mxu0 %v1886_v14  ;;  %v1916_v36 = vld [vmem:[#allocation7] sm:$0xff]   ;;  %v2284_v38 = vld [vmem:[#allocation12 + $0xe8] ss:$16 sps:$4 sm:$0xff]   ;;  %v2290_v40 = vld [vmem:[#allocation12 + $0xcc] ss:$16 sps:$4 sm:$0xff]   ;;  %v120_v11 = vshrl.u32 %v119_v10, 7 }
  0x3c   :  { %402 = vmatprep.subr.bf16.mxu1 %v1888_v15  ;;  %v2288_v39 = vld [vmem:[#allocation12 + $0xc4] ss:$16 sps:$4 sm:$0xff]   ;;  %v2292_v41 = vld [vmem:[#allocation12 + $0xc0] ss:$16 sps:$4 sm:$0xff]   ;;  %v2296_v42 = vld [vmem:[#allocation12 + $0xc8] ss:$16 sps:$4 sm:$0xff]  }
  0x3d   :  { %v2300_v43 = vld [vmem:[#allocation12 + $0xa4] ss:$16 sps:$4 sm:$0xff]   ;;  %v2302_v44 = vld [vmem:[#allocation12 + $0xac] ss:$16 sps:$4 sm:$0xff]   ;;  %v2306_v46 = vld [vmem:[#allocation12 + $0xa0] ss:$16 sps:$4 sm:$0xff]  }
  0x3e   :  { %330 = vmatpush1.bf16.msra.mxu0 %v1890_v16  ;;  %v1929_v45 = vld [vmem:[#allocation7 + $0x8] sm:$0xff]   ;;  %v2312_v48 = vld [vmem:[#allocation12 + $0x84] ss:$16 sps:$4 sm:$0xff]   ;;  %v2318_v50 = vld [vmem:[#allocation12 + $0x80] ss:$16 sps:$4 sm:$0xff]   ;;  %v129_v12 = vsub.s32 2, %v120_v11 }
  0x3f   :  { %403 = vmatpush1.bf16.msra.mxu1 %v1891_v17  ;;  %331 = vmatprep.subr.bf16.mxu0 %v1892_v18  ;;  %v2308_v47 = vld [vmem:[#allocation12 + $0xa8] ss:$16 sps:$4 sm:$0xff]   ;;  %v2316_v49 = vld [vmem:[#allocation12 + $0x8c] ss:$16 sps:$4 sm:$0xff]   ;;  %v2324_v52 = vld [vmem:[#allocation12 + $0x64] ss:$16 sps:$4 sm:$0xff]  }
  0x40   :  { %404 = vmatprep.subr.bf16.mxu1 %v1894_v19  ;;  %v2320_v51 = vld [vmem:[#allocation12 + $0x88] ss:$16 sps:$4 sm:$0xff]   ;;  %v2328_v53 = vld [vmem:[#allocation12 + $0x6c] ss:$16 sps:$4 sm:$0xff]   ;;  %v1942_v54 = vld [vmem:[#allocation7 + $0x10] sm:$0xff]   ;;  %v121_v13 = vsub.s32 0, %v120_v11 }
  0x41   :  { %v533_v55 = vld [vmem:[%s2885_s1] sm:$0xff]  ;;  %v2339_v57 = vld [vmem:[#allocation12 + $0x68] ss:$16 sps:$4 sm:$0xff]   ;;  %v2345_v59 = vld [vmem:[#allocation12 + $0x4c] ss:$16 sps:$4 sm:$0xff]   ;;  %v133_v14 = vsub.s32 3, %v120_v11 }
  0x42   :  { %332 = vmatpush1.bf16.msra.mxu0 %v1896_v20  ;;  %v2337_v56 = vld [vmem:[#allocation12 + $0x60] ss:$16 sps:$4 sm:$0xff]   ;;  %v2343_v58 = vld [vmem:[#allocation12 + $0x44] ss:$16 sps:$4 sm:$0xff]   ;;  %535 = vperm.xlu0 %1867, %v533_v55   ;;  %v2351_v61 = vld [vmem:[#allocation12 + $0x48] ss:$16 sps:$4 sm:$0xff]  }
  0x43   :  { %405 = vmatpush1.bf16.msra.mxu1 %v1897_v21  ;;  %333 = vmatprep.subr.bf16.mxu0 %v1898_v22  ;;  %v2349_v60 = vld [vmem:[#allocation12 + $0x40] ss:$16 sps:$4 sm:$0xff]   ;;  %v2355_v62 = vld [vmem:[#allocation12 + $0x24] ss:$16 sps:$4 sm:$0xff]   ;;  %v2357_v63 = vld [vmem:[#allocation12 + $0x2c] ss:$16 sps:$4 sm:$0xff]  }
  0x44   :  { %406 = vmatprep.subr.bf16.mxu1 %v1900_v23  ;;  %v1955_v0 = vld [vmem:[#allocation7 + $0x18] sm:$0xff]   ;;  %v2363_v1 = vld [vmem:[#allocation12 + $0x20] ss:$16 sps:$4 sm:$0xff]   ;;  %v2369_v4 = vld [vmem:[#allocation12 + $0x4] ss:$16 sps:$4 sm:$0xff]   ;;  %v125_v19 = vsub.s32 1, %v120_v11 }
  0x45   :  { %v2365_v2 = vld [vmem:[#allocation12 + $0x28] ss:$16 sps:$4 sm:$0xff]   ;;  %v2371_v5 = vld [vmem:[#allocation12 + $0xc] ss:$16 sps:$4 sm:$0xff]   ;;  %v2375_v6 = vld [vmem:[#allocation12] ss:$16 sps:$4 sm:$0xff]  }
  0x46   :  { %334 = vmatpush1.bf16.msra.mxu0 %v1902_v24  ;;  %v2377_v7 = vld [vmem:[#allocation12 + $0x8] ss:$16 sps:$4 sm:$0xff]   ;;  %v2379_v8 = vld [vmem:[#allocation2] sm:$0xff] }
  0x47   :  { %407 = vmatpush1.bf16.msra.mxu1 %v1903_v25  ;;  %335 = vmatprep.subr.bf16.mxu0 %v1904_v26  ;;  %v546_v9 = vpack.c.bf16 %v2379_v8, %v2379_v8  ;;  %v117_v15 = vld [vmem:[%s2889_s5] sm:$0xf] }
  0x48   :  { %408 = vmatprep.subr.bf16.mxu1 %v1906_v27  ;;  %v2432_v18 = vrot.slane %v117_v15, %v129_v12  ;;  %v122_v22 = vrot.slane %v117_v15, %v121_v13  ;;  %v2438_v23 = vrot.slane %v117_v15, %v133_v14  ;;  %v126_v26 = vrot.slane %v117_v15, %v125_v19 }
  0x4a   :  { %336 = vmatpush1.bf16.msra.mxu0 %v1908_v28 }
  0x4b   :  { %409 = vmatpush1.bf16.msra.mxu1 %v1909_v29  ;;  %337 = vmatprep.subr.bf16.mxu0 %v1910_v30 }
  0x4c   :  { %410 = vmatprep.subr.bf16.mxu1 %v1912_v31 }
  0x4e   :  { %338 = vmatpush1.bf16.msra.mxu0 %v1914_v32 }
  0x4f   :  { %411 = vmatpush1.bf16.msra.mxu1 %v1915_v33  ;;  %707 = vmatprep.subr.bf16.mxu0 %v2278_v34 }
  0x50   :  { %748 = vmatprep.subr.bf16.mxu1 %v2280_v35 }
  0x51   :  { %356 = vmatmul.mubr.bf16.vlgmr.msra.gmra.mxu0 %v1916_v36 }
  0x52   :  { %429 = vmatmul.mubr.bf16.vlgmr.msra.gmra.mxu1 %v1916_v36  ;;  %708 = vmatpush1.bf16.msra.mxu0 %v2282_v37 }
  0x53   :  { %749 = vmatpush1.bf16.msra.mxu1 %v2284_v38  ;;  %709 = vmatprep.subr.bf16.mxu0 %v2288_v39 }
  0x54   :  { %750 = vmatprep.subr.bf16.mxu1 %v2290_v40  ;;  %365 = vmatprep.mubr.bf16.mxu0 %v2891_v3 }
  0x55   :  { %438 = vmatprep.mubr.bf16.mxu1 %v2891_v3 }
  0x56   :  { %710 = vmatpush1.bf16.msra.mxu0 %v2292_v41 }
  0x57   :  { %751 = vmatpush1.bf16.msra.mxu1 %v2296_v42  ;;  %711 = vmatprep.subr.bf16.mxu0 %v2300_v43 }
  0x58   :  { %752 = vmatprep.subr.bf16.mxu1 %v2302_v44 }
  0x59   :  { %366 = vmatmul.mubr.bf16.gmra.mxu0 %v1929_v45 }
  0x5a   :  { %439 = vmatmul.mubr.bf16.gmra.mxu1 %v1929_v45  ;;  %712 = vmatpush1.bf16.msra.mxu0 %v2306_v46 }
  0x5b   :  { %753 = vmatpush1.bf16.msra.mxu1 %v2308_v47  ;;  %713 = vmatprep.subr.bf16.mxu0 %v2312_v48 }
  0x5c   :  { %754 = vmatprep.subr.bf16.mxu1 %v2316_v49  ;;  %375 = vmatprep.mubr.bf16.mxu0 %v2891_v3 }
  0x5d   :  { %448 = vmatprep.mubr.bf16.mxu1 %v2891_v3 }
  0x5e   :  { %714 = vmatpush1.bf16.msra.mxu0 %v2318_v50 }
  0x5f   :  { %755 = vmatpush1.bf16.msra.mxu1 %v2320_v51  ;;  %715 = vmatprep.subr.bf16.mxu0 %v2324_v52 }
  0x60   :  { %756 = vmatprep.subr.bf16.mxu1 %v2328_v53 }
  0x61   :  { %376 = vmatmul.mubr.bf16.gmra.mxu0 %v1942_v54 }
  0x62   :  { %449 = vmatmul.mubr.bf16.gmra.mxu1 %v1942_v54  ;;  %716 = vmatpush1.bf16.msra.mxu0 %v2337_v56 }
  0x63   :  { %757 = vmatpush1.bf16.msra.mxu1 %v2339_v57  ;;  %717 = vmatprep.subr.bf16.mxu0 %v2343_v58 }
  0x64   :  { %758 = vmatprep.subr.bf16.mxu1 %v2345_v59  ;;  %385 = vmatprep.mubr.bf16.mxu0 %v2891_v3 }
  0x65   :  { %458 = vmatprep.mubr.bf16.mxu1 %v2891_v3 }
  0x66   :  { %718 = vmatpush1.bf16.msra.mxu0 %v2349_v60 }
  0x67   :  { %759 = vmatpush1.bf16.msra.mxu1 %v2351_v61  ;;  %719 = vmatprep.subr.bf16.mxu0 %v2355_v62 }
  0x68   :  { %760 = vmatprep.subr.bf16.mxu1 %v2357_v63 }
  0x69   :  { %386 = vmatmul.mubr.bf16.gmra.mxu0 %v1955_v0 }
  0x6a   :  { %459 = vmatmul.mubr.bf16.gmra.mxu1 %v1955_v0  ;;  %720 = vmatpush1.bf16.msra.mxu0 %v2363_v1 }
  0x6b   :  { %761 = vmatpush1.bf16.msra.mxu1 %v2365_v2  ;;  %721 = vmatprep.subr.bf16.mxu0 %v2369_v4 }
  0x6c   :  { %762 = vmatprep.subr.bf16.mxu1 %v2371_v5  ;;  %739 = vmatprep.mubr.bf16.mxu0 %v2891_v3 }
  0x6d   :  { %780 = vmatprep.mubr.bf16.mxu1 %v2891_v3 }
  0x6e   :  { %722 = vmatpush1.bf16.msra.mxu0 %v2375_v6 }
  0x6f   :  { %763 = vmatpush1.bf16.msra.mxu1 %v2377_v7  ;;  %832 = vmatprep.subr.bf16.mxu0 %v2278_v34 }
  0x70   :  { %873 = vmatprep.subr.bf16.mxu1 %v2280_v35 }
  0x71   :  { %740 = vmatmul.mubr.bf16.vlgmr.msra.gmra.mxu0 %v546_v9 }
  0x72   :  { %781 = vmatmul.mubr.bf16.vlgmr.msra.gmra.mxu1 %v546_v9  ;;  %833 = vmatpush1.bf16.msra.mxu0 %v2282_v37 }
  0x73   :  { %874 = vmatpush1.bf16.msra.mxu1 %v2284_v38  ;;  %834 = vmatprep.subr.bf16.mxu0 %v2288_v39 }
  0x74   :  { %875 = vmatprep.subr.bf16.mxu1 %v2290_v40  ;;  %864 = vmatprep.mubr.bf16.mxu0 %v2891_v3 }
  0x75   :  { %905 = vmatprep.mubr.bf16.mxu1 %v2891_v3 }
  0x76   :  { %835 = vmatpush1.bf16.msra.mxu0 %v2292_v41 }
  0x77   :  { %876 = vmatpush1.bf16.msra.mxu1 %v2296_v42  ;;  %836 = vmatprep.subr.bf16.mxu0 %v2300_v43 }
  0x78   :  { %877 = vmatprep.subr.bf16.mxu1 %v2302_v44 }
  0x7a   :  { %837 = vmatpush1.bf16.msra.mxu0 %v2306_v46 }
  0x7b   :  { %878 = vmatpush1.bf16.msra.mxu1 %v2308_v47  ;;  %838 = vmatprep.subr.bf16.mxu0 %v2312_v48 }
  0x7c   :  { %879 = vmatprep.subr.bf16.mxu1 %v2316_v49 }
  0x7e   :  { %839 = vmatpush1.bf16.msra.mxu0 %v2318_v50 }
  0x7f   :  { %880 = vmatpush1.bf16.msra.mxu1 %v2320_v51  ;;  %840 = vmatprep.subr.bf16.mxu0 %v2324_v52 }
  0x80   :  { %881 = vmatprep.subr.bf16.mxu1 %v2328_v53 }
  0x82   :  { %841 = vmatpush1.bf16.msra.mxu0 %v2337_v56 }
  0x83   :  { %882 = vmatpush1.bf16.msra.mxu1 %v2339_v57  ;;  %842 = vmatprep.subr.bf16.mxu0 %v2343_v58 }
  0x84   :  { %883 = vmatprep.subr.bf16.mxu1 %v2345_v59 }
  0x86   :  { %843 = vmatpush1.bf16.msra.mxu0 %v2349_v60 }
  0x87   :  { %884 = vmatpush1.bf16.msra.mxu1 %v2351_v61  ;;  %844 = vmatprep.subr.bf16.mxu0 %v2355_v62 }
  0x88   :  { %885 = vmatprep.subr.bf16.mxu1 %v2357_v63 }
  0x8a   :  { %845 = vmatpush1.bf16.msra.mxu0 %v2363_v1 }
  0x8b   :  { %886 = vmatpush1.bf16.msra.mxu1 %v2365_v2  ;;  %846 = vmatprep.subr.bf16.mxu0 %v2369_v4 }
  0x8c   :  { %887 = vmatprep.subr.bf16.mxu1 %v2371_v5 }
  0x8e   :  { %847 = vmatpush1.bf16.msra.mxu0 %v2375_v6 }
  0x8f   :  { %888 = vmatpush1.bf16.msra.mxu1 %v2377_v7  ;;  %959 = vmatprep.subr.bf16.mxu0 %v2278_v34 }
  0x90   :  { %1000 = vmatprep.subr.bf16.mxu1 %v2280_v35 }
 0x111   :  { %v2428_v16 = vpop.f32.mrf.mxu0 }
 0x112   :  { %v2430_v17 = vpop.f32.mrf.mxu1 }
 0x113   :  { %v2434_v20 = vpop.f32.mrf.mxu0 }
 0x114   :  { %v2436_v21 = vpop.f32.mrf.mxu1 }
 0x115   :  { %v361_v24 = vpop.f32.mrf.mxu0 }
 0x116   :  { %v434_v25 = vpop.f32.mrf.mxu1  ;;  %v2440_v27 = vadd.f32 %v361_v24, %v122_v22 }
 0x117   :  { %v2443_v28 = vadd.f32 %v434_v25, %v2432_v18  ;;  %v363_v29 = vpop.f32.mrf.mxu0 }
 0x118   :  { %v436_v30 = vpop.f32.mrf.mxu1  ;;  %v2445_v31 = vadd.f32 %v363_v29, %v126_v26 }
 0x119   :  { %v2448_v32 = vadd.f32 %v436_v30, %v2438_v23  ;;  %v367_v33 = vpop.f32.mrf.mxu0 }
 0x11a   :  { %v440_v36 = vpop.f32.mrf.mxu1  ;;  %v2450_v45 = vadd.f32 %v367_v33, %v122_v22 }
 0x11b   :  { %v2453_v54 = vadd.f32 %v440_v36, %v2432_v18  ;;  %v369_v55 = vpop.f32.mrf.mxu0 }
 0x11c   :  { %v442_v0 = vpop.f32.mrf.mxu1  ;;  %v2455_v9 = vadd.f32 %v369_v55, %v126_v26 }
 0x11d   :  { %2893 = vst [vmem:[#allocation17_spill] sm:$0xff] %v2453_v54  ;;  %v2458_v10 = vadd.f32 %v442_v0, %v2438_v23  ;;  %v371_v11 = vpop.f32.mrf.mxu0 }
 0x11e   :  { %v444_v12 = vpop.f32.mrf.mxu1  ;;  %v2460_v13 = vadd.f32 %v371_v11, %v122_v22 }
 0x11f   :  { %2894 = vst [vmem:[#allocation18_spill] sm:$0xff] %v2458_v10  ;;  %v2463_v14 = vadd.f32 %v444_v12, %v2432_v18  ;;  %v373_v15 = vpop.f32.mrf.mxu0 }
 0x120   :  { %2895 = vst [vmem:[#allocation19_spill] sm:$0xff] %v2460_v13  ;;  %v446_v19 = vpop.f32.mrf.mxu1  ;;  %v2465_v24 = vadd.f32 %v373_v15, %v126_v26 }
 0x121   :  { %2896 = vst [vmem:[#allocation20_spill] sm:$0xff] %v2463_v14  ;;  %v2468_v25 = vadd.f32 %v446_v19, %v2438_v23  ;;  %v377_v29 = vpop.f32.mrf.mxu0 }
 0x122   :  { %2897 = vst [vmem:[#allocation21_spill] sm:$0xff] %v2465_v24  ;;  %v450_v30 = vpop.f32.mrf.mxu1  ;;  %v2470_v33 = vadd.f32 %v377_v29, %v122_v22 }
 0x123   :  { %2898 = vst [vmem:[#allocation22_spill] sm:$0xff] %v2468_v25  ;;  %v2473_v36 = vadd.f32 %v450_v30, %v2432_v18  ;;  %v379_v55 = vpop.f32.mrf.mxu0 }
 0x124   :  { %2899 = vst [vmem:[#allocation23_spill] sm:$0xff] %v2470_v33  ;;  %v452_v0 = vpop.f32.mrf.mxu1  ;;  %v2475_v11 = vadd.f32 %v379_v55, %v126_v26 }
 0x125   :  { %2900 = vst [vmem:[#allocation24_spill] sm:$0xff] %v2473_v36  ;;  %v2478_v12 = vadd.f32 %v452_v0, %v2438_v23  ;;  %v381_v3 = vpop.f32.mrf.mxu0 }
 0x126   :  { %2901 = vst [vmem:[#allocation25_spill] sm:$0xff] %v2475_v11  ;;  %v454_v15 = vpop.f32.mrf.mxu1  ;;  %v2480_v14 = vadd.f32 %v381_v3, %v122_v22 }
 0x127   :  { %2902 = vst [vmem:[#allocation26_spill] sm:$0xff] %v2478_v12  ;;  %v2483_v19 = vadd.f32 %v454_v15, %v2432_v18  ;;  %v383_v25 = vpop.f32.mrf.mxu0 }
 0x128   :  { %2903 = vst [vmem:[#allocation27_spill] sm:$0xff] %v2480_v14  ;;  %v456_v29 = vpop.f32.mrf.mxu1  ;;  %v2485_v33 = vadd.f32 %v383_v25, %v126_v26 }
 0x129   :  { %2904 = vst [vmem:[#allocation28_spill] sm:$0xff] %v2483_v19  ;;  %v2488_v30 = vadd.f32 %v456_v29, %v2438_v23  ;;  %v387_v36 = vpop.f32.mrf.mxu0 }
 0x12a   :  { %2905 = vst [vmem:[#allocation29_spill] sm:$0xff] %v2485_v33  ;;  %v460_v55 = vpop.f32.mrf.mxu1  ;;  %v2490_v11 = vadd.f32 %v387_v36, %v122_v22 }
 0x12b   :  { %2906 = vst [vmem:[#allocation30_spill] sm:$0xff] %v2488_v30  ;;  %v2493_v0 = vadd.f32 %v460_v55, %v2432_v18  ;;  %v389_v12 = vpop.f32.mrf.mxu0 }
 0x12c   :  { %2907 = vst [vmem:[#allocation31_spill] sm:$0xff] %v2490_v11  ;;  %v462_v3 = vpop.f32.mrf.mxu1  ;;  %v2495_v14 = vadd.f32 %v389_v12, %v126_v26  ;;  %v358_v11 = vadd.f32 %v2428_v16, %v122_v22 }
 0x12d   :  { %2908 = vst [vmem:[#allocation32_spill] sm:$0xff] %v2493_v0  ;;  %v2498_v15 = vadd.f32 %v462_v3, %v2438_v23  ;;  %v391_v19 = vpop.f32.mrf.mxu0  ;;  %v360_v3 = vadd.f32 %v2434_v20, %v126_v26 }
 0x12e   :  { %2909 = vst [vmem:[#allocation33_spill] sm:$0xff] %v2495_v14  ;;  %v464_v25 = vpop.f32.mrf.mxu1  ;;  %v2500_v33 = vadd.f32 %v391_v19, %v122_v22  ;;  %v433_v22 = vadd.f32 %v2436_v21, %v2438_v23 }
 0x12f   :  { %2910 = vst [vmem:[#allocation34_spill] sm:$0xff] %v2498_v15  ;;  %v2503_v29 = vadd.f32 %v464_v25, %v2432_v18  ;;  %v393_v30 = vpop.f32.mrf.mxu0 }
 0x130   :  { %2911 = vst [vmem:[#allocation35_spill] sm:$0xff] %v2500_v33  ;;  %v466_v36 = vpop.f32.mrf.mxu1  ;;  %v2506_v55 = vadd.f32 %v393_v30, %v126_v26 }
 0x131   :  { %2912 = vst [vmem:[#allocation36_spill] sm:$0xff] %v2503_v29  ;;  %v2509_v0 = vadd.f32 %v466_v36, %v2438_v23  ;;  %v741_v12 = vpop.f32.mrf.mxu0  ;;  %v431_v36 = vadd.f32 %v2430_v17, %v2432_v18 }
 0x132   :  { %v782_v14 = vpop.f32.mrf.mxu1  ;;  %v789_v15 = vadd.f32 %v741_v12, %v358_v11 }
 0x133   :  { %v743_v24 = vpop.f32.mrf.mxu0  ;;  %v791_v11 = vadd.f32 %v782_v14, %v431_v36 }
 0x134   :  { %v784_v19 = vpop.f32.mrf.mxu1  ;;  %v1822_v33 = vmul.f32 -1.442695, %v789_v15  ;;  %v790_v13 = vadd.f32 %v743_v24, %v360_v3 }
 0x135   :  { %v745_v25 = vpop.f32.mrf.mxu0  ;;  %v792_v30 = vadd.f32 %v784_v19, %v433_v22 }
 0x136   :  { %v786_v29 = vpop.f32.mrf.mxu1  ;;  %1968 = vpow2.f32 %v1822_v33  ;;  %v1823_v54 = vmul.f32 -1.442695, %v790_v13 }
 0x137   :  { %v746_v10 = vpop.f32.mrf.mxu0  ;;  %v1824_v20 = vmul.f32 -1.442695, %v792_v30  ;;  %v2516_v29 = vpop.permute.xlu0 %535 }
 0x138   :  { %v787_v16 = vpop.f32.mrf.mxu1  ;;  %1970 = vpow2.f32 %v1823_v54  ;;  %v538_v54 = vld [vmem:[#allocation3] sm:$0xff]  ;;  %vm1825_vm0 = vcmp.gt.s32.totalorder %v2516_v29, 0  ;;  %vm1829_vm1 = vcmp.gt.s32.totalorder %v2516_v29, 1  ;;  %vm1833_vm2 = vcmp.gt.s32.totalorder %v2516_v29, 2 }
 0x139   :  { %1972 = vpow2.f32 %v1824_v20  ;;  %vm1837_vm3 = vcmp.gt.s32.totalorder %v2516_v29, 3  ;;  %vm1841_vm4 = vcmp.gt.s32.totalorder %v2516_v29, 4  ;;  %vm1845_vm5 = vcmp.gt.s32.totalorder %v2516_v29, 5 }
 0x13a   :  { %vm1849_vm6 = vcmp.gt.s32.totalorder %v2516_v29, 6  ;;  %vm1853_vm7 = vcmp.gt.s32.totalorder %v2516_v29, 7 }
 0x143   :  { %v1969_v26 = vpop.eup %1968 }
 0x144   :  { %v796_v12 = vadd.f32 1.0, %v1969_v26  ;;  %v2913_v26 = vmov 0  }
 0x145   :  { %v1971_v15 = vpop.eup %1970 }
 0x146   :  { %1974 = vrcp.f32 %v796_v12  ;;  %v802_v24 = vadd.f32 1.0, %v1971_v15  ;;  %v1973_v10 = vpop.eup %1972 }
 0x147   :  { %1976 = vtanh.f32 %v791_v11  ;;  %v809_v23 = vadd.f32 1.0, %v1973_v10 }
 0x148   :  { %1978 = vrcp.f32 %v802_v24 }
 0x149   :  { %1980 = vrcp.f32 %v809_v23 }
 0x153   :  { %v1975_v13 = vpop.eup %1974 }
 0x154   :  { %v1977_v33 = vpop.eup %1976 }
 0x155   :  { %v1979_v21 = vpop.eup %1978  ;;  %v813_v3 = vmul.f32 %v1977_v33, %v1975_v13 }
 0x156   :  { %v812_v17 = vmul.f32 %v1979_v21, %v538_v54  ;;  %v1981_v19 = vpop.eup %1980 }
 0x158   :  { %v814_v18 = vadd.f32 %v813_v3, %v812_v17 }
 0x15a   :  { %1982 = vtanh.f32 %v814_v18  ;;  %v2519_v14 = vsel %vm1825_vm0, %v814_v18, %v538_v54 }
 0x167   :  { %v1983_v25 = vpop.eup %1982 }
 0x168   :  { %v816_v16 = vmul.f32 %v1983_v25, %v1981_v19 }
 0x16a   :  { %v2522_v22 = vsel %vm1825_vm0, %v816_v16, %v2379_v8  ;;  %v821_v30 = vsel %vm1825_vm0, %v816_v16, 0.0 }
 0x16b   :  { %v822_v36 = vpack.c.bf16 %v821_v30, %v821_v30  ;;  %v831_v20 = vpack.c.bf16 %v2522_v22, %v2522_v22 }
 0x16d   :  { %823 = vst [vmem:[#allocation13] sm:$0xf] %v822_v36  ;;  %865 = vmatmul.mubr.bf16.vlgmr.msra.gmra.mxu0 %v831_v20  ;;  %906 = vmatmul.mubr.bf16.vlgmr.msra.gmra.mxu1 %v831_v20 }
 0x16e   :  { %960 = vmatpush1.bf16.msra.mxu0 %v2282_v37  ;;  %1001 = vmatpush1.bf16.msra.mxu1 %v2284_v38 }
 0x16f   :  { %961 = vmatprep.subr.bf16.mxu0 %v2288_v39  ;;  %1002 = vmatprep.subr.bf16.mxu1 %v2290_v40 }
 0x170   :  { %991 = vmatprep.mubr.bf16.mxu0 %v2913_v26  ;;  %1032 = vmatprep.mubr.bf16.mxu1 %v2913_v26 }
 0x172   :  { %962 = vmatpush1.bf16.msra.mxu0 %v2292_v41  ;;  %1003 = vmatpush1.bf16.msra.mxu1 %v2296_v42 }
 0x173   :  { %963 = vmatprep.subr.bf16.mxu0 %v2300_v43  ;;  %1004 = vmatprep.subr.bf16.mxu1 %v2302_v44 }
 0x176   :  { %964 = vmatpush1.bf16.msra.mxu0 %v2306_v46  ;;  %1005 = vmatpush1.bf16.msra.mxu1 %v2308_v47 }
 0x177   :  { %965 = vmatprep.subr.bf16.mxu0 %v2312_v48  ;;  %1006 = vmatprep.subr.bf16.mxu1 %v2316_v49 }
 0x17a   :  { %966 = vmatpush1.bf16.msra.mxu0 %v2318_v50  ;;  %1007 = vmatpush1.bf16.msra.mxu1 %v2320_v51 }
 0x17b   :  { %967 = vmatprep.subr.bf16.mxu0 %v2324_v52  ;;  %1008 = vmatprep.subr.bf16.mxu1 %v2328_v53 }
 0x17e   :  { %968 = vmatpush1.bf16.msra.mxu0 %v2337_v56  ;;  %1009 = vmatpush1.bf16.msra.mxu1 %v2339_v57 }
 0x17f   :  { %969 = vmatprep.subr.bf16.mxu0 %v2343_v58  ;;  %1010 = vmatprep.subr.bf16.mxu1 %v2345_v59 }
 0x182   :  { %970 = vmatpush1.bf16.msra.mxu0 %v2349_v60  ;;  %1011 = vmatpush1.bf16.msra.mxu1 %v2351_v61 }
 0x183   :  { %971 = vmatprep.subr.bf16.mxu0 %v2355_v62  ;;  %1012 = vmatprep.subr.bf16.mxu1 %v2357_v63 }
 0x186   :  { %972 = vmatpush1.bf16.msra.mxu0 %v2363_v1  ;;  %1013 = vmatpush1.bf16.msra.mxu1 %v2365_v2 }
 0x187   :  { %973 = vmatprep.subr.bf16.mxu0 %v2369_v4  ;;  %1014 = vmatprep.subr.bf16.mxu1 %v2371_v5 }
 0x18a   :  { %974 = vmatpush1.bf16.msra.mxu0 %v2375_v6  ;;  %1015 = vmatpush1.bf16.msra.mxu1 %v2377_v7 }
 0x18b   :  { %1086 = vmatprep.subr.bf16.mxu0 %v2278_v34  ;;  %1127 = vmatprep.subr.bf16.mxu1 %v2280_v35 }
 0x22d   :  { %v866_v8 = vpop.f32.mrf.mxu0  ;;  %v907_v11 = vpop.f32.mrf.mxu1 }
 0x22e   :  { %v914_v12 = vadd.f32 %v866_v8, %v2440_v27  ;;  %v916_v18 = vadd.f32 %v907_v11, %v2443_v28 }
 0x22f   :  { %v868_v15 = vpop.f32.mrf.mxu0  ;;  %v909_v24 = vpop.f32.mrf.mxu1 }
 0x230   :  { %v1826_v10 = vmul.f32 -1.442695, %v914_v12  ;;  %v915_v13 = vadd.f32 %v868_v15, %v2445_v31  ;;  %v917_v17 = vadd.f32 %v909_v24, %v2448_v32 }
 0x231   :  { %v870_v54 = vpop.f32.mrf.mxu0  ;;  %v911_v33 = vpop.f32.mrf.mxu1 }
 0x232   :  { %1984 = vpow2.f32 %v1826_v10  ;;  %v1827_v21 = vmul.f32 -1.442695, %v915_v13  ;;  %v1828_v19 = vmul.f32 -1.442695, %v917_v17 }
 0x233   :  { %v871_v23 = vpop.f32.mrf.mxu0  ;;  %v912_v3 = vpop.f32.mrf.mxu1 }
 0x234   :  { %1986 = vpow2.f32 %v1827_v21 }
 0x235   :  { %1988 = vtanh.f32 %v916_v18 }
 0x236   :  { %1990 = vpow2.f32 %v1828_v19 }
 0x23f   :  { %v1985_v25 = vpop.eup %1984 }
 0x240   :  { %v921_v16 = vadd.f32 1.0, %v1985_v25 }
 0x241   :  { %v1987_v27 = vpop.eup %1986 }
 0x242   :  { %1992 = vrcp.f32 %v921_v16  ;;  %v927_v30 = vadd.f32 1.0, %v1987_v27  ;;  %v1989_v31 = vpop.eup %1988 }
 0x243   :  { %v1991_v36 = vpop.eup %1990 }
 0x244   :  { %1994 = vrcp.f32 %v927_v30  ;;  %v934_v15 = vadd.f32 1.0, %v1991_v36 }
 0x246   :  { %1996 = vrcp.f32 %v934_v15 }
 0x24f   :  { %v1993_v20 = vpop.eup %1992 }
 0x250   :  { %v938_v8 = vmul.f32 %v1993_v20, %v1989_v31  ;;  %v2914_v20 = vld [vmem:[#allocation18_spill] sm:$0xff] }
 0x251   :  { %v1995_v12 = vpop.eup %1994 }
 0x252   :  { %v937_v10 = vmul.f32 %v1995_v12, %v2519_v14  ;;  %v2915_v12 = vld [vmem:[#allocation17_spill] sm:$0xff] }
 0x253   :  { %v1997_v11 = vpop.eup %1996 }
 0x254   :  { %v939_v32 = vadd.f32 %v938_v8, %v937_v10 }
 0x256   :  { %1998 = vtanh.f32 %v939_v32  ;;  %v2567_v28 = vsel %vm1829_vm1, %v939_v32, %v2519_v14 }
 0x263   :  { %v1999_v24 = vpop.eup %1998 }
 0x264   :  { %v941_v13 = vmul.f32 %v1999_v24, %v1997_v11 }
 0x266   :  { %v2570_v54 = vsel %vm1829_vm1, %v941_v13, %v2522_v22  ;;  %v947_v33 = vsel %vm1829_vm1, %v941_v13, 0.0 }
 0x267   :  { %v948_v21 = vpack.c.bf16 %v947_v33, %v947_v33  ;;  %v958_v23 = vpack.c.bf16 %v2570_v54, %v2570_v54 }
 0x269   :  { %950 = vst [vmem:[#allocation13 + $0x4] sm:$0xf] %v948_v21  ;;  %992 = vmatmul.mubr.bf16.vlgmr.msra.gmra.mxu0 %v958_v23  ;;  %1033 = vmatmul.mubr.bf16.vlgmr.msra.gmra.mxu1 %v958_v23 }
 0x26a   :  { %1087 = vmatpush1.bf16.msra.mxu0 %v2282_v37  ;;  %1128 = vmatpush1.bf16.msra.mxu1 %v2284_v38 }
 0x26b   :  { %1088 = vmatprep.subr.bf16.mxu0 %v2288_v39  ;;  %1129 = vmatprep.subr.bf16.mxu1 %v2290_v40 }
 0x26c   :  { %1118 = vmatprep.mubr.bf16.mxu0 %v2913_v26  ;;  %1159 = vmatprep.mubr.bf16.mxu1 %v2913_v26 }
 0x26e   :  { %1089 = vmatpush1.bf16.msra.mxu0 %v2292_v41  ;;  %1130 = vmatpush1.bf16.msra.mxu1 %v2296_v42 }
 0x26f   :  { %1090 = vmatprep.subr.bf16.mxu0 %v2300_v43  ;;  %1131 = vmatprep.subr.bf16.mxu1 %v2302_v44 }
 0x272   :  { %1091 = vmatpush1.bf16.msra.mxu0 %v2306_v46  ;;  %1132 = vmatpush1.bf16.msra.mxu1 %v2308_v47 }
 0x273   :  { %1092 = vmatprep.subr.bf16.mxu0 %v2312_v48  ;;  %1133 = vmatprep.subr.bf16.mxu1 %v2316_v49 }
 0x276   :  { %1093 = vmatpush1.bf16.msra.mxu0 %v2318_v50  ;;  %1134 = vmatpush1.bf16.msra.mxu1 %v2320_v51 }
 0x277   :  { %1094 = vmatprep.subr.bf16.mxu0 %v2324_v52  ;;  %1135 = vmatprep.subr.bf16.mxu1 %v2328_v53 }
 0x27a   :  { %1095 = vmatpush1.bf16.msra.mxu0 %v2337_v56  ;;  %1136 = vmatpush1.bf16.msra.mxu1 %v2339_v57 }
 0x27b   :  { %1096 = vmatprep.subr.bf16.mxu0 %v2343_v58  ;;  %1137 = vmatprep.subr.bf16.mxu1 %v2345_v59 }
 0x27e   :  { %1097 = vmatpush1.bf16.msra.mxu0 %v2349_v60  ;;  %1138 = vmatpush1.bf16.msra.mxu1 %v2351_v61 }
 0x27f   :  { %1098 = vmatprep.subr.bf16.mxu0 %v2355_v62  ;;  %1139 = vmatprep.subr.bf16.mxu1 %v2357_v63 }
 0x282   :  { %1099 = vmatpush1.bf16.msra.mxu0 %v2363_v1  ;;  %1140 = vmatpush1.bf16.msra.mxu1 %v2365_v2 }
 0x283   :  { %1100 = vmatprep.subr.bf16.mxu0 %v2369_v4  ;;  %1141 = vmatprep.subr.bf16.mxu1 %v2371_v5 }
 0x286   :  { %1101 = vmatpush1.bf16.msra.mxu0 %v2375_v6  ;;  %1142 = vmatpush1.bf16.msra.mxu1 %v2377_v7 }
 0x287   :  { %1213 = vmatprep.subr.bf16.mxu0 %v2278_v34  ;;  %1254 = vmatprep.subr.bf16.mxu1 %v2280_v35 }
 0x329   :  { %v993_v14 = vpop.f32.mrf.mxu0  ;;  %v1034_v22 = vpop.f32.mrf.mxu1 }
 0x32a   :  { %v1041_v3 = vadd.f32 %v993_v14, %v2450_v45  ;;  %v1043_v15 = vadd.f32 %v1034_v22, %v2915_v12  ;;  %v2917_v12 = vld [vmem:[#allocation21_spill] sm:$0xff] }
 0x32b   :  { %v995_v17 = vpop.f32.mrf.mxu0  ;;  %v1036_v18 = vpop.f32.mrf.mxu1 }
 0x32c   :  { %v1830_v19 = vmul.f32 -1.442695, %v1041_v3  ;;  %v1042_v25 = vadd.f32 %v995_v17, %v2455_v9  ;;  %v1044_v8 = vadd.f32 %v1036_v18, %v2914_v20 }
 0x32d   :  { %v997_v16 = vpop.f32.mrf.mxu0  ;;  %v1038_v27 = vpop.f32.mrf.mxu1 }
 0x32e   :  { %2000 = vpow2.f32 %v1830_v19  ;;  %v1831_v30 = vmul.f32 -1.442695, %v1042_v25  ;;  %v1832_v10 = vmul.f32 -1.442695, %v1044_v8 }
 0x32f   :  { %v998_v31 = vpop.f32.mrf.mxu0  ;;  %v1039_v36 = vpop.f32.mrf.mxu1 }
 0x330   :  { %2002 = vpow2.f32 %v1831_v30 }
 0x331   :  { %2004 = vtanh.f32 %v1043_v15 }
 0x332   :  { %2006 = vpow2.f32 %v1832_v10 }
 0x33b   :  { %v2001_v32 = vpop.eup %2000 }
 0x33c   :  { %v1048_v11 = vadd.f32 1.0, %v2001_v32 }
 0x33d   :  { %v2003_v45 = vpop.eup %2002 }
 0x33e   :  { %2008 = vrcp.f32 %v1048_v11  ;;  %v1054_v24 = vadd.f32 1.0, %v2003_v45  ;;  %v2005_v9 = vpop.eup %2004 }
 0x33f   :  { %v2007_v13 = vpop.eup %2006 }
 0x340   :  { %2010 = vrcp.f32 %v1054_v24  ;;  %v1061_v14 = vadd.f32 1.0, %v2007_v13  ;;  %v2919_v13 = vld [vmem:[#allocation20_spill] sm:$0xff] }
 0x342   :  { %2012 = vrcp.f32 %v1061_v14 }
 0x34b   :  { %v2009_v33 = vpop.eup %2008 }
 0x34c   :  { %v1065_v21 = vmul.f32 %v2009_v33, %v2005_v9  ;;  %v2918_v9 = vld [vmem:[#allocation22_spill] sm:$0xff] }
 0x34d   :  { %v2011_v23 = vpop.eup %2010 }
 0x34e   :  { %v1064_v3 = vmul.f32 %v2011_v23, %v2567_v28 }
 0x34f   :  { %v2013_v18 = vpop.eup %2012 }
 0x350   :  { %v1066_v17 = vadd.f32 %v1065_v21, %v1064_v3 }
 0x352   :  { %2014 = vtanh.f32 %v1066_v17  ;;  %v2615_v22 = vsel %vm1833_vm2, %v1066_v17, %v2567_v28  ;;  %v2916_v28 = vld [vmem:[#allocation19_spill] sm:$0xff] }
 0x35f   :  { %v2015_v19 = vpop.eup %2014 }
 0x360   :  { %v1068_v25 = vmul.f32 %v2015_v19, %v2013_v18 }
 0x362   :  { %v2618_v16 = vsel %vm1833_vm2, %v1068_v25, %v2570_v54  ;;  %v1074_v27 = vsel %vm1833_vm2, %v1068_v25, 0.0 }
 0x363   :  { %v1075_v30 = vpack.c.bf16 %v1074_v27, %v1074_v27  ;;  %v1085_v31 = vpack.c.bf16 %v2618_v16, %v2618_v16 }
 0x365   :  { %1077 = vst [vmem:[#allocation13 + $0x8] sm:$0xf] %v1075_v30  ;;  %1119 = vmatmul.mubr.bf16.vlgmr.msra.gmra.mxu0 %v1085_v31  ;;  %1160 = vmatmul.mubr.bf16.vlgmr.msra.gmra.mxu1 %v1085_v31 }
 0x366   :  { %1214 = vmatpush1.bf16.msra.mxu0 %v2282_v37  ;;  %1255 = vmatpush1.bf16.msra.mxu1 %v2284_v38 }
 0x367   :  { %1215 = vmatprep.subr.bf16.mxu0 %v2288_v39  ;;  %1256 = vmatprep.subr.bf16.mxu1 %v2290_v40 }
 0x368   :  { %1245 = vmatprep.mubr.bf16.mxu0 %v2913_v26  ;;  %1286 = vmatprep.mubr.bf16.mxu1 %v2913_v26 }
 0x36a   :  { %1216 = vmatpush1.bf16.msra.mxu0 %v2292_v41  ;;  %1257 = vmatpush1.bf16.msra.mxu1 %v2296_v42 }
 0x36b   :  { %1217 = vmatprep.subr.bf16.mxu0 %v2300_v43  ;;  %1258 = vmatprep.subr.bf16.mxu1 %v2302_v44 }
 0x36e   :  { %1218 = vmatpush1.bf16.msra.mxu0 %v2306_v46  ;;  %1259 = vmatpush1.bf16.msra.mxu1 %v2308_v47 }
 0x36f   :  { %1219 = vmatprep.subr.bf16.mxu0 %v2312_v48  ;;  %1260 = vmatprep.subr.bf16.mxu1 %v2316_v49 }
 0x372   :  { %1220 = vmatpush1.bf16.msra.mxu0 %v2318_v50  ;;  %1261 = vmatpush1.bf16.msra.mxu1 %v2320_v51 }
 0x373   :  { %1221 = vmatprep.subr.bf16.mxu0 %v2324_v52  ;;  %1262 = vmatprep.subr.bf16.mxu1 %v2328_v53 }
 0x376   :  { %1222 = vmatpush1.bf16.msra.mxu0 %v2337_v56  ;;  %1263 = vmatpush1.bf16.msra.mxu1 %v2339_v57 }
 0x377   :  { %1223 = vmatprep.subr.bf16.mxu0 %v2343_v58  ;;  %1264 = vmatprep.subr.bf16.mxu1 %v2345_v59 }
 0x37a   :  { %1224 = vmatpush1.bf16.msra.mxu0 %v2349_v60  ;;  %1265 = vmatpush1.bf16.msra.mxu1 %v2351_v61 }
 0x37b   :  { %1225 = vmatprep.subr.bf16.mxu0 %v2355_v62  ;;  %1266 = vmatprep.subr.bf16.mxu1 %v2357_v63 }
 0x37e   :  { %1226 = vmatpush1.bf16.msra.mxu0 %v2363_v1  ;;  %1267 = vmatpush1.bf16.msra.mxu1 %v2365_v2 }
 0x37f   :  { %1227 = vmatprep.subr.bf16.mxu0 %v2369_v4  ;;  %1268 = vmatprep.subr.bf16.mxu1 %v2371_v5 }
 0x382   :  { %1228 = vmatpush1.bf16.msra.mxu0 %v2375_v6  ;;  %1269 = vmatpush1.bf16.msra.mxu1 %v2377_v7 }
 0x383   :  { %1340 = vmatprep.subr.bf16.mxu0 %v2278_v34  ;;  %1381 = vmatprep.subr.bf16.mxu1 %v2280_v35 }
 0x425   :  { %v1120_v37 = vpop.f32.mrf.mxu0  ;;  %v1161_v38 = vpop.f32.mrf.mxu1 }
 0x426   :  { %v1168_v54 = vadd.f32 %v1120_v37, %v2916_v28  ;;  %v1170_v35 = vadd.f32 %v1161_v38, %v2919_v13 }
 0x427   :  { %v1122_v36 = vpop.f32.mrf.mxu0  ;;  %v1163_v20 = vpop.f32.mrf.mxu1 }
 0x428   :  { %v1834_v8 = vmul.f32 -1.442695, %v1168_v54  ;;  %v1169_v15 = vadd.f32 %v1122_v36, %v2917_v12  ;;  %v1171_v34 = vadd.f32 %v1163_v20, %v2918_v9 }
 0x429   :  { %v1124_v10 = vpop.f32.mrf.mxu0  ;;  %v1165_v32 = vpop.f32.mrf.mxu1 }
 0x42a   :  { %2016 = vpow2.f32 %v1834_v8  ;;  %v1835_v11 = vmul.f32 -1.442695, %v1169_v15  ;;  %v1836_v33 = vmul.f32 -1.442695, %v1171_v34  ;;  %v2670_v10 = vld [vmem:[#allocation12 + $0xe0] ss:$16 sps:$4 sm:$0xff]  }
 0x42b   :  { %v1125_v45 = vpop.f32.mrf.mxu0  ;;  %v1166_v24 = vpop.f32.mrf.mxu1 }
 0x42c   :  { %2018 = vpow2.f32 %v1835_v11 }
 0x42d   :  { %2020 = vtanh.f32 %v1170_v35 }
 0x42e   :  { %2022 = vpow2.f32 %v1836_v33 }
 0x437   :  { %v2017_v21 = vpop.eup %2016 }
 0x438   :  { %v1175_v23 = vadd.f32 1.0, %v2017_v21 }
 0x439   :  { %v2019_v14 = vpop.eup %2018 }
 0x43a   :  { %2024 = vrcp.f32 %v1175_v23  ;;  %v1181_v3 = vadd.f32 1.0, %v2019_v14  ;;  %v2021_v17 = vpop.eup %2020 }
 0x43b   :  { %v2023_v18 = vpop.eup %2022 }
 0x43c   :  { %2026 = vrcp.f32 %v1181_v3  ;;  %v1188_v30 = vadd.f32 1.0, %v2023_v18  ;;  %v2728_v3 = vld [vmem:[#allocation12 + $0xc4] ss:$16 sps:$4 sm:$0xff]   ;;  %v2736_v18 = vld [vmem:[#allocation12 + $0xc0] ss:$16 sps:$4 sm:$0xff]  }
 0x43e   :  { %2028 = vrcp.f32 %v1188_v30  ;;  %v2748_v30 = vld [vmem:[#allocation12 + $0xa0] ss:$16 sps:$4 sm:$0xff]  }
 0x447   :  { %v2025_v19 = vpop.eup %2024 }
 0x448   :  { %v1192_v25 = vmul.f32 %v2025_v19, %v2021_v17  ;;  %v2731_v17 = vld [vmem:[#allocation12 + $0xcc] ss:$16 sps:$4 sm:$0xff]   ;;  %v2739_v19 = vld [vmem:[#allocation12 + $0xc8] ss:$16 sps:$4 sm:$0xff]  }
 0x449   :  { %v2027_v27 = vpop.eup %2026 }
 0x44a   :  { %v1191_v31 = vmul.f32 %v2027_v27, %v2615_v22  ;;  %v2745_v27 = vld [vmem:[#allocation12 + $0xac] ss:$16 sps:$4 sm:$0xff]  }
 0x44b   :  { %v2029_v28 = vpop.eup %2028 }
 0x44c   :  { %v1193_v37 = vadd.f32 %v1192_v25, %v1191_v31  ;;  %v2742_v25 = vld [vmem:[#allocation12 + $0xa4] ss:$16 sps:$4 sm:$0xff]   ;;  %v2751_v31 = vld [vmem:[#allocation12 + $0xa8] ss:$16 sps:$4 sm:$0xff]  }
 0x44e   :  { %2030 = vtanh.f32 %v1193_v37  ;;  %v2663_v38 = vsel %vm1837_vm3, %v1193_v37, %v2615_v22  ;;  %v2673_v22 = vld [vmem:[#allocation12 + $0xe8] ss:$16 sps:$4 sm:$0xff]   ;;  %v2754_v37 = vld [vmem:[#allocation12 + $0x84] ss:$16 sps:$4 sm:$0xff]  }
 0x45b   :  { %v2031_v54 = vpop.eup %2030 }
 0x45c   :  { %v1195_v36 = vmul.f32 %v2031_v54, %v2029_v28  ;;  %v2760_v28 = vld [vmem:[#allocation12 + $0x80] ss:$16 sps:$4 sm:$0xff]   ;;  %v2763_v54 = vld [vmem:[#allocation12 + $0x88] ss:$16 sps:$4 sm:$0xff]  }
 0x45e   :  { %v2666_v20 = vsel %vm1837_vm3, %v1195_v36, %v2618_v16  ;;  %v1201_v8 = vsel %vm1837_vm3, %v1195_v36, 0.0  ;;  %v2766_v36 = vld [vmem:[#allocation12 + $0x64] ss:$16 sps:$4 sm:$0xff]  }
 0x45f   :  { %v1202_v12 = vpack.c.bf16 %v1201_v8, %v1201_v8  ;;  %v1212_v15 = vpack.c.bf16 %v2666_v20, %v2666_v20  ;;  %v2772_v8 = vld [vmem:[#allocation12 + $0x60] ss:$16 sps:$4 sm:$0xff]  }
 0x461   :  { %1204 = vst [vmem:[#allocation13 + $0xc] sm:$0xf] %v1202_v12  ;;  %1246 = vmatmul.mubr.bf16.vlgmr.msra.gmra.mxu0 %v1212_v15  ;;  %1287 = vmatmul.mubr.bf16.vlgmr.msra.gmra.mxu1 %v1212_v15  ;;  %v2775_v12 = vld [vmem:[#allocation12 + $0x68] ss:$16 sps:$4 sm:$0xff]   ;;  %v2778_v15 = vld [vmem:[#allocation12 + $0x44] ss:$16 sps:$4 sm:$0xff]  }
 0x462   :  { %1341 = vmatpush1.bf16.msra.mxu0 %v2670_v10  ;;  %1382 = vmatpush1.bf16.msra.mxu1 %v2673_v22 }
 0x463   :  { %1342 = vmatprep.subr.bf16.mxu0 %v2288_v39  ;;  %1383 = vmatprep.subr.bf16.mxu1 %v2290_v40  ;;  %v2706_v39 = vld [vmem:[#allocation12 + $0xe4] ss:$16 sps:$4 sm:$0xff]   ;;  %v2709_v40 = vld [vmem:[#allocation12 + $0xec] ss:$16 sps:$4 sm:$0xff]  }
 0x464   :  { %1372 = vmatprep.mubr.bf16.mxu0 %v2913_v26  ;;  %1413 = vmatprep.mubr.bf16.mxu1 %v2913_v26 }
 0x466   :  { %1343 = vmatpush1.bf16.msra.mxu0 %v2292_v41  ;;  %1384 = vmatpush1.bf16.msra.mxu1 %v2296_v42 }
 0x467   :  { %1344 = vmatprep.subr.bf16.mxu0 %v2300_v43  ;;  %1385 = vmatprep.subr.bf16.mxu1 %v2302_v44  ;;  %v2920_v43 = vld [vmem:[#allocation23_spill] sm:$0xff] }
 0x46a   :  { %1345 = vmatpush1.bf16.msra.mxu0 %v2306_v46  ;;  %1386 = vmatpush1.bf16.msra.mxu1 %v2308_v47 }
 0x46b   :  { %1346 = vmatprep.subr.bf16.mxu0 %v2312_v48  ;;  %1387 = vmatprep.subr.bf16.mxu1 %v2316_v49  ;;  %v2921_v49 = vld [vmem:[#allocation25_spill] sm:$0xff] }
 0x46e   :  { %1347 = vmatpush1.bf16.msra.mxu0 %v2318_v50  ;;  %1388 = vmatpush1.bf16.msra.mxu1 %v2320_v51 }
 0x46f   :  { %1348 = vmatprep.subr.bf16.mxu0 %v2324_v52  ;;  %1389 = vmatprep.subr.bf16.mxu1 %v2328_v53 }
 0x472   :  { %1349 = vmatpush1.bf16.msra.mxu0 %v2337_v56  ;;  %1390 = vmatpush1.bf16.msra.mxu1 %v2339_v57 }
 0x473   :  { %1350 = vmatprep.subr.bf16.mxu0 %v2343_v58  ;;  %1391 = vmatprep.subr.bf16.mxu1 %v2345_v59  ;;  %v2922_v58 = vld [vmem:[#allocation26_spill] sm:$0xff] }
 0x476   :  { %1351 = vmatpush1.bf16.msra.mxu0 %v2349_v60  ;;  %1392 = vmatpush1.bf16.msra.mxu1 %v2351_v61  ;;  %v2923_v60 = vld [vmem:[#allocation24_spill] sm:$0xff] }
 0x477   :  { %1352 = vmatprep.subr.bf16.mxu0 %v2355_v62  ;;  %1393 = vmatprep.subr.bf16.mxu1 %v2357_v63 }
 0x47a   :  { %1353 = vmatpush1.bf16.msra.mxu0 %v2363_v1  ;;  %1394 = vmatpush1.bf16.msra.mxu1 %v2365_v2 }
 0x47b   :  { %1354 = vmatprep.subr.bf16.mxu0 %v2369_v4  ;;  %1395 = vmatprep.subr.bf16.mxu1 %v2371_v5 }
 0x47e   :  { %1355 = vmatpush1.bf16.msra.mxu0 %v2375_v6  ;;  %1396 = vmatpush1.bf16.msra.mxu1 %v2377_v7 }
 0x47f   :  { %1467 = vmatprep.subr.bf16.mxu0 %v2706_v39  ;;  %1508 = vmatprep.subr.bf16.mxu1 %v2709_v40 }
 0x521   :  { %v1247_v41 = vpop.f32.mrf.mxu0  ;;  %v1288_v42 = vpop.f32.mrf.mxu1 }
 0x522   :  { %v1295_v44 = vadd.f32 %v1247_v41, %v2920_v43  ;;  %v1297_v61 = vadd.f32 %v1288_v42, %v2923_v60  ;;  %v2781_v41 = vld [vmem:[#allocation12 + $0x4c] ss:$16 sps:$4 sm:$0xff]   ;;  %v2784_v42 = vld [vmem:[#allocation12 + $0x40] ss:$16 sps:$4 sm:$0xff]   ;;  %v2787_v43 = vld [vmem:[#allocation12 + $0x48] ss:$16 sps:$4 sm:$0xff]  }
 0x523   :  { %v1249_v46 = vpop.f32.mrf.mxu0  ;;  %v1290_v47 = vpop.f32.mrf.mxu1 }
 0x524   :  { %v1838_v48 = vmul.f32 -1.442695, %v1295_v44  ;;  %v1296_v50 = vadd.f32 %v1249_v46, %v2921_v49  ;;  %v1298_v59 = vadd.f32 %v1290_v47, %v2922_v58  ;;  %v2790_v44 = vld [vmem:[#allocation12 + $0x24] ss:$16 sps:$4 sm:$0xff]   ;;  %v2793_v46 = vld [vmem:[#allocation12 + $0x2c] ss:$16 sps:$4 sm:$0xff]  }
 0x525   :  { %v1251_v51 = vpop.f32.mrf.mxu0  ;;  %v1292_v52 = vpop.f32.mrf.mxu1  ;;  %v2796_v47 = vld [vmem:[#allocation12 + $0x20] ss:$16 sps:$4 sm:$0xff]   ;;  %v2802_v49 = vld [vmem:[#allocation12 + $0x4] ss:$16 sps:$4 sm:$0xff]  }
 0x526   :  { %2032 = vpow2.f32 %v1838_v48  ;;  %v1839_v53 = vmul.f32 -1.442695, %v1296_v50  ;;  %v1840_v62 = vmul.f32 -1.442695, %v1298_v59  ;;  %v2799_v48 = vld [vmem:[#allocation12 + $0x28] ss:$16 sps:$4 sm:$0xff]  }
 0x527   :  { %v1252_v56 = vpop.f32.mrf.mxu0  ;;  %v1293_v57 = vpop.f32.mrf.mxu1  ;;  %v2805_v50 = vld [vmem:[#allocation12 + $0xc] ss:$16 sps:$4 sm:$0xff]   ;;  %v2808_v51 = vld [vmem:[#allocation12] ss:$16 sps:$4 sm:$0xff]   ;;  %v2811_v52 = vld [vmem:[#allocation12 + $0x8] ss:$16 sps:$4 sm:$0xff]  }
 0x528   :  { %2034 = vpow2.f32 %v1839_v53  ;;  %v2924_v57 = vld [vmem:[#allocation27_spill] sm:$0xff] }
 0x529   :  { %2036 = vtanh.f32 %v1297_v61 }
 0x52a   :  { %2038 = vpow2.f32 %v1840_v62  ;;  %v2925_v62 = vld [vmem:[#allocation29_spill] sm:$0xff] }
 0x533   :  { %v2033_v63 = vpop.eup %2032 }
 0x534   :  { %v1302_v1 = vadd.f32 1.0, %v2033_v63 }
 0x535   :  { %v2035_v2 = vpop.eup %2034 }
 0x536   :  { %2040 = vrcp.f32 %v1302_v1  ;;  %v1308_v4 = vadd.f32 1.0, %v2035_v2  ;;  %v2037_v5 = vpop.eup %2036 }
 0x537   :  { %v2039_v6 = vpop.eup %2038 }
 0x538   :  { %2042 = vrcp.f32 %v1308_v4  ;;  %v1315_v11 = vadd.f32 1.0, %v2039_v6 }
 0x53a   :  { %2044 = vrcp.f32 %v1315_v11 }
 0x543   :  { %v2041_v7 = vpop.eup %2040 }
 0x544   :  { %v1319_v16 = vmul.f32 %v2041_v7, %v2037_v5  ;;  %v2926_v7 = vld [vmem:[#allocation30_spill] sm:$0xff] }
 0x545   :  { %v2043_v32 = vpop.eup %2042 }
 0x546   :  { %v1318_v45 = vmul.f32 %v2043_v32, %v2663_v38 }
 0x547   :  { %v2045_v34 = vpop.eup %2044 }
 0x548   :  { %v1320_v24 = vadd.f32 %v1319_v16, %v1318_v45  ;;  %v2927_v16 = vld [vmem:[#allocation28_spill] sm:$0xff] }
 0x54a   :  { %2046 = vtanh.f32 %v1320_v24  ;;  %v2719_v9 = vsel %vm1841_vm4, %v1320_v24, %v2663_v38  ;;  %v2757_v38 = vld [vmem:[#allocation12 + $0x8c] ss:$16 sps:$4 sm:$0xff]  }
 0x557   :  { %v2047_v13 = vpop.eup %2046 }
 0x558   :  { %v1322_v35 = vmul.f32 %v2047_v13, %v2045_v34 }
 0x55a   :  { %v2722_v33 = vsel %vm1841_vm4, %v1322_v35, %v2666_v20  ;;  %v1328_v21 = vsel %vm1841_vm4, %v1322_v35, 0.0  ;;  %v2769_v20 = vld [vmem:[#allocation12 + $0x6c] ss:$16 sps:$4 sm:$0xff]  }
 0x55b   :  { %v1329_v23 = vpack.c.bf16 %v1328_v21, %v1328_v21  ;;  %v1339_v14 = vpack.c.bf16 %v2722_v33, %v2722_v33 }
 0x55d   :  { %1331 = vst [vmem:[#allocation13 + $0x10] sm:$0xf] %v1329_v23  ;;  %1373 = vmatmul.mubr.bf16.vlgmr.msra.gmra.mxu0 %v1339_v14  ;;  %1414 = vmatmul.mubr.bf16.vlgmr.msra.gmra.mxu1 %v1339_v14 }
 0x55e   :  { %1468 = vmatpush1.bf16.msra.mxu0 %v2670_v10  ;;  %1509 = vmatpush1.bf16.msra.mxu1 %v2673_v22 }
 0x55f   :  { %1469 = vmatprep.subr.bf16.mxu0 %v2728_v3  ;;  %1510 = vmatprep.subr.bf16.mxu1 %v2731_v17 }
 0x560   :  { %1499 = vmatprep.mubr.bf16.mxu0 %v2913_v26  ;;  %1540 = vmatprep.mubr.bf16.mxu1 %v2913_v26 }
 0x562   :  { %1470 = vmatpush1.bf16.msra.mxu0 %v2736_v18  ;;  %1511 = vmatpush1.bf16.msra.mxu1 %v2739_v19 }
 0x563   :  { %1471 = vmatprep.subr.bf16.mxu0 %v2742_v25  ;;  %1512 = vmatprep.subr.bf16.mxu1 %v2745_v27 }
 0x566   :  { %1472 = vmatpush1.bf16.msra.mxu0 %v2748_v30  ;;  %1513 = vmatpush1.bf16.msra.mxu1 %v2751_v31 }
 0x567   :  { %1473 = vmatprep.subr.bf16.mxu0 %v2754_v37  ;;  %1514 = vmatprep.subr.bf16.mxu1 %v2757_v38 }
 0x56a   :  { %1474 = vmatpush1.bf16.msra.mxu0 %v2760_v28  ;;  %1515 = vmatpush1.bf16.msra.mxu1 %v2763_v54 }
 0x56b   :  { %1475 = vmatprep.subr.bf16.mxu0 %v2766_v36  ;;  %1516 = vmatprep.subr.bf16.mxu1 %v2769_v20 }
 0x56e   :  { %1476 = vmatpush1.bf16.msra.mxu0 %v2772_v8  ;;  %1517 = vmatpush1.bf16.msra.mxu1 %v2775_v12 }
 0x56f   :  { %1477 = vmatprep.subr.bf16.mxu0 %v2778_v15  ;;  %1518 = vmatprep.subr.bf16.mxu1 %v2781_v41 }
 0x572   :  { %1478 = vmatpush1.bf16.msra.mxu0 %v2784_v42  ;;  %1519 = vmatpush1.bf16.msra.mxu1 %v2787_v43 }
 0x573   :  { %1479 = vmatprep.subr.bf16.mxu0 %v2790_v44  ;;  %1520 = vmatprep.subr.bf16.mxu1 %v2793_v46 }
 0x576   :  { %1480 = vmatpush1.bf16.msra.mxu0 %v2796_v47  ;;  %1521 = vmatpush1.bf16.msra.mxu1 %v2799_v48 }
 0x577   :  { %1481 = vmatprep.subr.bf16.mxu0 %v2802_v49  ;;  %1522 = vmatprep.subr.bf16.mxu1 %v2805_v50 }
 0x57a   :  { %1482 = vmatpush1.bf16.msra.mxu0 %v2808_v51  ;;  %1523 = vmatpush1.bf16.msra.mxu1 %v2811_v52 }
 0x57b   :  { %1594 = vmatprep.subr.bf16.mxu0 %v2706_v39  ;;  %1635 = vmatprep.subr.bf16.mxu1 %v2709_v40 }
 0x61d   :  { %v1374_v53 = vpop.f32.mrf.mxu0  ;;  %v1415_v56 = vpop.f32.mrf.mxu1 }
 0x61e   :  { %v1422_v58 = vadd.f32 %v1374_v53, %v2924_v57  ;;  %v1424_v40 = vadd.f32 %v1415_v56, %v2927_v16 }
 0x61f   :  { %v1376_v59 = vpop.f32.mrf.mxu0  ;;  %v1417_v60 = vpop.f32.mrf.mxu1 }
 0x620   :  { %v1842_v61 = vmul.f32 -1.442695, %v1422_v58  ;;  %v1423_v63 = vadd.f32 %v1376_v59, %v2925_v62  ;;  %v1425_v39 = vadd.f32 %v1417_v60, %v2926_v7 }
 0x621   :  { %v1378_v1 = vpop.f32.mrf.mxu0  ;;  %v1419_v2 = vpop.f32.mrf.mxu1 }
 0x622   :  { %2048 = vpow2.f32 %v1842_v61  ;;  %v1843_v4 = vmul.f32 -1.442695, %v1423_v63  ;;  %v1844_v32 = vmul.f32 -1.442695, %v1425_v39 }
 0x623   :  { %v1379_v5 = vpop.f32.mrf.mxu0  ;;  %v1420_v6 = vpop.f32.mrf.mxu1 }
 0x624   :  { %2050 = vpow2.f32 %v1843_v4 }
 0x625   :  { %2052 = vtanh.f32 %v1424_v40 }
 0x626   :  { %2054 = vpow2.f32 %v1844_v32 }
 0x62f   :  { %v2049_v11 = vpop.eup %2048 }
 0x630   :  { %v1429_v45 = vadd.f32 1.0, %v2049_v11  ;;  %v2932_v11 = vld [vmem:[#allocation35_spill] sm:$0xff] }
 0x631   :  { %v2051_v24 = vpop.eup %2050 }
 0x632   :  { %2056 = vrcp.f32 %v1429_v45  ;;  %v1435_v34 = vadd.f32 1.0, %v2051_v24  ;;  %v2053_v13 = vpop.eup %2052 }
 0x633   :  { %v2055_v35 = vpop.eup %2054 }
 0x634   :  { %2058 = vrcp.f32 %v1435_v34  ;;  %v1442_v53 = vadd.f32 1.0, %v2055_v35 }
 0x636   :  { %2060 = vrcp.f32 %v1442_v53 }
 0x63f   :  { %v2057_v21 = vpop.eup %2056 }
 0x640   :  { %v1446_v23 = vmul.f32 %v2057_v21, %v2053_v13 }
 0x641   :  { %v2059_v14 = vpop.eup %2058 }
 0x642   :  { %v1445_v57 = vmul.f32 %v2059_v14, %v2719_v9 }
 0x643   :  { %v2061_v59 = vpop.eup %2060 }
 0x644   :  { %v1447_v58 = vadd.f32 %v1446_v23, %v1445_v57 }
 0x646   :  { %2062 = vtanh.f32 %v1447_v58  ;;  %v2823_v56 = vsel %vm1845_vm5, %v1447_v58, %v2719_v9 }
 0x653   :  { %v2063_v60 = vpop.eup %2062 }
 0x654   :  { %v1449_v61 = vmul.f32 %v2063_v60, %v2061_v59 }
 0x656   :  { %v2826_v62 = vsel %vm1845_vm5, %v1449_v61, %v2722_v33  ;;  %v1455_v63 = vsel %vm1845_vm5, %v1449_v61, 0.0 }
 0x657   :  { %v1456_v1 = vpack.c.bf16 %v1455_v63, %v1455_v63  ;;  %v1466_v2 = vpack.c.bf16 %v2826_v62, %v2826_v62 }
 0x659   :  { %1458 = vst [vmem:[#allocation13 + $0x14] sm:$0xf] %v1456_v1  ;;  %1500 = vmatmul.mubr.bf16.vlgmr.msra.gmra.mxu0 %v1466_v2  ;;  %1541 = vmatmul.mubr.bf16.vlgmr.msra.gmra.mxu1 %v1466_v2 }
 0x65a   :  { %1595 = vmatpush1.bf16.msra.mxu0 %v2670_v10  ;;  %1636 = vmatpush1.bf16.msra.mxu1 %v2673_v22  ;;  %v2928_v22 = vld [vmem:[#allocation31_spill] sm:$0xff] }
 0x65b   :  { %1596 = vmatprep.subr.bf16.mxu0 %v2728_v3  ;;  %1637 = vmatprep.subr.bf16.mxu1 %v2731_v17 }
 0x65c   :  { %1626 = vmatprep.mubr.bf16.mxu0 %v2913_v26  ;;  %1667 = vmatprep.mubr.bf16.mxu1 %v2913_v26 }
 0x65e   :  { %1597 = vmatpush1.bf16.msra.mxu0 %v2736_v18  ;;  %1638 = vmatpush1.bf16.msra.mxu1 %v2739_v19  ;;  %v2929_v18 = vld [vmem:[#allocation33_spill] sm:$0xff] }
 0x65f   :  { %1598 = vmatprep.subr.bf16.mxu0 %v2742_v25  ;;  %1639 = vmatprep.subr.bf16.mxu1 %v2745_v27 }
 0x662   :  { %1599 = vmatpush1.bf16.msra.mxu0 %v2748_v30  ;;  %1640 = vmatpush1.bf16.msra.mxu1 %v2751_v31 }
 0x663   :  { %1600 = vmatprep.subr.bf16.mxu0 %v2754_v37  ;;  %1641 = vmatprep.subr.bf16.mxu1 %v2757_v38  ;;  %v2930_v38 = vld [vmem:[#allocation34_spill] sm:$0xff] }
 0x666   :  { %1601 = vmatpush1.bf16.msra.mxu0 %v2760_v28  ;;  %1642 = vmatpush1.bf16.msra.mxu1 %v2763_v54  ;;  %v2931_v54 = vld [vmem:[#allocation32_spill] sm:$0xff] }
 0x667   :  { %1602 = vmatprep.subr.bf16.mxu0 %v2766_v36  ;;  %1643 = vmatprep.subr.bf16.mxu1 %v2769_v20 }
 0x66a   :  { %1603 = vmatpush1.bf16.msra.mxu0 %v2772_v8  ;;  %1644 = vmatpush1.bf16.msra.mxu1 %v2775_v12 }
 0x66b   :  { %1604 = vmatprep.subr.bf16.mxu0 %v2778_v15  ;;  %1645 = vmatprep.subr.bf16.mxu1 %v2781_v41 }
 0x66e   :  { %1605 = vmatpush1.bf16.msra.mxu0 %v2784_v42  ;;  %1646 = vmatpush1.bf16.msra.mxu1 %v2787_v43 }
 0x66f   :  { %1606 = vmatprep.subr.bf16.mxu0 %v2790_v44  ;;  %1647 = vmatprep.subr.bf16.mxu1 %v2793_v46 }
 0x672   :  { %1607 = vmatpush1.bf16.msra.mxu0 %v2796_v47  ;;  %1648 = vmatpush1.bf16.msra.mxu1 %v2799_v48 }
 0x673   :  { %1608 = vmatprep.subr.bf16.mxu0 %v2802_v49  ;;  %1649 = vmatprep.subr.bf16.mxu1 %v2805_v50 }
 0x676   :  { %1609 = vmatpush1.bf16.msra.mxu0 %v2808_v51  ;;  %1650 = vmatpush1.bf16.msra.mxu1 %v2811_v52 }
 0x719   :  { %v1501_v26 = vpop.f32.mrf.mxu0  ;;  %v1542_v10 = vpop.f32.mrf.mxu1 }
 0x71a   :  { %v1549_v9 = vadd.f32 %v1501_v26, %v2928_v22  ;;  %v1551_v36 = vadd.f32 %v1542_v10, %v2931_v54 }
 0x71b   :  { %v1503_v33 = vpop.f32.mrf.mxu0  ;;  %v1544_v3 = vpop.f32.mrf.mxu1 }
 0x71c   :  { %v1846_v17 = vmul.f32 -1.442695, %v1549_v9  ;;  %v1550_v19 = vadd.f32 %v1503_v33, %v2929_v18  ;;  %v1552_v28 = vadd.f32 %v1544_v3, %v2930_v38 }
 0x71d   :  { %v1505_v25 = vpop.f32.mrf.mxu0  ;;  %v1546_v27 = vpop.f32.mrf.mxu1 }
 0x71e   :  { %2064 = vpow2.f32 %v1846_v17  ;;  %v1847_v30 = vmul.f32 -1.442695, %v1550_v19  ;;  %v1848_v20 = vmul.f32 -1.442695, %v1552_v28 }
 0x71f   :  { %v1506_v31 = vpop.f32.mrf.mxu0  ;;  %v1547_v37 = vpop.f32.mrf.mxu1 }
 0x720   :  { %2066 = vpow2.f32 %v1847_v30 }
 0x721   :  { %2068 = vtanh.f32 %v1551_v36 }
 0x722   :  { %2070 = vpow2.f32 %v1848_v20 }
 0x72b   :  { %v2065_v8 = vpop.eup %2064 }
 0x72c   :  { %v1556_v12 = vadd.f32 1.0, %v2065_v8 }
 0x72d   :  { %v2067_v15 = vpop.eup %2066 }
 0x72e   :  { %2072 = vrcp.f32 %v1556_v12  ;;  %v1562_v41 = vadd.f32 1.0, %v2067_v15  ;;  %v2069_v42 = vpop.eup %2068 }
 0x72f   :  { %v2071_v43 = vpop.eup %2070 }
 0x730   :  { %2074 = vrcp.f32 %v1562_v41  ;;  %v1569_v48 = vadd.f32 1.0, %v2071_v43 }
 0x732   :  { %2076 = vrcp.f32 %v1569_v48 }
 0x73b   :  { %v2073_v44 = vpop.eup %2072 }
 0x73c   :  { %v1573_v46 = vmul.f32 %v2073_v44, %v2069_v42 }
 0x73d   :  { %v2075_v47 = vpop.eup %2074 }
 0x73e   :  { %v1572_v49 = vmul.f32 %v2075_v47, %v2823_v56 }
 0x73f   :  { %v2077_v52 = vpop.eup %2076 }
 0x740   :  { %v1574_v50 = vadd.f32 %v1573_v46, %v1572_v49 }
 0x742   :  { %2078 = vtanh.f32 %v1574_v50  ;;  %v1581_v51 = vsel %vm1849_vm6, %v1574_v50, %v2823_v56  ;;  %v2933_v56 = vld [vmem:[#allocation36_spill] sm:$0xff] }
 0x74f   :  { %v2079_v4 = vpop.eup %2078 }
 0x750   :  { %v1576_v5 = vmul.f32 %v2079_v4, %v2077_v52 }
 0x752   :  { %v1580_v6 = vsel %vm1849_vm6, %v1576_v5, %v2826_v62  ;;  %v1582_v7 = vsel %vm1849_vm6, %v1576_v5, 0.0 }
 0x753   :  { %v1583_v39 = vpack.c.bf16 %v1582_v7, %v1582_v7  ;;  %v1593_v16 = vpack.c.bf16 %v1580_v6, %v1580_v6 }
 0x755   :  { %1585 = vst [vmem:[#allocation13 + $0x18] sm:$0xf] %v1583_v39  ;;  %1627 = vmatmul.mubr.bf16.vlgmr.msra.gmra.mxu0 %v1593_v16  ;;  %1668 = vmatmul.mubr.bf16.vlgmr.msra.gmra.mxu1 %v1593_v16 }
 0x815   :  { %v1628_v40 = vpop.f32.mrf.mxu0  ;;  %v1669_v32 = vpop.f32.mrf.mxu1 }
 0x816   :  { %v1676_v45 = vadd.f32 %v1628_v40, %v2932_v11  ;;  %v1678_v59 = vadd.f32 %v1669_v32, %v2933_v56 }
 0x817   :  { %v1630_v24 = vpop.f32.mrf.mxu0  ;;  %v1671_v34 = vpop.f32.mrf.mxu1 }
 0x818   :  { %v1850_v13 = vmul.f32 -1.442695, %v1676_v45  ;;  %v1677_v35 = vadd.f32 %v1630_v24, %v2506_v55  ;;  %v1679_v58 = vadd.f32 %v1671_v34, %v2509_v0 }
 0x819   :  { %v1632_v21 = vpop.f32.mrf.mxu0  ;;  %v1673_v23 = vpop.f32.mrf.mxu1 }
 0x81a   :  { %2080 = vpow2.f32 %v1850_v13  ;;  %v1851_v14 = vmul.f32 -1.442695, %v1677_v35  ;;  %v1852_v60 = vmul.f32 -1.442695, %v1679_v58 }
 0x81b   :  { %v1633_v53 = vpop.f32.mrf.mxu0  ;;  %v1674_v57 = vpop.f32.mrf.mxu1 }
 0x81c   :  { %2082 = vpow2.f32 %v1851_v14 }
 0x81d   :  { %2084 = vtanh.f32 %v1678_v59 }
 0x81e   :  { %2086 = vpow2.f32 %v1852_v60 }
 0x827   :  { %v2081_v61 = vpop.eup %2080 }
 0x828   :  { %v1683_v62 = vadd.f32 1.0, %v2081_v61 }
 0x829   :  { %v2083_v63 = vpop.eup %2082 }
 0x82a   :  { %2088 = vrcp.f32 %v1683_v62  ;;  %v1689_v1 = vadd.f32 1.0, %v2083_v63  ;;  %v2085_v55 = vpop.eup %2084 }
 0x82b   :  { %v2087_v2 = vpop.eup %2086 }
 0x82c   :  { %2090 = vrcp.f32 %v1689_v1  ;;  %v1696_v9 = vadd.f32 1.0, %v2087_v2 }
 0x82e   :  { %2092 = vrcp.f32 %v1696_v9 }
 0x837   :  { %v2089_v26 = vpop.eup %2088 }
 0x838   :  { %v1700_v10 = vmul.f32 %v2089_v26, %v2085_v55 }
 0x839   :  { %v2091_v22 = vpop.eup %2090 }
 0x83a   :  { %v1699_v33 = vmul.f32 %v2091_v22, %v1581_v51 }
 0x83b   :  { %v2093_v17 = vpop.eup %2092 }
 0x83c   :  { %v1701_v3 = vadd.f32 %v1700_v10, %v1699_v33 }
 0x83e   :  { %2094 = vtanh.f32 %v1701_v3  ;;  %v1708_v0 = vsel %vm1853_vm7, %v1701_v3, %v1581_v51 }
 0x83f   :  { %1714 = vst [vmem:[#allocation3] sm:$0xff] %v1708_v0 }
 0x84b   :  { %v2095_v18 = vpop.eup %2094 }
 0x84c   :  { %v1703_v19 = vmul.f32 %v2095_v18, %v2093_v17 }
 0x84e   :  { %v1707_v25 = vsel %vm1853_vm7, %v1703_v19, %v1580_v6  ;;  %v1709_v27 = vsel %vm1853_vm7, %v1703_v19, 0.0 }
 0x84f   :  { %v1710_v30 = vpack.c.bf16 %v1709_v27, %v1709_v27  ;;  %1713 = vst [vmem:[#allocation2] sm:$0xff] %v1707_v25 }
 0x851   :  { %1712 = vst [vmem:[#allocation13 + $0x1c] sm:$0xf] %v1710_v30 }
 0x852 PF:  { %p1855_p2 = scmp.gt.s32.totalorder %s2884_s0, 0 }
 0x854   :  { %1718 = sbr.rel (%p1855_p2) target bundleno = 2142 (0x85e), region = 45 }
 0x859   :  { %v2223_v31 = vmov 0  }
 0x85a   :  { %1719 = vst [vmem:[#allocation13] sm:$0xf] %v2223_v31  ;;  %1720 = vst [vmem:[#allocation13 + $0x4] sm:$0xf] %v2223_v31 }
 0x85b   :  { %1721 = vst [vmem:[#allocation13 + $0x8] sm:$0xf] %v2223_v31  ;;  %1722 = vst [vmem:[#allocation13 + $0xc] sm:$0xf] %v2223_v31 }
 0x85c   :  { %1723 = vst [vmem:[#allocation13 + $0x10] sm:$0xf] %v2223_v31  ;;  %1724 = vst [vmem:[#allocation13 + $0x14] sm:$0xf] %v2223_v31 }
 0x85d   :  { %1725 = vst [vmem:[#allocation13 + $0x18] sm:$0xf] %v2223_v31  ;;  %1726 = vst [vmem:[#allocation13 + $0x1c] sm:$0xf] %v2223_v31 }
 0x85e PF:  { %s2224_s19 = smov [#allocation13]  }
 0x85f   :  { %s1732_s20 = sshll.u32 %s2224_s19, 4  ;;  %s1733_s20 = int_to_ptr.vmem [resolvable:$true] %s1732_s20 }
 0x860   :  { %s2188_s21 = scalar_lea.vmem %s1733_s20, 512  ;;  %p2193_p4 = scmp.lt.s32.totalorder %s1733_s20, %s1733_s20 }
 0x861   :  { %p2189_p3 = scmp.ne.s32.totalorder %s1733_s20, %s2188_s21  ;;  %p2194_p5 = scmp.lt.s32.totalorder %s2188_s21, %s2188_s21 }
 0x863   :  { %p2195_p6 = por %p2194_p5, %p2193_p4 }
 0x865   :  { %p2196_p7 = pnand %p2195_p6, %p2189_p3 }
 0x867   :  { %2199 = shalt.err (!%p2196_p7)
}
 0x868   :  { %1738 = dma.vmem_to_hbm [thread:$0]  %s1733_s20, 512, %s2890_s6, [#allocation9], %s2218_s7, %s2218_s7, %s2219_s8  }
 0x869   :  { %2212 = dma.done.wait [#allocation9], 512  }
 0x86a   :  { %2213 = vsyncadd [#allocation9], 4294966784 }
 0x86b   :  { %1742 = vsyncpa [#allocation8], 1 }
 0x86c   :  { %1743 = vsyncpa [#allocation11], 1 }
 0x86d   :  { %1744 = vsyncpa [#allocation9], 1 }

// kernel: tpu_custom_call.1
= control target key start
LH: loop header
LB: loop body
LE: loop exit
PB: predicated region body
PF: predicated region fallthrough
CT: control target
= control target key end

     0   :  { %12 = vsyncpa [#allocation8], 0  ;;  %s2884_s0 = inlined_call_operand.<no memory space> [shape: s32[1], index: 0, kind: input, shape index: {}]   ;;  %s2885_s1 = inlined_call_operand.vmem [shape: s32[8,1], index: 1, kind: input, shape index: {}]   ;;  %s2886_s2 = inlined_call_operand.hbm [shape: bf16[8,8,128], index: 2, kind: input, shape index: {}]   ;;  %s2887_s3 = inlined_call_operand.hbm [shape: bf16[128,512], index: 3, kind: input, shape index: {}]   ;;  %s2888_s4 = inlined_call_operand.hbm [shape: bf16[128,512], index: 4, kind: input, shape index: {}]   ;;  %s2889_s5 = inlined_call_operand.vmem [shape: f32[1,512], index: 5, kind: input, shape index: {}]   ;;  %s2890_s6 = inlined_call_operand.hbm [shape: bf16[8,8,128], index: 6, kind: output, shape index: {}]  }
   0x1   :  { %13 = vsyncpa [#allocation11], 0 }
   0x2   :  { %14 = vsyncpa [#allocation9], 0  ;;  %s2214_s21 = smov [#allocation10]  }
   0x3   :  { %s34_s22 = sshll.u32 %s2214_s21, 4  ;;  %s35_s22 = int_to_ptr.vmem [resolvable:$true] %s34_s22 }
   0x4   :  { %s2136_s23 = scalar_lea.vmem %s35_s22, 4096  ;;  %p2141_p1 = scmp.lt.s32.totalorder %s35_s22, %s35_s22 }
   0x5   :  { %p2137_p0 = scmp.ne.s32.totalorder %s35_s22, %s2136_s23  ;;  %p2142_p2 = scmp.lt.s32.totalorder %s2136_s23, %s2136_s23 }
   0x7   :  { %p2143_p3 = por %p2142_p2, %p2141_p1 }
   0x9   :  { %p2144_p4 = pnand %p2143_p3, %p2137_p0 }
   0xb   :  { %2147 = shalt.err (!%p2144_p4)
}
   0xc   :  { %s2215_s24 = smov 256   ;;  %s2216_s25 = smov 16  }
   0xd   :  { %40 = dma.hbm_to_vmem [thread:$0]  %s2887_s3, 4096, %s35_s22, [#allocation11], %s2215_s24, %s2215_s24, %s2216_s25  }
   0xe   :  { %s2217_s28 = smov [#allocation7]  }
   0xf   :  { %s22_s29 = sshll.u32 %s2217_s28, 4  ;;  %s23_s29 = int_to_ptr.vmem [resolvable:$true] %s22_s29 }
  0x10   :  { %s2156_s30 = scalar_lea.vmem %s23_s29, 512  ;;  %p2161_p6 = scmp.lt.s32.totalorder %s23_s29, %s23_s29 }
  0x11   :  { %p2157_p5 = scmp.ne.s32.totalorder %s23_s29, %s2156_s30  ;;  %p2162_p7 = scmp.lt.s32.totalorder %s2156_s30, %s2156_s30 }
  0x13   :  { %p2163_p8 = por %p2162_p7, %p2161_p6 }
  0x15   :  { %p2164_p9 = pnand %p2163_p8, %p2157_p5 }
  0x17   :  { %2167 = shalt.err (!%p2164_p9)
}
  0x18   :  { %s2218_s7 = smov 64   ;;  %s2219_s8 = smov 4  }
  0x19   :  { %28 = dma.hbm_to_vmem [thread:$0]  %s2886_s2, 512, %s23_s29, [#allocation8], %s2218_s7, %s2218_s7, %s2219_s8  }
  0x1a   :  { %s2220_s3 = smov [#allocation12]  }
  0x1b   :  { %s46_s11 = sshll.u32 %s2220_s3, 4  ;;  %s47_s11 = int_to_ptr.vmem [resolvable:$true] %s46_s11 }
  0x1c   :  { %s2176_s12 = scalar_lea.vmem %s47_s11, 4096  ;;  %p2181_p11 = scmp.lt.s32.totalorder %s47_s11, %s47_s11 }
  0x1d   :  { %p2177_p10 = scmp.ne.s32.totalorder %s47_s11, %s2176_s12  ;;  %p2182_p12 = scmp.lt.s32.totalorder %s2176_s12, %s2176_s12 }
  0x1f   :  { %p2183_p13 = por %p2182_p12, %p2181_p11 }
  0x21   :  { %p2184_p0 = pnand %p2183_p13, %p2177_p10 }
  0x23   :  { %2187 = shalt.err (!%p2184_p0)
}
  0x24   :  { %52 = dma.hbm_to_vmem [thread:$0]  %s2888_s4, 4096, %s47_s11, [#allocation11], %s2215_s24, %s2215_s24, %s2216_s25  }
  0x25   :  { %2208 = dma.done.wait [#allocation8], 512  }
  0x26   :  { %2209 = vsyncadd [#allocation8], 4294966784 }
  0x27   :  { %2210 = dma.done.wait [#allocation11], 8192  }
  0x28   :  { %2211 = vsyncadd [#allocation11], 4294959104  ;;  %v2221_v0 = vmov 0.0   ;;  %p1753_p1 = scmp.le.s32.totalorder %s2884_s0, 0 }
  0x29   :  { %70 = vst [vmem:[#allocation2] sm:$0xff] %v2221_v0  ;;  %71 = vst [vmem:[#allocation3] sm:$0xff] %v2221_v0 }
  0x2a   :  { %76 = sbr.rel (%p1753_p1) target bundleno = 2130 (0x852), region = 41 }
  0x2f   :  { %v1868_v1 = vld [vmem:[#allocation10 + $0xe4] ss:$16 sps:$4 sm:$0xff]   ;;  %v1870_v2 = vld [vmem:[#allocation10 + $0xec] ss:$16 sps:$4 sm:$0xff]   ;;  %v2891_v3 = vmov 0  }
  0x30   :  { %355 = vmatprep.mubr.bf16.mxu0 %v2891_v3  ;;  %428 = vmatprep.mubr.bf16.mxu1 %v2891_v3  ;;  %v1872_v4 = vld [vmem:[#allocation10 + $0xe0] ss:$16 sps:$4 sm:$0xff]   ;;  %v1873_v5 = vld [vmem:[#allocation10 + $0xe8] ss:$16 sps:$4 sm:$0xff]   ;;  %v1874_v6 = vld [vmem:[#allocation10 + $0xc4] ss:$16 sps:$4 sm:$0xff]  }
  0x31   :  { %323 = vmatprep.subr.bf16.mxu0 %v1868_v1  ;;  %1867 = vset.pattern.permute.xlu0 %v2891_v3  ;;  %v1876_v7 = vld [vmem:[#allocation10 + $0xcc] ss:$16 sps:$4 sm:$0xff]   ;;  %v1878_v8 = vld [vmem:[#allocation10 + $0xc0] ss:$16 sps:$4 sm:$0xff]   ;;  %v1879_v9 = vld [vmem:[#allocation10 + $0xc8] ss:$16 sps:$4 sm:$0xff]  }
  0x32   :  { %396 = vmatprep.subr.bf16.mxu1 %v1870_v2  ;;  %324 = vmatpush1.bf16.msra.mxu0 %v1872_v4  ;;  %v1880_v10 = vld [vmem:[#allocation10 + $0xa4] ss:$16 sps:$4 sm:$0xff]   ;;  %v1882_v11 = vld [vmem:[#allocation10 + $0xac] ss:$16 sps:$4 sm:$0xff]   ;;  %v1884_v12 = vld [vmem:[#allocation10 + $0xa0] ss:$16 sps:$4 sm:$0xff]  }
  0x33   :  { %397 = vmatpush1.bf16.msra.mxu1 %v1873_v5  ;;  %325 = vmatprep.subr.bf16.mxu0 %v1874_v6  ;;  %v1885_v13 = vld [vmem:[#allocation10 + $0xa8] ss:$16 sps:$4 sm:$0xff]   ;;  %v1886_v14 = vld [vmem:[#allocation10 + $0x84] ss:$16 sps:$4 sm:$0xff]   ;;  %v1888_v15 = vld [vmem:[#allocation10 + $0x8c] ss:$16 sps:$4 sm:$0xff]  }
  0x34   :  { %398 = vmatprep.subr.bf16.mxu1 %v1876_v7  ;;  %v1890_v16 = vld [vmem:[#allocation10 + $0x80] ss:$16 sps:$4 sm:$0xff]   ;;  %v1891_v17 = vld [vmem:[#allocation10 + $0x88] ss:$16 sps:$4 sm:$0xff]   ;;  %v1892_v18 = vld [vmem:[#allocation10 + $0x64] ss:$16 sps:$4 sm:$0xff]  }
  0x35   :  { %v1894_v19 = vld [vmem:[#allocation10 + $0x6c] ss:$16 sps:$4 sm:$0xff]   ;;  %v1896_v20 = vld [vmem:[#allocation10 + $0x60] ss:$16 sps:$4 sm:$0xff]   ;;  %v1897_v21 = vld [vmem:[#allocation10 + $0x68] ss:$16 sps:$4 sm:$0xff]  }
  0x36   :  { %326 = vmatpush1.bf16.msra.mxu0 %v1878_v8  ;;  %v1898_v22 = vld [vmem:[#allocation10 + $0x44] ss:$16 sps:$4 sm:$0xff]   ;;  %v1900_v23 = vld [vmem:[#allocation10 + $0x4c] ss:$16 sps:$4 sm:$0xff]   ;;  %v1902_v24 = vld [vmem:[#allocation10 + $0x40] ss:$16 sps:$4 sm:$0xff]  }
  0x37   :  { %399 = vmatpush1.bf16.msra.mxu1 %v1879_v9  ;;  %327 = vmatprep.subr.bf16.mxu0 %v1880_v10  ;;  %v1903_v25 = vld [vmem:[#allocation10 + $0x48] ss:$16 sps:$4 sm:$0xff]   ;;  %v1904_v26 = vld [vmem:[#allocation10 + $0x24] ss:$16 sps:$4 sm:$0xff]   ;;  %v1906_v27 = vld [vmem:[#allocation10 + $0x2c] ss:$16 sps:$4 sm:$0xff]   ;;  %v119_v10 = vlaneseq }
  0x38   :  { %400 = vmatprep.subr.bf16.mxu1 %v1882_v11  ;;  %v1908_v28 = vld [vmem:[#allocation10 + $0x20] ss:$16 sps:$4 sm:$0xff]   ;;  %v1909_v29 = vld [vmem:[#allocation10 + $0x28] ss:$16 sps:$4 sm:$0xff]   ;;  %v1910_v30 = vld [vmem:[#allocation10 + $0x4] ss:$16 sps:$4 sm:$0xff]  }
  0x39   :  { %v1912_v31 = vld [vmem:[#allocation10 + $0xc] ss:$16 sps:$4 sm:$0xff]   ;;  %v1914_v32 = vld [vmem:[#allocation10] ss:$16 sps:$4 sm:$0xff]   ;;  %v1915_v33 = vld [vmem:[#allocation10 + $0x8] ss:$16 sps:$4 sm:$0xff]  }
  0x3a   :  { %328 = vmatpush1.bf16.msra.mxu0 %v1884_v12  ;;  %v2278_v34 = vld [vmem:[#allocation12 + $0xe4] ss:$16 sps:$4 sm:$0xff]   ;;  %v2280_v35 = vld [vmem:[#allocation12 + $0xec] ss:$16 sps:$4 sm:$0xff]   ;;  %v2282_v37 = vld [vmem:[#allocation12 + $0xe0] ss:$16 sps:$4 sm:$0xff]  }
  0x3b   :  { %401 = vmatpush1.bf16.msra.mxu1 %v1885_v13  ;;  %329 = vmatprep.subr.bf16.mxu0 %v1886_v14  ;;  %v1916_v36 = vld [vmem:[#allocation7] sm:$0xff]   ;;  %v2284_v38 = vld [vmem:[#allocation12 + $0xe8] ss:$16 sps:$4 sm:$0xff]   ;;  %v2290_v40 = vld [vmem:[#allocation12 + $0xcc] ss:$16 sps:$4 sm:$0xff]   ;;  %v120_v11 = vshrl.u32 %v119_v10, 7 }
  0x3c   :  { %402 = vmatprep.subr.bf16.mxu1 %v1888_v15  ;;  %v2288_v39 = vld [vmem:[#allocation12 + $0xc4] ss:$16 sps:$4 sm:$0xff]   ;;  %v2292_v41 = vld [vmem:[#allocation12 + $0xc0] ss:$16 sps:$4 sm:$0xff]   ;;  %v2296_v42 = vld [vmem:[#allocation12 + $0xc8] ss:$16 sps:$4 sm:$0xff]  }
  0x3d   :  { %v2300_v43 = vld [vmem:[#allocation12 + $0xa4] ss:$16 sps:$4 sm:$0xff]   ;;  %v2302_v44 = vld [vmem:[#allocation12 + $0xac] ss:$16 sps:$4 sm:$0xff]   ;;  %v2306_v46 = vld [vmem:[#allocation12 + $0xa0] ss:$16 sps:$4 sm:$0xff]  }
  0x3e   :  { %330 = vmatpush1.bf16.msra.mxu0 %v1890_v16  ;;  %v1929_v45 = vld [vmem:[#allocation7 + $0x8] sm:$0xff]   ;;  %v2312_v48 = vld [vmem:[#allocation12 + $0x84] ss:$16 sps:$4 sm:$0xff]   ;;  %v2318_v50 = vld [vmem:[#allocation12 + $0x80] ss:$16 sps:$4 sm:$0xff]   ;;  %v129_v12 = vsub.s32 2, %v120_v11 }
  0x3f   :  { %403 = vmatpush1.bf16.msra.mxu1 %v1891_v17  ;;  %331 = vmatprep.subr.bf16.mxu0 %v1892_v18  ;;  %v2308_v47 = vld [vmem:[#allocation12 + $0xa8] ss:$16 sps:$4 sm:$0xff]   ;;  %v2316_v49 = vld [vmem:[#allocation12 + $0x8c] ss:$16 sps:$4 sm:$0xff]   ;;  %v2324_v52 = vld [vmem:[#allocation12 + $0x64] ss:$16 sps:$4 sm:$0xff]  }
  0x40   :  { %404 = vmatprep.subr.bf16.mxu1 %v1894_v19  ;;  %v2320_v51 = vld [vmem:[#allocation12 + $0x88] ss:$16 sps:$4 sm:$0xff]   ;;  %v2328_v53 = vld [vmem:[#allocation12 + $0x6c] ss:$16 sps:$4 sm:$0xff]   ;;  %v1942_v54 = vld [vmem:[#allocation7 + $0x10] sm:$0xff]   ;;  %v121_v13 = vsub.s32 0, %v120_v11 }
  0x41   :  { %v533_v55 = vld [vmem:[%s2885_s1] sm:$0xff]  ;;  %v2339_v57 = vld [vmem:[#allocation12 + $0x68] ss:$16 sps:$4 sm:$0xff]   ;;  %v2345_v59 = vld [vmem:[#allocation12 + $0x4c] ss:$16 sps:$4 sm:$0xff]   ;;  %v133_v14 = vsub.s32 3, %v120_v11 }
  0x42   :  { %332 = vmatpush1.bf16.msra.mxu0 %v1896_v20  ;;  %v2337_v56 = vld [vmem:[#allocation12 + $0x60] ss:$16 sps:$4 sm:$0xff]   ;;  %v2343_v58 = vld [vmem:[#allocation12 + $0x44] ss:$16 sps:$4 sm:$0xff]   ;;  %535 = vperm.xlu0 %1867, %v533_v55   ;;  %v2351_v61 = vld [vmem:[#allocation12 + $0x48] ss:$16 sps:$4 sm:$0xff]  }
  0x43   :  { %405 = vmatpush1.bf16.msra.mxu1 %v1897_v21  ;;  %333 = vmatprep.subr.bf16.mxu0 %v1898_v22  ;;  %v2349_v60 = vld [vmem:[#allocation12 + $0x40] ss:$16 sps:$4 sm:$0xff]   ;;  %v2355_v62 = vld [vmem:[#allocation12 + $0x24] ss:$16 sps:$4 sm:$0xff]   ;;  %v2357_v63 = vld [vmem:[#allocation12 + $0x2c] ss:$16 sps:$4 sm:$0xff]  }
  0x44   :  { %406 = vmatprep.subr.bf16.mxu1 %v1900_v23  ;;  %v1955_v0 = vld [vmem:[#allocation7 + $0x18] sm:$0xff]   ;;  %v2363_v1 = vld [vmem:[#allocation12 + $0x20] ss:$16 sps:$4 sm:$0xff]   ;;  %v2369_v4 = vld [vmem:[#allocation12 + $0x4] ss:$16 sps:$4 sm:$0xff]   ;;  %v125_v19 = vsub.s32 1, %v120_v11 }
  0x45   :  { %v2365_v2 = vld [vmem:[#allocation12 + $0x28] ss:$16 sps:$4 sm:$0xff]   ;;  %v2371_v5 = vld [vmem:[#allocation12 + $0xc] ss:$16 sps:$4 sm:$0xff]   ;;  %v2375_v6 = vld [vmem:[#allocation12] ss:$16 sps:$4 sm:$0xff]  }
  0x46   :  { %334 = vmatpush1.bf16.msra.mxu0 %v1902_v24  ;;  %v2377_v7 = vld [vmem:[#allocation12 + $0x8] ss:$16 sps:$4 sm:$0xff]   ;;  %v2379_v8 = vld [vmem:[#allocation2] sm:$0xff] }
  0x47   :  { %407 = vmatpush1.bf16.msra.mxu1 %v1903_v25  ;;  %335 = vmatprep.subr.bf16.mxu0 %v1904_v26  ;;  %v546_v9 = vpack.c.bf16 %v2379_v8, %v2379_v8  ;;  %v117_v15 = vld [vmem:[%s2889_s5] sm:$0xf] }
  0x48   :  { %408 = vmatprep.subr.bf16.mxu1 %v1906_v27  ;;  %v2432_v18 = vrot.slane %v117_v15, %v129_v12  ;;  %v122_v22 = vrot.slane %v117_v15, %v121_v13  ;;  %v2438_v23 = vrot.slane %v117_v15, %v133_v14  ;;  %v126_v26 = vrot.slane %v117_v15, %v125_v19 }
  0x4a   :  { %336 = vmatpush1.bf16.msra.mxu0 %v1908_v28 }
  0x4b   :  { %409 = vmatpush1.bf16.msra.mxu1 %v1909_v29  ;;  %337 = vmatprep.subr.bf16.mxu0 %v1910_v30 }
  0x4c   :  { %410 = vmatprep.subr.bf16.mxu1 %v1912_v31 }
  0x4e   :  { %338 = vmatpush1.bf16.msra.mxu0 %v1914_v32 }
  0x4f   :  { %411 = vmatpush1.bf16.msra.mxu1 %v1915_v33  ;;  %707 = vmatprep.subr.bf16.mxu0 %v2278_v34 }
  0x50   :  { %748 = vmatprep.subr.bf16.mxu1 %v2280_v35 }
  0x51   :  { %356 = vmatmul.mubr.bf16.vlgmr.msra.gmra.mxu0 %v1916_v36 }
  0x52   :  { %429 = vmatmul.mubr.bf16.vlgmr.msra.gmra.mxu1 %v1916_v36  ;;  %708 = vmatpush1.bf16.msra.mxu0 %v2282_v37 }
  0x53   :  { %749 = vmatpush1.bf16.msra.mxu1 %v2284_v38  ;;  %709 = vmatprep.subr.bf16.mxu0 %v2288_v39 }
  0x54   :  { %750 = vmatprep.subr.bf16.mxu1 %v2290_v40  ;;  %365 = vmatprep.mubr.bf16.mxu0 %v2891_v3 }
  0x55   :  { %438 = vmatprep.mubr.bf16.mxu1 %v2891_v3 }
  0x56   :  { %710 = vmatpush1.bf16.msra.mxu0 %v2292_v41 }
  0x57   :  { %751 = vmatpush1.bf16.msra.mxu1 %v2296_v42  ;;  %711 = vmatprep.subr.bf16.mxu0 %v2300_v43 }
  0x58   :  { %752 = vmatprep.subr.bf16.mxu1 %v2302_v44 }
  0x59   :  { %366 = vmatmul.mubr.bf16.gmra.mxu0 %v1929_v45 }
  0x5a   :  { %439 = vmatmul.mubr.bf16.gmra.mxu1 %v1929_v45  ;;  %712 = vmatpush1.bf16.msra.mxu0 %v2306_v46 }
  0x5b   :  { %753 = vmatpush1.bf16.msra.mxu1 %v2308_v47  ;;  %713 = vmatprep.subr.bf16.mxu0 %v2312_v48 }
  0x5c   :  { %754 = vmatprep.subr.bf16.mxu1 %v2316_v49  ;;  %375 = vmatprep.mubr.bf16.mxu0 %v2891_v3 }
  0x5d   :  { %448 = vmatprep.mubr.bf16.mxu1 %v2891_v3 }
  0x5e   :  { %714 = vmatpush1.bf16.msra.mxu0 %v2318_v50 }
  0x5f   :  { %755 = vmatpush1.bf16.msra.mxu1 %v2320_v51  ;;  %715 = vmatprep.subr.bf16.mxu0 %v2324_v52 }
  0x60   :  { %756 = vmatprep.subr.bf16.mxu1 %v2328_v53 }
  0x61   :  { %376 = vmatmul.mubr.bf16.gmra.mxu0 %v1942_v54 }
  0x62   :  { %449 = vmatmul.mubr.bf16.gmra.mxu1 %v1942_v54  ;;  %716 = vmatpush1.bf16.msra.mxu0 %v2337_v56 }
  0x63   :  { %757 = vmatpush1.bf16.msra.mxu1 %v2339_v57  ;;  %717 = vmatprep.subr.bf16.mxu0 %v2343_v58 }
  0x64   :  { %758 = vmatprep.subr.bf16.mxu1 %v2345_v59  ;;  %385 = vmatprep.mubr.bf16.mxu0 %v2891_v3 }
  0x65   :  { %458 = vmatprep.mubr.bf16.mxu1 %v2891_v3 }
  0x66   :  { %718 = vmatpush1.bf16.msra.mxu0 %v2349_v60 }
  0x67   :  { %759 = vmatpush1.bf16.msra.mxu1 %v2351_v61  ;;  %719 = vmatprep.subr.bf16.mxu0 %v2355_v62 }
  0x68   :  { %760 = vmatprep.subr.bf16.mxu1 %v2357_v63 }
  0x69   :  { %386 = vmatmul.mubr.bf16.gmra.mxu0 %v1955_v0 }
  0x6a   :  { %459 = vmatmul.mubr.bf16.gmra.mxu1 %v1955_v0  ;;  %720 = vmatpush1.bf16.msra.mxu0 %v2363_v1 }
  0x6b   :  { %761 = vmatpush1.bf16.msra.mxu1 %v2365_v2  ;;  %721 = vmatprep.subr.bf16.mxu0 %v2369_v4 }
  0x6c   :  { %762 = vmatprep.subr.bf16.mxu1 %v2371_v5  ;;  %739 = vmatprep.mubr.bf16.mxu0 %v2891_v3 }
  0x6d   :  { %780 = vmatprep.mubr.bf16.mxu1 %v2891_v3 }
  0x6e   :  { %722 = vmatpush1.bf16.msra.mxu0 %v2375_v6 }
  0x6f   :  { %763 = vmatpush1.bf16.msra.mxu1 %v2377_v7  ;;  %832 = vmatprep.subr.bf16.mxu0 %v2278_v34 }
  0x70   :  { %873 = vmatprep.subr.bf16.mxu1 %v2280_v35 }
  0x71   :  { %740 = vmatmul.mubr.bf16.vlgmr.msra.gmra.mxu0 %v546_v9 }
  0x72   :  { %781 = vmatmul.mubr.bf16.vlgmr.msra.gmra.mxu1 %v546_v9  ;;  %833 = vmatpush1.bf16.msra.mxu0 %v2282_v37 }
  0x73   :  { %874 = vmatpush1.bf16.msra.mxu1 %v2284_v38  ;;  %834 = vmatprep.subr.bf16.mxu0 %v2288_v39 }
  0x74   :  { %875 = vmatprep.subr.bf16.mxu1 %v2290_v40  ;;  %864 = vmatprep.mubr.bf16.mxu0 %v2891_v3 }
  0x75   :  { %905 = vmatprep.mubr.bf16.mxu1 %v2891_v3 }
  0x76   :  { %835 = vmatpush1.bf16.msra.mxu0 %v2292_v41 }
  0x77   :  { %876 = vmatpush1.bf16.msra.mxu1 %v2296_v42  ;;  %836 = vmatprep.subr.bf16.mxu0 %v2300_v43 }
  0x78   :  { %877 = vmatprep.subr.bf16.mxu1 %v2302_v44 }
  0x7a   :  { %837 = vmatpush1.bf16.msra.mxu0 %v2306_v46 }
  0x7b   :  { %878 = vmatpush1.bf16.msra.mxu1 %v2308_v47  ;;  %838 = vmatprep.subr.bf16.mxu0 %v2312_v48 }
  0x7c   :  { %879 = vmatprep.subr.bf16.mxu1 %v2316_v49 }
  0x7e   :  { %839 = vmatpush1.bf16.msra.mxu0 %v2318_v50 }
  0x7f   :  { %880 = vmatpush1.bf16.msra.mxu1 %v2320_v51  ;;  %840 = vmatprep.subr.bf16.mxu0 %v2324_v52 }
  0x80   :  { %881 = vmatprep.subr.bf16.mxu1 %v2328_v53 }
  0x82   :  { %841 = vmatpush1.bf16.msra.mxu0 %v2337_v56 }
  0x83   :  { %882 = vmatpush1.bf16.msra.mxu1 %v2339_v57  ;;  %842 = vmatprep.subr.bf16.mxu0 %v2343_v58 }
  0x84   :  { %883 = vmatprep.subr.bf16.mxu1 %v2345_v59 }
  0x86   :  { %843 = vmatpush1.bf16.msra.mxu0 %v2349_v60 }
  0x87   :  { %884 = vmatpush1.bf16.msra.mxu1 %v2351_v61  ;;  %844 = vmatprep.subr.bf16.mxu0 %v2355_v62 }
  0x88   :  { %885 = vmatprep.subr.bf16.mxu1 %v2357_v63 }
  0x8a   :  { %845 = vmatpush1.bf16.msra.mxu0 %v2363_v1 }
  0x8b   :  { %886 = vmatpush1.bf16.msra.mxu1 %v2365_v2  ;;  %846 = vmatprep.subr.bf16.mxu0 %v2369_v4 }
  0x8c   :  { %887 = vmatprep.subr.bf16.mxu1 %v2371_v5 }
  0x8e   :  { %847 = vmatpush1.bf16.msra.mxu0 %v2375_v6 }
  0x8f   :  { %888 = vmatpush1.bf16.msra.mxu1 %v2377_v7  ;;  %959 = vmatprep.subr.bf16.mxu0 %v2278_v34 }
  0x90   :  { %1000 = vmatprep.subr.bf16.mxu1 %v2280_v35 }
 0x111   :  { %v2428_v16 = vpop.f32.mrf.mxu0 }
 0x112   :  { %v2430_v17 = vpop.f32.mrf.mxu1 }
 0x113   :  { %v2434_v20 = vpop.f32.mrf.mxu0 }
 0x114   :  { %v2436_v21 = vpop.f32.mrf.mxu1 }
 0x115   :  { %v361_v24 = vpop.f32.mrf.mxu0 }
 0x116   :  { %v434_v25 = vpop.f32.mrf.mxu1  ;;  %v2440_v27 = vadd.f32 %v361_v24, %v122_v22 }
 0x117   :  { %v2443_v28 = vadd.f32 %v434_v25, %v2432_v18  ;;  %v363_v29 = vpop.f32.mrf.mxu0 }
 0x118   :  { %v436_v30 = vpop.f32.mrf.mxu1  ;;  %v2445_v31 = vadd.f32 %v363_v29, %v126_v26 }
 0x119   :  { %v2448_v32 = vadd.f32 %v436_v30, %v2438_v23  ;;  %v367_v33 = vpop.f32.mrf.mxu0 }
 0x11a   :  { %v440_v36 = vpop.f32.mrf.mxu1  ;;  %v2450_v45 = vadd.f32 %v367_v33, %v122_v22 }
 0x11b   :  { %v2453_v54 = vadd.f32 %v440_v36, %v2432_v18  ;;  %v369_v55 = vpop.f32.mrf.mxu0 }
 0x11c   :  { %v442_v0 = vpop.f32.mrf.mxu1  ;;  %v2455_v9 = vadd.f32 %v369_v55, %v126_v26 }
 0x11d   :  { %2893 = vst [vmem:[#allocation17_spill] sm:$0xff] %v2453_v54  ;;  %v2458_v10 = vadd.f32 %v442_v0, %v2438_v23  ;;  %v371_v11 = vpop.f32.mrf.mxu0 }
 0x11e   :  { %v444_v12 = vpop.f32.mrf.mxu1  ;;  %v2460_v13 = vadd.f32 %v371_v11, %v122_v22 }
 0x11f   :  { %2894 = vst [vmem:[#allocation18_spill] sm:$0xff] %v2458_v10  ;;  %v2463_v14 = vadd.f32 %v444_v12, %v2432_v18  ;;  %v373_v15 = vpop.f32.mrf.mxu0 }
 0x120   :  { %2895 = vst [vmem:[#allocation19_spill] sm:$0xff] %v2460_v13  ;;  %v446_v19 = vpop.f32.mrf.mxu1  ;;  %v2465_v24 = vadd.f32 %v373_v15, %v126_v26 }
 0x121   :  { %2896 = vst [vmem:[#allocation20_spill] sm:$0xff] %v2463_v14  ;;  %v2468_v25 = vadd.f32 %v446_v19, %v2438_v23  ;;  %v377_v29 = vpop.f32.mrf.mxu0 }
 0x122   :  { %2897 = vst [vmem:[#allocation21_spill] sm:$0xff] %v2465_v24  ;;  %v450_v30 = vpop.f32.mrf.mxu1  ;;  %v2470_v33 = vadd.f32 %v377_v29, %v122_v22 }
 0x123   :  { %2898 = vst [vmem:[#allocation22_spill] sm:$0xff] %v2468_v25  ;;  %v2473_v36 = vadd.f32 %v450_v30, %v2432_v18  ;;  %v379_v55 = vpop.f32.mrf.mxu0 }
 0x124   :  { %2899 = vst [vmem:[#allocation23_spill] sm:$0xff] %v2470_v33  ;;  %v452_v0 = vpop.f32.mrf.mxu1  ;;  %v2475_v11 = vadd.f32 %v379_v55, %v126_v26 }
 0x125   :  { %2900 = vst [vmem:[#allocation24_spill] sm:$0xff] %v2473_v36  ;;  %v2478_v12 = vadd.f32 %v452_v0, %v2438_v23  ;;  %v381_v3 = vpop.f32.mrf.mxu0 }
 0x126   :  { %2901 = vst [vmem:[#allocation25_spill] sm:$0xff] %v2475_v11  ;;  %v454_v15 = vpop.f32.mrf.mxu1  ;;  %v2480_v14 = vadd.f32 %v381_v3, %v122_v22 }
 0x127   :  { %2902 = vst [vmem:[#allocation26_spill] sm:$0xff] %v2478_v12  ;;  %v2483_v19 = vadd.f32 %v454_v15, %v2432_v18  ;;  %v383_v25 = vpop.f32.mrf.mxu0 }
 0x128   :  { %2903 = vst [vmem:[#allocation27_spill] sm:$0xff] %v2480_v14  ;;  %v456_v29 = vpop.f32.mrf.mxu1  ;;  %v2485_v33 = vadd.f32 %v383_v25, %v126_v26 }
 0x129   :  { %2904 = vst [vmem:[#allocation28_spill] sm:$0xff] %v2483_v19  ;;  %v2488_v30 = vadd.f32 %v456_v29, %v2438_v23  ;;  %v387_v36 = vpop.f32.mrf.mxu0 }
 0x12a   :  { %2905 = vst [vmem:[#allocation29_spill] sm:$0xff] %v2485_v33  ;;  %v460_v55 = vpop.f32.mrf.mxu1  ;;  %v2490_v11 = vadd.f32 %v387_v36, %v122_v22 }
 0x12b   :  { %2906 = vst [vmem:[#allocation30_spill] sm:$0xff] %v2488_v30  ;;  %v2493_v0 = vadd.f32 %v460_v55, %v2432_v18  ;;  %v389_v12 = vpop.f32.mrf.mxu0 }
 0x12c   :  { %2907 = vst [vmem:[#allocation31_spill] sm:$0xff] %v2490_v11  ;;  %v462_v3 = vpop.f32.mrf.mxu1  ;;  %v2495_v14 = vadd.f32 %v389_v12, %v126_v26  ;;  %v358_v11 = vadd.f32 %v2428_v16, %v122_v22 }
 0x12d   :  { %2908 = vst [vmem:[#allocation32_spill] sm:$0xff] %v2493_v0  ;;  %v2498_v15 = vadd.f32 %v462_v3, %v2438_v23  ;;  %v391_v19 = vpop.f32.mrf.mxu0  ;;  %v360_v3 = vadd.f32 %v2434_v20, %v126_v26 }
 0x12e   :  { %2909 = vst [vmem:[#allocation33_spill] sm:$0xff] %v2495_v14  ;;  %v464_v25 = vpop.f32.mrf.mxu1  ;;  %v2500_v33 = vadd.f32 %v391_v19, %v122_v22  ;;  %v433_v22 = vadd.f32 %v2436_v21, %v2438_v23 }
 0x12f   :  { %2910 = vst [vmem:[#allocation34_spill] sm:$0xff] %v2498_v15  ;;  %v2503_v29 = vadd.f32 %v464_v25, %v2432_v18  ;;  %v393_v30 = vpop.f32.mrf.mxu0 }
 0x130   :  { %2911 = vst [vmem:[#allocation35_spill] sm:$0xff] %v2500_v33  ;;  %v466_v36 = vpop.f32.mrf.mxu1  ;;  %v2506_v55 = vadd.f32 %v393_v30, %v126_v26 }
 0x131   :  { %2912 = vst [vmem:[#allocation36_spill] sm:$0xff] %v2503_v29  ;;  %v2509_v0 = vadd.f32 %v466_v36, %v2438_v23  ;;  %v741_v12 = vpop.f32.mrf.mxu0  ;;  %v431_v36 = vadd.f32 %v2430_v17, %v2432_v18 }
 0x132   :  { %v782_v14 = vpop.f32.mrf.mxu1  ;;  %v789_v15 = vadd.f32 %v741_v12, %v358_v11 }
 0x133   :  { %v743_v24 = vpop.f32.mrf.mxu0  ;;  %v791_v11 = vadd.f32 %v782_v14, %v431_v36 }
 0x134   :  { %v784_v19 = vpop.f32.mrf.mxu1  ;;  %v1822_v33 = vmul.f32 -1.442695, %v789_v15  ;;  %v790_v13 = vadd.f32 %v743_v24, %v360_v3 }
 0x135   :  { %v745_v25 = vpop.f32.mrf.mxu0  ;;  %v792_v30 = vadd.f32 %v784_v19, %v433_v22 }
 0x136   :  { %v786_v29 = vpop.f32.mrf.mxu1  ;;  %1968 = vpow2.f32 %v1822_v33  ;;  %v1823_v54 = vmul.f32 -1.442695, %v790_v13 }
 0x137   :  { %v746_v10 = vpop.f32.mrf.mxu0  ;;  %v1824_v20 = vmul.f32 -1.442695, %v792_v30  ;;  %v2516_v29 = vpop.permute.xlu0 %535 }
 0x138   :  { %v787_v16 = vpop.f32.mrf.mxu1  ;;  %1970 = vpow2.f32 %v1823_v54  ;;  %v538_v54 = vld [vmem:[#allocation3] sm:$0xff]  ;;  %vm1825_vm0 = vcmp.gt.s32.totalorder %v2516_v29, 0  ;;  %vm1829_vm1 = vcmp.gt.s32.totalorder %v2516_v29, 1  ;;  %vm1833_vm2 = vcmp.gt.s32.totalorder %v2516_v29, 2 }
 0x139   :  { %1972 = vpow2.f32 %v1824_v20  ;;  %vm1837_vm3 = vcmp.gt.s32.totalorder %v2516_v29, 3  ;;  %vm1841_vm4 = vcmp.gt.s32.totalorder %v2516_v29, 4  ;;  %vm1845_vm5 = vcmp.gt.s32.totalorder %v2516_v29, 5 }
 0x13a   :  { %vm1849_vm6 = vcmp.gt.s32.totalorder %v2516_v29, 6  ;;  %vm1853_vm7 = vcmp.gt.s32.totalorder %v2516_v29, 7 }
 0x143   :  { %v1969_v26 = vpop.eup %1968 }
 0x144   :  { %v796_v12 = vadd.f32 1.0, %v1969_v26  ;;  %v2913_v26 = vmov 0  }
 0x145   :  { %v1971_v15 = vpop.eup %1970 }
 0x146   :  { %1974 = vrcp.f32 %v796_v12  ;;  %v802_v24 = vadd.f32 1.0, %v1971_v15  ;;  %v1973_v10 = vpop.eup %1972 }
 0x147   :  { %1976 = vtanh.f32 %v791_v11  ;;  %v809_v23 = vadd.f32 1.0, %v1973_v10 }
 0x148   :  { %1978 = vrcp.f32 %v802_v24 }
 0x149   :  { %1980 = vrcp.f32 %v809_v23 }
 0x153   :  { %v1975_v13 = vpop.eup %1974 }
 0x154   :  { %v1977_v33 = vpop.eup %1976 }
 0x155   :  { %v1979_v21 = vpop.eup %1978  ;;  %v813_v3 = vmul.f32 %v1977_v33, %v1975_v13 }
 0x156   :  { %v812_v17 = vmul.f32 %v1979_v21, %v538_v54  ;;  %v1981_v19 = vpop.eup %1980 }
 0x158   :  { %v814_v18 = vadd.f32 %v813_v3, %v812_v17 }
 0x15a   :  { %1982 = vtanh.f32 %v814_v18  ;;  %v2519_v14 = vsel %vm1825_vm0, %v814_v18, %v538_v54 }
 0x167   :  { %v1983_v25 = vpop.eup %1982 }
 0x168   :  { %v816_v16 = vmul.f32 %v1983_v25, %v1981_v19 }
 0x16a   :  { %v2522_v22 = vsel %vm1825_vm0, %v816_v16, %v2379_v8  ;;  %v821_v30 = vsel %vm1825_vm0, %v816_v16, 0.0 }
 0x16b   :  { %v822_v36 = vpack.c.bf16 %v821_v30, %v821_v30  ;;  %v831_v20 = vpack.c.bf16 %v2522_v22, %v2522_v22 }
 0x16d   :  { %823 = vst [vmem:[#allocation13] sm:$0xf] %v822_v36  ;;  %865 = vmatmul.mubr.bf16.vlgmr.msra.gmra.mxu0 %v831_v20  ;;  %906 = vmatmul.mubr.bf16.vlgmr.msra.gmra.mxu1 %v831_v20 }
 0x16e   :  { %960 = vmatpush1.bf16.msra.mxu0 %v2282_v37  ;;  %1001 = vmatpush1.bf16.msra.mxu1 %v2284_v38 }
 0x16f   :  { %961 = vmatprep.subr.bf16.mxu0 %v2288_v39  ;;  %1002 = vmatprep.subr.bf16.mxu1 %v2290_v40 }
 0x170   :  { %991 = vmatprep.mubr.bf16.mxu0 %v2913_v26  ;;  %1032 = vmatprep.mubr.bf16.mxu1 %v2913_v26 }
 0x172   :  { %962 = vmatpush1.bf16.msra.mxu0 %v2292_v41  ;;  %1003 = vmatpush1.bf16.msra.mxu1 %v2296_v42 }
 0x173   :  { %963 = vmatprep.subr.bf16.mxu0 %v2300_v43  ;;  %1004 = vmatprep.subr.bf16.mxu1 %v2302_v44 }
 0x176   :  { %964 = vmatpush1.bf16.msra.mxu0 %v2306_v46  ;;  %1005 = vmatpush1.bf16.msra.mxu1 %v2308_v47 }
 0x177   :  { %965 = vmatprep.subr.bf16.mxu0 %v2312_v48  ;;  %1006 = vmatprep.subr.bf16.mxu1 %v2316_v49 }
 0x17a   :  { %966 = vmatpush1.bf16.msra.mxu0 %v2318_v50  ;;  %1007 = vmatpush1.bf16.msra.mxu1 %v2320_v51 }
 0x17b   :  { %967 = vmatprep.subr.bf16.mxu0 %v2324_v52  ;;  %1008 = vmatprep.subr.bf16.mxu1 %v2328_v53 }
 0x17e   :  { %968 = vmatpush1.bf16.msra.mxu0 %v2337_v56  ;;  %1009 = vmatpush1.bf16.msra.mxu1 %v2339_v57 }
 0x17f   :  { %969 = vmatprep.subr.bf16.mxu0 %v2343_v58  ;;  %1010 = vmatprep.subr.bf16.mxu1 %v2345_v59 }
 0x182   :  { %970 = vmatpush1.bf16.msra.mxu0 %v2349_v60  ;;  %1011 = vmatpush1.bf16.msra.mxu1 %v2351_v61 }
 0x183   :  { %971 = vmatprep.subr.bf16.mxu0 %v2355_v62  ;;  %1012 = vmatprep.subr.bf16.mxu1 %v2357_v63 }
 0x186   :  { %972 = vmatpush1.bf16.msra.mxu0 %v2363_v1  ;;  %1013 = vmatpush1.bf16.msra.mxu1 %v2365_v2 }
 0x187   :  { %973 = vmatprep.subr.bf16.mxu0 %v2369_v4  ;;  %1014 = vmatprep.subr.bf16.mxu1 %v2371_v5 }
 0x18a   :  { %974 = vmatpush1.bf16.msra.mxu0 %v2375_v6  ;;  %1015 = vmatpush1.bf16.msra.mxu1 %v2377_v7 }
 0x18b   :  { %1086 = vmatprep.subr.bf16.mxu0 %v2278_v34  ;;  %1127 = vmatprep.subr.bf16.mxu1 %v2280_v35 }
 0x22d   :  { %v866_v8 = vpop.f32.mrf.mxu0  ;;  %v907_v11 = vpop.f32.mrf.mxu1 }
 0x22e   :  { %v914_v12 = vadd.f32 %v866_v8, %v2440_v27  ;;  %v916_v18 = vadd.f32 %v907_v11, %v2443_v28 }
 0x22f   :  { %v868_v15 = vpop.f32.mrf.mxu0  ;;  %v909_v24 = vpop.f32.mrf.mxu1 }
 0x230   :  { %v1826_v10 = vmul.f32 -1.442695, %v914_v12  ;;  %v915_v13 = vadd.f32 %v868_v15, %v2445_v31  ;;  %v917_v17 = vadd.f32 %v909_v24, %v2448_v32 }
 0x231   :  { %v870_v54 = vpop.f32.mrf.mxu0  ;;  %v911_v33 = vpop.f32.mrf.mxu1 }
 0x232   :  { %1984 = vpow2.f32 %v1826_v10  ;;  %v1827_v21 = vmul.f32 -1.442695, %v915_v13  ;;  %v1828_v19 = vmul.f32 -1.442695, %v917_v17 }
 0x233   :  { %v871_v23 = vpop.f32.mrf.mxu0  ;;  %v912_v3 = vpop.f32.mrf.mxu1 }
 0x234   :  { %1986 = vpow2.f32 %v1827_v21 }
 0x235   :  { %1988 = vtanh.f32 %v916_v18 }
 0x236   :  { %1990 = vpow2.f32 %v1828_v19 }
 0x23f   :  { %v1985_v25 = vpop.eup %1984 }
 0x240   :  { %v921_v16 = vadd.f32 1.0, %v1985_v25 }
 0x241   :  { %v1987_v27 = vpop.eup %1986 }
 0x242   :  { %1992 = vrcp.f32 %v921_v16  ;;  %v927_v30 = vadd.f32 1.0, %v1987_v27  ;;  %v1989_v31 = vpop.eup %1988 }
 0x243   :  { %v1991_v36 = vpop.eup %1990 }
 0x244   :  { %1994 = vrcp.f32 %v927_v30  ;;  %v934_v15 = vadd.f32 1.0, %v1991_v36 }
 0x246   :  { %1996 = vrcp.f32 %v934_v15 }
 0x24f   :  { %v1993_v20 = vpop.eup %1992 }
 0x250   :  { %v938_v8 = vmul.f32 %v1993_v20, %v1989_v31  ;;  %v2914_v20 = vld [vmem:[#allocation18_spill] sm:$0xff] }
 0x251   :  { %v1995_v12 = vpop.eup %1994 }
 0x252   :  { %v937_v10 = vmul.f32 %v1995_v12, %v2519_v14  ;;  %v2915_v12 = vld [vmem:[#allocation17_spill] sm:$0xff] }
 0x253   :  { %v1997_v11 = vpop.eup %1996 }
 0x254   :  { %v939_v32 = vadd.f32 %v938_v8, %v937_v10 }
 0x256   :  { %1998 = vtanh.f32 %v939_v32  ;;  %v2567_v28 = vsel %vm1829_vm1, %v939_v32, %v2519_v14 }
 0x263   :  { %v1999_v24 = vpop.eup %1998 }
 0x264   :  { %v941_v13 = vmul.f32 %v1999_v24, %v1997_v11 }
 0x266   :  { %v2570_v54 = vsel %vm1829_vm1, %v941_v13, %v2522_v22  ;;  %v947_v33 = vsel %vm1829_vm1, %v941_v13, 0.0 }
 0x267   :  { %v948_v21 = vpack.c.bf16 %v947_v33, %v947_v33  ;;  %v958_v23 = vpack.c.bf16 %v2570_v54, %v2570_v54 }
 0x269   :  { %950 = vst [vmem:[#allocation13 + $0x4] sm:$0xf] %v948_v21  ;;  %992 = vmatmul.mubr.bf16.vlgmr.msra.gmra.mxu0 %v958_v23  ;;  %1033 = vmatmul.mubr.bf16.vlgmr.msra.gmra.mxu1 %v958_v23 }
 0x26a   :  { %1087 = vmatpush1.bf16.msra.mxu0 %v2282_v37  ;;  %1128 = vmatpush1.bf16.msra.mxu1 %v2284_v38 }
 0x26b   :  { %1088 = vmatprep.subr.bf16.mxu0 %v2288_v39  ;;  %1129 = vmatprep.subr.bf16.mxu1 %v2290_v40 }
 0x26c   :  { %1118 = vmatprep.mubr.bf16.mxu0 %v2913_v26  ;;  %1159 = vmatprep.mubr.bf16.mxu1 %v2913_v26 }
 0x26e   :  { %1089 = vmatpush1.bf16.msra.mxu0 %v2292_v41  ;;  %1130 = vmatpush1.bf16.msra.mxu1 %v2296_v42 }
 0x26f   :  { %1090 = vmatprep.subr.bf16.mxu0 %v2300_v43  ;;  %1131 = vmatprep.subr.bf16.mxu1 %v2302_v44 }
 0x272   :  { %1091 = vmatpush1.bf16.msra.mxu0 %v2306_v46  ;;  %1132 = vmatpush1.bf16.msra.mxu1 %v2308_v47 }
 0x273   :  { %1092 = vmatprep.subr.bf16.mxu0 %v2312_v48  ;;  %1133 = vmatprep.subr.bf16.mxu1 %v2316_v49 }
 0x276   :  { %1093 = vmatpush1.bf16.msra.mxu0 %v2318_v50  ;;  %1134 = vmatpush1.bf16.msra.mxu1 %v2320_v51 }
 0x277   :  { %1094 = vmatprep.subr.bf16.mxu0 %v2324_v52  ;;  %1135 = vmatprep.subr.bf16.mxu1 %v2328_v53 }
 0x27a   :  { %1095 = vmatpush1.bf16.msra.mxu0 %v2337_v56  ;;  %1136 = vmatpush1.bf16.msra.mxu1 %v2339_v57 }
 0x27b   :  { %1096 = vmatprep.subr.bf16.mxu0 %v2343_v58  ;;  %1137 = vmatprep.subr.bf16.mxu1 %v2345_v59 }
 0x27e   :  { %1097 = vmatpush1.bf16.msra.mxu0 %v2349_v60  ;;  %1138 = vmatpush1.bf16.msra.mxu1 %v2351_v61 }
 0x27f   :  { %1098 = vmatprep.subr.bf16.mxu0 %v2355_v62  ;;  %1139 = vmatprep.subr.bf16.mxu1 %v2357_v63 }
 0x282   :  { %1099 = vmatpush1.bf16.msra.mxu0 %v2363_v1  ;;  %1140 = vmatpush1.bf16.msra.mxu1 %v2365_v2 }
 0x283   :  { %1100 = vmatprep.subr.bf16.mxu0 %v2369_v4  ;;  %1141 = vmatprep.subr.bf16.mxu1 %v2371_v5 }
 0x286   :  { %1101 = vmatpush1.bf16.msra.mxu0 %v2375_v6  ;;  %1142 = vmatpush1.bf16.msra.mxu1 %v2377_v7 }
 0x287   :  { %1213 = vmatprep.subr.bf16.mxu0 %v2278_v34  ;;  %1254 = vmatprep.subr.bf16.mxu1 %v2280_v35 }
 0x329   :  { %v993_v14 = vpop.f32.mrf.mxu0  ;;  %v1034_v22 = vpop.f32.mrf.mxu1 }
 0x32a   :  { %v1041_v3 = vadd.f32 %v993_v14, %v2450_v45  ;;  %v1043_v15 = vadd.f32 %v1034_v22, %v2915_v12  ;;  %v2917_v12 = vld [vmem:[#allocation21_spill] sm:$0xff] }
 0x32b   :  { %v995_v17 = vpop.f32.mrf.mxu0  ;;  %v1036_v18 = vpop.f32.mrf.mxu1 }
 0x32c   :  { %v1830_v19 = vmul.f32 -1.442695, %v1041_v3  ;;  %v1042_v25 = vadd.f32 %v995_v17, %v2455_v9  ;;  %v1044_v8 = vadd.f32 %v1036_v18, %v2914_v20 }
 0x32d   :  { %v997_v16 = vpop.f32.mrf.mxu0  ;;  %v1038_v27 = vpop.f32.mrf.mxu1 }
 0x32e   :  { %2000 = vpow2.f32 %v1830_v19  ;;  %v1831_v30 = vmul.f32 -1.442695, %v1042_v25  ;;  %v1832_v10 = vmul.f32 -1.442695, %v1044_v8 }
 0x32f   :  { %v998_v31 = vpop.f32.mrf.mxu0  ;;  %v1039_v36 = vpop.f32.mrf.mxu1 }
 0x330   :  { %2002 = vpow2.f32 %v1831_v30 }
 0x331   :  { %2004 = vtanh.f32 %v1043_v15 }
 0x332   :  { %2006 = vpow2.f32 %v1832_v10 }
 0x33b   :  { %v2001_v32 = vpop.eup %2000 }
 0x33c   :  { %v1048_v11 = vadd.f32 1.0, %v2001_v32 }
 0x33d   :  { %v2003_v45 = vpop.eup %2002 }
 0x33e   :  { %2008 = vrcp.f32 %v1048_v11  ;;  %v1054_v24 = vadd.f32 1.0, %v2003_v45  ;;  %v2005_v9 = vpop.eup %2004 }
 0x33f   :  { %v2007_v13 = vpop.eup %2006 }
 0x340   :  { %2010 = vrcp.f32 %v1054_v24  ;;  %v1061_v14 = vadd.f32 1.0, %v2007_v13  ;;  %v2919_v13 = vld [vmem:[#allocation20_spill] sm:$0xff] }
 0x342   :  { %2012 = vrcp.f32 %v1061_v14 }
 0x34b   :  { %v2009_v33 = vpop.eup %2008 }
 0x34c   :  { %v1065_v21 = vmul.f32 %v2009_v33, %v2005_v9  ;;  %v2918_v9 = vld [vmem:[#allocation22_spill] sm:$0xff] }
 0x34d   :  { %v2011_v23 = vpop.eup %2010 }
 0x34e   :  { %v1064_v3 = vmul.f32 %v2011_v23, %v2567_v28 }
 0x34f   :  { %v2013_v18 = vpop.eup %2012 }
 0x350   :  { %v1066_v17 = vadd.f32 %v1065_v21, %v1064_v3 }
 0x352   :  { %2014 = vtanh.f32 %v1066_v17  ;;  %v2615_v22 = vsel %vm1833_vm2, %v1066_v17, %v2567_v28  ;;  %v2916_v28 = vld [vmem:[#allocation19_spill] sm:$0xff] }
 0x35f   :  { %v2015_v19 = vpop.eup %2014 }
 0x360   :  { %v1068_v25 = vmul.f32 %v2015_v19, %v2013_v18 }
 0x362   :  { %v2618_v16 = vsel %vm1833_vm2, %v1068_v25, %v2570_v54  ;;  %v1074_v27 = vsel %vm1833_vm2, %v1068_v25, 0.0 }
 0x363   :  { %v1075_v30 = vpack.c.bf16 %v1074_v27, %v1074_v27  ;;  %v1085_v31 = vpack.c.bf16 %v2618_v16, %v2618_v16 }
 0x365   :  { %1077 = vst [vmem:[#allocation13 + $0x8] sm:$0xf] %v1075_v30  ;;  %1119 = vmatmul.mubr.bf16.vlgmr.msra.gmra.mxu0 %v1085_v31  ;;  %1160 = vmatmul.mubr.bf16.vlgmr.msra.gmra.mxu1 %v1085_v31 }
 0x366   :  { %1214 = vmatpush1.bf16.msra.mxu0 %v2282_v37  ;;  %1255 = vmatpush1.bf16.msra.mxu1 %v2284_v38 }
 0x367   :  { %1215 = vmatprep.subr.bf16.mxu0 %v2288_v39  ;;  %1256 = vmatprep.subr.bf16.mxu1 %v2290_v40 }
 0x368   :  { %1245 = vmatprep.mubr.bf16.mxu0 %v2913_v26  ;;  %1286 = vmatprep.mubr.bf16.mxu1 %v2913_v26 }
 0x36a   :  { %1216 = vmatpush1.bf16.msra.mxu0 %v2292_v41  ;;  %1257 = vmatpush1.bf16.msra.mxu1 %v2296_v42 }
 0x36b   :  { %1217 = vmatprep.subr.bf16.mxu0 %v2300_v43  ;;  %1258 = vmatprep.subr.bf16.mxu1 %v2302_v44 }
 0x36e   :  { %1218 = vmatpush1.bf16.msra.mxu0 %v2306_v46  ;;  %1259 = vmatpush1.bf16.msra.mxu1 %v2308_v47 }
 0x36f   :  { %1219 = vmatprep.subr.bf16.mxu0 %v2312_v48  ;;  %1260 = vmatprep.subr.bf16.mxu1 %v2316_v49 }
 0x372   :  { %1220 = vmatpush1.bf16.msra.mxu0 %v2318_v50  ;;  %1261 = vmatpush1.bf16.msra.mxu1 %v2320_v51 }
 0x373   :  { %1221 = vmatprep.subr.bf16.mxu0 %v2324_v52  ;;  %1262 = vmatprep.subr.bf16.mxu1 %v2328_v53 }
 0x376   :  { %1222 = vmatpush1.bf16.msra.mxu0 %v2337_v56  ;;  %1263 = vmatpush1.bf16.msra.mxu1 %v2339_v57 }
 0x377   :  { %1223 = vmatprep.subr.bf16.mxu0 %v2343_v58  ;;  %1264 = vmatprep.subr.bf16.mxu1 %v2345_v59 }
 0x37a   :  { %1224 = vmatpush1.bf16.msra.mxu0 %v2349_v60  ;;  %1265 = vmatpush1.bf16.msra.mxu1 %v2351_v61 }
 0x37b   :  { %1225 = vmatprep.subr.bf16.mxu0 %v2355_v62  ;;  %1266 = vmatprep.subr.bf16.mxu1 %v2357_v63 }
 0x37e   :  { %1226 = vmatpush1.bf16.msra.mxu0 %v2363_v1  ;;  %1267 = vmatpush1.bf16.msra.mxu1 %v2365_v2 }
 0x37f   :  { %1227 = vmatprep.subr.bf16.mxu0 %v2369_v4  ;;  %1268 = vmatprep.subr.bf16.mxu1 %v2371_v5 }
 0x382   :  { %1228 = vmatpush1.bf16.msra.mxu0 %v2375_v6  ;;  %1269 = vmatpush1.bf16.msra.mxu1 %v2377_v7 }
 0x383   :  { %1340 = vmatprep.subr.bf16.mxu0 %v2278_v34  ;;  %1381 = vmatprep.subr.bf16.mxu1 %v2280_v35 }
 0x425   :  { %v1120_v37 = vpop.f32.mrf.mxu0  ;;  %v1161_v38 = vpop.f32.mrf.mxu1 }
 0x426   :  { %v1168_v54 = vadd.f32 %v1120_v37, %v2916_v28  ;;  %v1170_v35 = vadd.f32 %v1161_v38, %v2919_v13 }
 0x427   :  { %v1122_v36 = vpop.f32.mrf.mxu0  ;;  %v1163_v20 = vpop.f32.mrf.mxu1 }
 0x428   :  { %v1834_v8 = vmul.f32 -1.442695, %v1168_v54  ;;  %v1169_v15 = vadd.f32 %v1122_v36, %v2917_v12  ;;  %v1171_v34 = vadd.f32 %v1163_v20, %v2918_v9 }
 0x429   :  { %v1124_v10 = vpop.f32.mrf.mxu0  ;;  %v1165_v32 = vpop.f32.mrf.mxu1 }
 0x42a   :  { %2016 = vpow2.f32 %v1834_v8  ;;  %v1835_v11 = vmul.f32 -1.442695, %v1169_v15  ;;  %v1836_v33 = vmul.f32 -1.442695, %v1171_v34  ;;  %v2670_v10 = vld [vmem:[#allocation12 + $0xe0] ss:$16 sps:$4 sm:$0xff]  }
 0x42b   :  { %v1125_v45 = vpop.f32.mrf.mxu0  ;;  %v1166_v24 = vpop.f32.mrf.mxu1 }
 0x42c   :  { %2018 = vpow2.f32 %v1835_v11 }
 0x42d   :  { %2020 = vtanh.f32 %v1170_v35 }
 0x42e   :  { %2022 = vpow2.f32 %v1836_v33 }
 0x437   :  { %v2017_v21 = vpop.eup %2016 }
 0x438   :  { %v1175_v23 = vadd.f32 1.0, %v2017_v21 }
 0x439   :  { %v2019_v14 = vpop.eup %2018 }
 0x43a   :  { %2024 = vrcp.f32 %v1175_v23  ;;  %v1181_v3 = vadd.f32 1.0, %v2019_v14  ;;  %v2021_v17 = vpop.eup %2020 }
 0x43b   :  { %v2023_v18 = vpop.eup %2022 }
 0x43c   :  { %2026 = vrcp.f32 %v1181_v3  ;;  %v1188_v30 = vadd.f32 1.0, %v2023_v18  ;;  %v2728_v3 = vld [vmem:[#allocation12 + $0xc4] ss:$16 sps:$4 sm:$0xff]   ;;  %v2736_v18 = vld [vmem:[#allocation12 + $0xc0] ss:$16 sps:$4 sm:$0xff]  }
 0x43e   :  { %2028 = vrcp.f32 %v1188_v30  ;;  %v2748_v30 = vld [vmem:[#allocation12 + $0xa0] ss:$16 sps:$4 sm:$0xff]  }
 0x447   :  { %v2025_v19 = vpop.eup %2024 }
 0x448   :  { %v1192_v25 = vmul.f32 %v2025_v19, %v2021_v17  ;;  %v2731_v17 = vld [vmem:[#allocation12 + $0xcc] ss:$16 sps:$4 sm:$0xff]   ;;  %v2739_v19 = vld [vmem:[#allocation12 + $0xc8] ss:$16 sps:$4 sm:$0xff]  }
 0x449   :  { %v2027_v27 = vpop.eup %2026 }
 0x44a   :  { %v1191_v31 = vmul.f32 %v2027_v27, %v2615_v22  ;;  %v2745_v27 = vld [vmem:[#allocation12 + $0xac] ss:$16 sps:$4 sm:$0xff]  }
 0x44b   :  { %v2029_v28 = vpop.eup %2028 }
 0x44c   :  { %v1193_v37 = vadd.f32 %v1192_v25, %v1191_v31  ;;  %v2742_v25 = vld [vmem:[#allocation12 + $0xa4] ss:$16 sps:$4 sm:$0xff]   ;;  %v2751_v31 = vld [vmem:[#allocation12 + $0xa8] ss:$16 sps:$4 sm:$0xff]  }
 0x44e   :  { %2030 = vtanh.f32 %v1193_v37  ;;  %v2663_v38 = vsel %vm1837_vm3, %v1193_v37, %v2615_v22  ;;  %v2673_v22 = vld [vmem:[#allocation12 + $0xe8] ss:$16 sps:$4 sm:$0xff]   ;;  %v2754_v37 = vld [vmem:[#allocation12 + $0x84] ss:$16 sps:$4 sm:$0xff]  }
 0x45b   :  { %v2031_v54 = vpop.eup %2030 }
 0x45c   :  { %v1195_v36 = vmul.f32 %v2031_v54, %v2029_v28  ;;  %v2760_v28 = vld [vmem:[#allocation12 + $0x80] ss:$16 sps:$4 sm:$0xff]   ;;  %v2763_v54 = vld [vmem:[#allocation12 + $0x88] ss:$16 sps:$4 sm:$0xff]  }
 0x45e   :  { %v2666_v20 = vsel %vm1837_vm3, %v1195_v36, %v2618_v16  ;;  %v1201_v8 = vsel %vm1837_vm3, %v1195_v36, 0.0  ;;  %v2766_v36 = vld [vmem:[#allocation12 + $0x64] ss:$16 sps:$4 sm:$0xff]  }
 0x45f   :  { %v1202_v12 = vpack.c.bf16 %v1201_v8, %v1201_v8  ;;  %v1212_v15 = vpack.c.bf16 %v2666_v20, %v2666_v20  ;;  %v2772_v8 = vld [vmem:[#allocation12 + $0x60] ss:$16 sps:$4 sm:$0xff]  }
 0x461   :  { %1204 = vst [vmem:[#allocation13 + $0xc] sm:$0xf] %v1202_v12  ;;  %1246 = vmatmul.mubr.bf16.vlgmr.msra.gmra.mxu0 %v1212_v15  ;;  %1287 = vmatmul.mubr.bf16.vlgmr.msra.gmra.mxu1 %v1212_v15  ;;  %v2775_v12 = vld [vmem:[#allocation12 + $0x68] ss:$16 sps:$4 sm:$0xff]   ;;  %v2778_v15 = vld [vmem:[#allocation12 + $0x44] ss:$16 sps:$4 sm:$0xff]  }
 0x462   :  { %1341 = vmatpush1.bf16.msra.mxu0 %v2670_v10  ;;  %1382 = vmatpush1.bf16.msra.mxu1 %v2673_v22 }
 0x463   :  { %1342 = vmatprep.subr.bf16.mxu0 %v2288_v39  ;;  %1383 = vmatprep.subr.bf16.mxu1 %v2290_v40  ;;  %v2706_v39 = vld [vmem:[#allocation12 + $0xe4] ss:$16 sps:$4 sm:$0xff]   ;;  %v2709_v40 = vld [vmem:[#allocation12 + $0xec] ss:$16 sps:$4 sm:$0xff]  }
 0x464   :  { %1372 = vmatprep.mubr.bf16.mxu0 %v2913_v26  ;;  %1413 = vmatprep.mubr.bf16.mxu1 %v2913_v26 }
 0x466   :  { %1343 = vmatpush1.bf16.msra.mxu0 %v2292_v41  ;;  %1384 = vmatpush1.bf16.msra.mxu1 %v2296_v42 }
 0x467   :  { %1344 = vmatprep.subr.bf16.mxu0 %v2300_v43  ;;  %1385 = vmatprep.subr.bf16.mxu1 %v2302_v44  ;;  %v2920_v43 = vld [vmem:[#allocation23_spill] sm:$0xff] }
 0x46a   :  { %1345 = vmatpush1.bf16.msra.mxu0 %v2306_v46  ;;  %1386 = vmatpush1.bf16.msra.mxu1 %v2308_v47 }
 0x46b   :  { %1346 = vmatprep.subr.bf16.mxu0 %v2312_v48  ;;  %1387 = vmatprep.subr.bf16.mxu1 %v2316_v49  ;;  %v2921_v49 = vld [vmem:[#allocation25_spill] sm:$0xff] }
 0x46e   :  { %1347 = vmatpush1.bf16.msra.mxu0 %v2318_v50  ;;  %1388 = vmatpush1.bf16.msra.mxu1 %v2320_v51 }
 0x46f   :  { %1348 = vmatprep.subr.bf16.mxu0 %v2324_v52  ;;  %1389 = vmatprep.subr.bf16.mxu1 %v2328_v53 }
 0x472   :  { %1349 = vmatpush1.bf16.msra.mxu0 %v2337_v56  ;;  %1390 = vmatpush1.bf16.msra.mxu1 %v2339_v57 }
 0x473   :  { %1350 = vmatprep.subr.bf16.mxu0 %v2343_v58  ;;  %1391 = vmatprep.subr.bf16.mxu1 %v2345_v59  ;;  %v2922_v58 = vld [vmem:[#allocation26_spill] sm:$0xff] }
 0x476   :  { %1351 = vmatpush1.bf16.msra.mxu0 %v2349_v60  ;;  %1392 = vmatpush1.bf16.msra.mxu1 %v2351_v61  ;;  %v2923_v60 = vld [vmem:[#allocation24_spill] sm:$0xff] }
 0x477   :  { %1352 = vmatprep.subr.bf16.mxu0 %v2355_v62  ;;  %1393 = vmatprep.subr.bf16.mxu1 %v2357_v63 }
 0x47a   :  { %1353 = vmatpush1.bf16.msra.mxu0 %v2363_v1  ;;  %1394 = vmatpush1.bf16.msra.mxu1 %v2365_v2 }
 0x47b   :  { %1354 = vmatprep.subr.bf16.mxu0 %v2369_v4  ;;  %1395 = vmatprep.subr.bf16.mxu1 %v2371_v5 }
 0x47e   :  { %1355 = vmatpush1.bf16.msra.mxu0 %v2375_v6  ;;  %1396 = vmatpush1.bf16.msra.mxu1 %v2377_v7 }
 0x47f   :  { %1467 = vmatprep.subr.bf16.mxu0 %v2706_v39  ;;  %1508 = vmatprep.subr.bf16.mxu1 %v2709_v40 }
 0x521   :  { %v1247_v41 = vpop.f32.mrf.mxu0  ;;  %v1288_v42 = vpop.f32.mrf.mxu1 }
 0x522   :  { %v1295_v44 = vadd.f32 %v1247_v41, %v2920_v43  ;;  %v1297_v61 = vadd.f32 %v1288_v42, %v2923_v60  ;;  %v2781_v41 = vld [vmem:[#allocation12 + $0x4c] ss:$16 sps:$4 sm:$0xff]   ;;  %v2784_v42 = vld [vmem:[#allocation12 + $0x40] ss:$16 sps:$4 sm:$0xff]   ;;  %v2787_v43 = vld [vmem:[#allocation12 + $0x48] ss:$16 sps:$4 sm:$0xff]  }
 0x523   :  { %v1249_v46 = vpop.f32.mrf.mxu0  ;;  %v1290_v47 = vpop.f32.mrf.mxu1 }
 0x524   :  { %v1838_v48 = vmul.f32 -1.442695, %v1295_v44  ;;  %v1296_v50 = vadd.f32 %v1249_v46, %v2921_v49  ;;  %v1298_v59 = vadd.f32 %v1290_v47, %v2922_v58  ;;  %v2790_v44 = vld [vmem:[#allocation12 + $0x24] ss:$16 sps:$4 sm:$0xff]   ;;  %v2793_v46 = vld [vmem:[#allocation12 + $0x2c] ss:$16 sps:$4 sm:$0xff]  }
 0x525   :  { %v1251_v51 = vpop.f32.mrf.mxu0  ;;  %v1292_v52 = vpop.f32.mrf.mxu1  ;;  %v2796_v47 = vld [vmem:[#allocation12 + $0x20] ss:$16 sps:$4 sm:$0xff]   ;;  %v2802_v49 = vld [vmem:[#allocation12 + $0x4] ss:$16 sps:$4 sm:$0xff]  }
 0x526   :  { %2032 = vpow2.f32 %v1838_v48  ;;  %v1839_v53 = vmul.f32 -1.442695, %v1296_v50  ;;  %v1840_v62 = vmul.f32 -1.442695, %v1298_v59  ;;  %v2799_v48 = vld [vmem:[#allocation12 + $0x28] ss:$16 sps:$4 sm:$0xff]  }
 0x527   :  { %v1252_v56 = vpop.f32.mrf.mxu0  ;;  %v1293_v57 = vpop.f32.mrf.mxu1  ;;  %v2805_v50 = vld [vmem:[#allocation12 + $0xc] ss:$16 sps:$4 sm:$0xff]   ;;  %v2808_v51 = vld [vmem:[#allocation12] ss:$16 sps:$4 sm:$0xff]   ;;  %v2811_v52 = vld [vmem:[#allocation12 + $0x8] ss:$16 sps:$4 sm:$0xff]  }
 0x528   :  { %2034 = vpow2.f32 %v1839_v53  ;;  %v2924_v57 = vld [vmem:[#allocation27_spill] sm:$0xff] }
 0x529   :  { %2036 = vtanh.f32 %v1297_v61 }
 0x52a   :  { %2038 = vpow2.f32 %v1840_v62  ;;  %v2925_v62 = vld [vmem:[#allocation29_spill] sm:$0xff] }
 0x533   :  { %v2033_v63 = vpop.eup %2032 }
 0x534   :  { %v1302_v1 = vadd.f32 1.0, %v2033_v63 }
 0x535   :  { %v2035_v2 = vpop.eup %2034 }
 0x536   :  { %2040 = vrcp.f32 %v1302_v1  ;;  %v1308_v4 = vadd.f32 1.0, %v2035_v2  ;;  %v2037_v5 = vpop.eup %2036 }
 0x537   :  { %v2039_v6 = vpop.eup %2038 }
 0x538   :  { %2042 = vrcp.f32 %v1308_v4  ;;  %v1315_v11 = vadd.f32 1.0, %v2039_v6 }
 0x53a   :  { %2044 = vrcp.f32 %v1315_v11 }
 0x543   :  { %v2041_v7 = vpop.eup %2040 }
 0x544   :  { %v1319_v16 = vmul.f32 %v2041_v7, %v2037_v5  ;;  %v2926_v7 = vld [vmem:[#allocation30_spill] sm:$0xff] }
 0x545   :  { %v2043_v32 = vpop.eup %2042 }
 0x546   :  { %v1318_v45 = vmul.f32 %v2043_v32, %v2663_v38 }
 0x547   :  { %v2045_v34 = vpop.eup %2044 }
 0x548   :  { %v1320_v24 = vadd.f32 %v1319_v16, %v1318_v45  ;;  %v2927_v16 = vld [vmem:[#allocation28_spill] sm:$0xff] }
 0x54a   :  { %2046 = vtanh.f32 %v1320_v24  ;;  %v2719_v9 = vsel %vm1841_vm4, %v1320_v24, %v2663_v38  ;;  %v2757_v38 = vld [vmem:[#allocation12 + $0x8c] ss:$16 sps:$4 sm:$0xff]  }
 0x557   :  { %v2047_v13 = vpop.eup %2046 }
 0x558   :  { %v1322_v35 = vmul.f32 %v2047_v13, %v2045_v34 }
 0x55a   :  { %v2722_v33 = vsel %vm1841_vm4, %v1322_v35, %v2666_v20  ;;  %v1328_v21 = vsel %vm1841_vm4, %v1322_v35, 0.0  ;;  %v2769_v20 = vld [vmem:[#allocation12 + $0x6c] ss:$16 sps:$4 sm:$0xff]  }
 0x55b   :  { %v1329_v23 = vpack.c.bf16 %v1328_v21, %v1328_v21  ;;  %v1339_v14 = vpack.c.bf16 %v2722_v33, %v2722_v33 }
 0x55d   :  { %1331 = vst [vmem:[#allocation13 + $0x10] sm:$0xf] %v1329_v23  ;;  %1373 = vmatmul.mubr.bf16.vlgmr.msra.gmra.mxu0 %v1339_v14  ;;  %1414 = vmatmul.mubr.bf16.vlgmr.msra.gmra.mxu1 %v1339_v14 }
 0x55e   :  { %1468 = vmatpush1.bf16.msra.mxu0 %v2670_v10  ;;  %1509 = vmatpush1.bf16.msra.mxu1 %v2673_v22 }
 0x55f   :  { %1469 = vmatprep.subr.bf16.mxu0 %v2728_v3  ;;  %1510 = vmatprep.subr.bf16.mxu1 %v2731_v17 }
 0x560   :  { %1499 = vmatprep.mubr.bf16.mxu0 %v2913_v26  ;;  %1540 = vmatprep.mubr.bf16.mxu1 %v2913_v26 }
 0x562   :  { %1470 = vmatpush1.bf16.msra.mxu0 %v2736_v18  ;;  %1511 = vmatpush1.bf16.msra.mxu1 %v2739_v19 }
 0x563   :  { %1471 = vmatprep.subr.bf16.mxu0 %v2742_v25  ;;  %1512 = vmatprep.subr.bf16.mxu1 %v2745_v27 }
 0x566   :  { %1472 = vmatpush1.bf16.msra.mxu0 %v2748_v30  ;;  %1513 = vmatpush1.bf16.msra.mxu1 %v2751_v31 }
 0x567   :  { %1473 = vmatprep.subr.bf16.mxu0 %v2754_v37  ;;  %1514 = vmatprep.subr.bf16.mxu1 %v2757_v38 }
 0x56a   :  { %1474 = vmatpush1.bf16.msra.mxu0 %v2760_v28  ;;  %1515 = vmatpush1.bf16.msra.mxu1 %v2763_v54 }
 0x56b   :  { %1475 = vmatprep.subr.bf16.mxu0 %v2766_v36  ;;  %1516 = vmatprep.subr.bf16.mxu1 %v2769_v20 }
 0x56e   :  { %1476 = vmatpush1.bf16.msra.mxu0 %v2772_v8  ;;  %1517 = vmatpush1.bf16.msra.mxu1 %v2775_v12 }
 0x56f   :  { %1477 = vmatprep.subr.bf16.mxu0 %v2778_v15  ;;  %1518 = vmatprep.subr.bf16.mxu1 %v2781_v41 }
 0x572   :  { %1478 = vmatpush1.bf16.msra.mxu0 %v2784_v42  ;;  %1519 = vmatpush1.bf16.msra.mxu1 %v2787_v43 }
 0x573   :  { %1479 = vmatprep.subr.bf16.mxu0 %v2790_v44  ;;  %1520 = vmatprep.subr.bf16.mxu1 %v2793_v46 }
 0x576   :  { %1480 = vmatpush1.bf16.msra.mxu0 %v2796_v47  ;;  %1521 = vmatpush1.bf16.msra.mxu1 %v2799_v48 }
 0x577   :  { %1481 = vmatprep.subr.bf16.mxu0 %v2802_v49  ;;  %1522 = vmatprep.subr.bf16.mxu1 %v2805_v50 }
 0x57a   :  { %1482 = vmatpush1.bf16.msra.mxu0 %v2808_v51  ;;  %1523 = vmatpush1.bf16.msra.mxu1 %v2811_v52 }
 0x57b   :  { %1594 = vmatprep.subr.bf16.mxu0 %v2706_v39  ;;  %1635 = vmatprep.subr.bf16.mxu1 %v2709_v40 }
 0x61d   :  { %v1374_v53 = vpop.f32.mrf.mxu0  ;;  %v1415_v56 = vpop.f32.mrf.mxu1 }
 0x61e   :  { %v1422_v58 = vadd.f32 %v1374_v53, %v2924_v57  ;;  %v1424_v40 = vadd.f32 %v1415_v56, %v2927_v16 }
 0x61f   :  { %v1376_v59 = vpop.f32.mrf.mxu0  ;;  %v1417_v60 = vpop.f32.mrf.mxu1 }
 0x620   :  { %v1842_v61 = vmul.f32 -1.442695, %v1422_v58  ;;  %v1423_v63 = vadd.f32 %v1376_v59, %v2925_v62  ;;  %v1425_v39 = vadd.f32 %v1417_v60, %v2926_v7 }
 0x621   :  { %v1378_v1 = vpop.f32.mrf.mxu0  ;;  %v1419_v2 = vpop.f32.mrf.mxu1 }
 0x622   :  { %2048 = vpow2.f32 %v1842_v61  ;;  %v1843_v4 = vmul.f32 -1.442695, %v1423_v63  ;;  %v1844_v32 = vmul.f32 -1.442695, %v1425_v39 }
 0x623   :  { %v1379_v5 = vpop.f32.mrf.mxu0  ;;  %v1420_v6 = vpop.f32.mrf.mxu1 }
 0x624   :  { %2050 = vpow2.f32 %v1843_v4 }
 0x625   :  { %2052 = vtanh.f32 %v1424_v40 }
 0x626   :  { %2054 = vpow2.f32 %v1844_v32 }
 0x62f   :  { %v2049_v11 = vpop.eup %2048 }
 0x630   :  { %v1429_v45 = vadd.f32 1.0, %v2049_v11  ;;  %v2932_v11 = vld [vmem:[#allocation35_spill] sm:$0xff] }
 0x631   :  { %v2051_v24 = vpop.eup %2050 }
 0x632   :  { %2056 = vrcp.f32 %v1429_v45  ;;  %v1435_v34 = vadd.f32 1.0, %v2051_v24  ;;  %v2053_v13 = vpop.eup %2052 }
 0x633   :  { %v2055_v35 = vpop.eup %2054 }
 0x634   :  { %2058 = vrcp.f32 %v1435_v34  ;;  %v1442_v53 = vadd.f32 1.0, %v2055_v35 }
 0x636   :  { %2060 = vrcp.f32 %v1442_v53 }
 0x63f   :  { %v2057_v21 = vpop.eup %2056 }
 0x640   :  { %v1446_v23 = vmul.f32 %v2057_v21, %v2053_v13 }
 0x641   :  { %v2059_v14 = vpop.eup %2058 }
 0x642   :  { %v1445_v57 = vmul.f32 %v2059_v14, %v2719_v9 }
 0x643   :  { %v2061_v59 = vpop.eup %2060 }
 0x644   :  { %v1447_v58 = vadd.f32 %v1446_v23, %v1445_v57 }
 0x646   :  { %2062 = vtanh.f32 %v1447_v58  ;;  %v2823_v56 = vsel %vm1845_vm5, %v1447_v58, %v2719_v9 }
 0x653   :  { %v2063_v60 = vpop.eup %2062 }
 0x654   :  { %v1449_v61 = vmul.f32 %v2063_v60, %v2061_v59 }
 0x656   :  { %v2826_v62 = vsel %vm1845_vm5, %v1449_v61, %v2722_v33  ;;  %v1455_v63 = vsel %vm1845_vm5, %v1449_v61, 0.0 }
 0x657   :  { %v1456_v1 = vpack.c.bf16 %v1455_v63, %v1455_v63  ;;  %v1466_v2 = vpack.c.bf16 %v2826_v62, %v2826_v62 }
 0x659   :  { %1458 = vst [vmem:[#allocation13 + $0x14] sm:$0xf] %v1456_v1  ;;  %1500 = vmatmul.mubr.bf16.vlgmr.msra.gmra.mxu0 %v1466_v2  ;;  %1541 = vmatmul.mubr.bf16.vlgmr.msra.gmra.mxu1 %v1466_v2 }
 0x65a   :  { %1595 = vmatpush1.bf16.msra.mxu0 %v2670_v10  ;;  %1636 = vmatpush1.bf16.msra.mxu1 %v2673_v22  ;;  %v2928_v22 = vld [vmem:[#allocation31_spill] sm:$0xff] }
 0x65b   :  { %1596 = vmatprep.subr.bf16.mxu0 %v2728_v3  ;;  %1637 = vmatprep.subr.bf16.mxu1 %v2731_v17 }
 0x65c   :  { %1626 = vmatprep.mubr.bf16.mxu0 %v2913_v26  ;;  %1667 = vmatprep.mubr.bf16.mxu1 %v2913_v26 }
 0x65e   :  { %1597 = vmatpush1.bf16.msra.mxu0 %v2736_v18  ;;  %1638 = vmatpush1.bf16.msra.mxu1 %v2739_v19  ;;  %v2929_v18 = vld [vmem:[#allocation33_spill] sm:$0xff] }
 0x65f   :  { %1598 = vmatprep.subr.bf16.mxu0 %v2742_v25  ;;  %1639 = vmatprep.subr.bf16.mxu1 %v2745_v27 }
 0x662   :  { %1599 = vmatpush1.bf16.msra.mxu0 %v2748_v30  ;;  %1640 = vmatpush1.bf16.msra.mxu1 %v2751_v31 }
 0x663   :  { %1600 = vmatprep.subr.bf16.mxu0 %v2754_v37  ;;  %1641 = vmatprep.subr.bf16.mxu1 %v2757_v38  ;;  %v2930_v38 = vld [vmem:[#allocation34_spill] sm:$0xff] }
 0x666   :  { %1601 = vmatpush1.bf16.msra.mxu0 %v2760_v28  ;;  %1642 = vmatpush1.bf16.msra.mxu1 %v2763_v54  ;;  %v2931_v54 = vld [vmem:[#allocation32_spill] sm:$0xff] }
 0x667   :  { %1602 = vmatprep.subr.bf16.mxu0 %v2766_v36  ;;  %1643 = vmatprep.subr.bf16.mxu1 %v2769_v20 }
 0x66a   :  { %1603 = vmatpush1.bf16.msra.mxu0 %v2772_v8  ;;  %1644 = vmatpush1.bf16.msra.mxu1 %v2775_v12 }
 0x66b   :  { %1604 = vmatprep.subr.bf16.mxu0 %v2778_v15  ;;  %1645 = vmatprep.subr.bf16.mxu1 %v2781_v41 }
 0x66e   :  { %1605 = vmatpush1.bf16.msra.mxu0 %v2784_v42  ;;  %1646 = vmatpush1.bf16.msra.mxu1 %v2787_v43 }
 0x66f   :  { %1606 = vmatprep.subr.bf16.mxu0 %v2790_v44  ;;  %1647 = vmatprep.subr.bf16.mxu1 %v2793_v46 }
 0x672   :  { %1607 = vmatpush1.bf16.msra.mxu0 %v2796_v47  ;;  %1648 = vmatpush1.bf16.msra.mxu1 %v2799_v48 }
 0x673   :  { %1608 = vmatprep.subr.bf16.mxu0 %v2802_v49  ;;  %1649 = vmatprep.subr.bf16.mxu1 %v2805_v50 }
 0x676   :  { %1609 = vmatpush1.bf16.msra.mxu0 %v2808_v51  ;;  %1650 = vmatpush1.bf16.msra.mxu1 %v2811_v52 }
 0x719   :  { %v1501_v26 = vpop.f32.mrf.mxu0  ;;  %v1542_v10 = vpop.f32.mrf.mxu1 }
 0x71a   :  { %v1549_v9 = vadd.f32 %v1501_v26, %v2928_v22  ;;  %v1551_v36 = vadd.f32 %v1542_v10, %v2931_v54 }
 0x71b   :  { %v1503_v33 = vpop.f32.mrf.mxu0  ;;  %v1544_v3 = vpop.f32.mrf.mxu1 }
 0x71c   :  { %v1846_v17 = vmul.f32 -1.442695, %v1549_v9  ;;  %v1550_v19 = vadd.f32 %v1503_v33, %v2929_v18  ;;  %v1552_v28 = vadd.f32 %v1544_v3, %v2930_v38 }
 0x71d   :  { %v1505_v25 = vpop.f32.mrf.mxu0  ;;  %v1546_v27 = vpop.f32.mrf.mxu1 }
 0x71e   :  { %2064 = vpow2.f32 %v1846_v17  ;;  %v1847_v30 = vmul.f32 -1.442695, %v1550_v19  ;;  %v1848_v20 = vmul.f32 -1.442695, %v1552_v28 }
 0x71f   :  { %v1506_v31 = vpop.f32.mrf.mxu0  ;;  %v1547_v37 = vpop.f32.mrf.mxu1 }
 0x720   :  { %2066 = vpow2.f32 %v1847_v30 }
 0x721   :  { %2068 = vtanh.f32 %v1551_v36 }
 0x722   :  { %2070 = vpow2.f32 %v1848_v20 }
 0x72b   :  { %v2065_v8 = vpop.eup %2064 }
 0x72c   :  { %v1556_v12 = vadd.f32 1.0, %v2065_v8 }
 0x72d   :  { %v2067_v15 = vpop.eup %2066 }
 0x72e   :  { %2072 = vrcp.f32 %v1556_v12  ;;  %v1562_v41 = vadd.f32 1.0, %v2067_v15  ;;  %v2069_v42 = vpop.eup %2068 }
 0x72f   :  { %v2071_v43 = vpop.eup %2070 }
 0x730   :  { %2074 = vrcp.f32 %v1562_v41  ;;  %v1569_v48 = vadd.f32 1.0, %v2071_v43 }
 0x732   :  { %2076 = vrcp.f32 %v1569_v48 }
 0x73b   :  { %v2073_v44 = vpop.eup %2072 }
 0x73c   :  { %v1573_v46 = vmul.f32 %v2073_v44, %v2069_v42 }
 0x73d   :  { %v2075_v47 = vpop.eup %2074 }
 0x73e   :  { %v1572_v49 = vmul.f32 %v2075_v47, %v2823_v56 }
 0x73f   :  { %v2077_v52 = vpop.eup %2076 }
 0x740   :  { %v1574_v50 = vadd.f32 %v1573_v46, %v1572_v49 }
 0x742   :  { %2078 = vtanh.f32 %v1574_v50  ;;  %v1581_v51 = vsel %vm1849_vm6, %v1574_v50, %v2823_v56  ;;  %v2933_v56 = vld [vmem:[#allocation36_spill] sm:$0xff] }
 0x74f   :  { %v2079_v4 = vpop.eup %2078 }
 0x750   :  { %v1576_v5 = vmul.f32 %v2079_v4, %v2077_v52 }
 0x752   :  { %v1580_v6 = vsel %vm1849_vm6, %v1576_v5, %v2826_v62  ;;  %v1582_v7 = vsel %vm1849_vm6, %v1576_v5, 0.0 }
 0x753   :  { %v1583_v39 = vpack.c.bf16 %v1582_v7, %v1582_v7  ;;  %v1593_v16 = vpack.c.bf16 %v1580_v6, %v1580_v6 }
 0x755   :  { %1585 = vst [vmem:[#allocation13 + $0x18] sm:$0xf] %v1583_v39  ;;  %1627 = vmatmul.mubr.bf16.vlgmr.msra.gmra.mxu0 %v1593_v16  ;;  %1668 = vmatmul.mubr.bf16.vlgmr.msra.gmra.mxu1 %v1593_v16 }
 0x815   :  { %v1628_v40 = vpop.f32.mrf.mxu0  ;;  %v1669_v32 = vpop.f32.mrf.mxu1 }
 0x816   :  { %v1676_v45 = vadd.f32 %v1628_v40, %v2932_v11  ;;  %v1678_v59 = vadd.f32 %v1669_v32, %v2933_v56 }
 0x817   :  { %v1630_v24 = vpop.f32.mrf.mxu0  ;;  %v1671_v34 = vpop.f32.mrf.mxu1 }
 0x818   :  { %v1850_v13 = vmul.f32 -1.442695, %v1676_v45  ;;  %v1677_v35 = vadd.f32 %v1630_v24, %v2506_v55  ;;  %v1679_v58 = vadd.f32 %v1671_v34, %v2509_v0 }
 0x819   :  { %v1632_v21 = vpop.f32.mrf.mxu0  ;;  %v1673_v23 = vpop.f32.mrf.mxu1 }
 0x81a   :  { %2080 = vpow2.f32 %v1850_v13  ;;  %v1851_v14 = vmul.f32 -1.442695, %v1677_v35  ;;  %v1852_v60 = vmul.f32 -1.442695, %v1679_v58 }
 0x81b   :  { %v1633_v53 = vpop.f32.mrf.mxu0  ;;  %v1674_v57 = vpop.f32.mrf.mxu1 }
 0x81c   :  { %2082 = vpow2.f32 %v1851_v14 }
 0x81d   :  { %2084 = vtanh.f32 %v1678_v59 }
 0x81e   :  { %2086 = vpow2.f32 %v1852_v60 }
 0x827   :  { %v2081_v61 = vpop.eup %2080 }
 0x828   :  { %v1683_v62 = vadd.f32 1.0, %v2081_v61 }
 0x829   :  { %v2083_v63 = vpop.eup %2082 }
 0x82a   :  { %2088 = vrcp.f32 %v1683_v62  ;;  %v1689_v1 = vadd.f32 1.0, %v2083_v63  ;;  %v2085_v55 = vpop.eup %2084 }
 0x82b   :  { %v2087_v2 = vpop.eup %2086 }
 0x82c   :  { %2090 = vrcp.f32 %v1689_v1  ;;  %v1696_v9 = vadd.f32 1.0, %v2087_v2 }
 0x82e   :  { %2092 = vrcp.f32 %v1696_v9 }
 0x837   :  { %v2089_v26 = vpop.eup %2088 }
 0x838   :  { %v1700_v10 = vmul.f32 %v2089_v26, %v2085_v55 }
 0x839   :  { %v2091_v22 = vpop.eup %2090 }
 0x83a   :  { %v1699_v33 = vmul.f32 %v2091_v22, %v1581_v51 }
 0x83b   :  { %v2093_v17 = vpop.eup %2092 }
 0x83c   :  { %v1701_v3 = vadd.f32 %v1700_v10, %v1699_v33 }
 0x83e   :  { %2094 = vtanh.f32 %v1701_v3  ;;  %v1708_v0 = vsel %vm1853_vm7, %v1701_v3, %v1581_v51 }
 0x83f   :  { %1714 = vst [vmem:[#allocation3] sm:$0xff] %v1708_v0 }
 0x84b   :  { %v2095_v18 = vpop.eup %2094 }
 0x84c   :  { %v1703_v19 = vmul.f32 %v2095_v18, %v2093_v17 }
 0x84e   :  { %v1707_v25 = vsel %vm1853_vm7, %v1703_v19, %v1580_v6  ;;  %v1709_v27 = vsel %vm1853_vm7, %v1703_v19, 0.0 }
 0x84f   :  { %v1710_v30 = vpack.c.bf16 %v1709_v27, %v1709_v27  ;;  %1713 = vst [vmem:[#allocation2] sm:$0xff] %v1707_v25 }
 0x851   :  { %1712 = vst [vmem:[#allocation13 + $0x1c] sm:$0xf] %v1710_v30 }
 0x852 PF:  { %p1855_p2 = scmp.gt.s32.totalorder %s2884_s0, 0 }
 0x854   :  { %1718 = sbr.rel (%p1855_p2) target bundleno = 2142 (0x85e), region = 45 }
 0x859   :  { %v2223_v31 = vmov 0  }
 0x85a   :  { %1719 = vst [vmem:[#allocation13] sm:$0xf] %v2223_v31  ;;  %1720 = vst [vmem:[#allocation13 + $0x4] sm:$0xf] %v2223_v31 }
 0x85b   :  { %1721 = vst [vmem:[#allocation13 + $0x8] sm:$0xf] %v2223_v31  ;;  %1722 = vst [vmem:[#allocation13 + $0xc] sm:$0xf] %v2223_v31 }
 0x85c   :  { %1723 = vst [vmem:[#allocation13 + $0x10] sm:$0xf] %v2223_v31  ;;  %1724 = vst [vmem:[#allocation13 + $0x14] sm:$0xf] %v2223_v31 }
 0x85d   :  { %1725 = vst [vmem:[#allocation13 + $0x18] sm:$0xf] %v2223_v31  ;;  %1726 = vst [vmem:[#allocation13 + $0x1c] sm:$0xf] %v2223_v31 }
 0x85e PF:  { %s2224_s19 = smov [#allocation13]  }
 0x85f   :  { %s1732_s20 = sshll.u32 %s2224_s19, 4  ;;  %s1733_s20 = int_to_ptr.vmem [resolvable:$true] %s1732_s20 }
 0x860   :  { %s2188_s21 = scalar_lea.vmem %s1733_s20, 512  ;;  %p2193_p4 = scmp.lt.s32.totalorder %s1733_s20, %s1733_s20 }
 0x861   :  { %p2189_p3 = scmp.ne.s32.totalorder %s1733_s20, %s2188_s21  ;;  %p2194_p5 = scmp.lt.s32.totalorder %s2188_s21, %s2188_s21 }
 0x863   :  { %p2195_p6 = por %p2194_p5, %p2193_p4 }
 0x865   :  { %p2196_p7 = pnand %p2195_p6, %p2189_p3 }
 0x867   :  { %2199 = shalt.err (!%p2196_p7)
}
 0x868   :  { %1738 = dma.vmem_to_hbm [thread:$0]  %s1733_s20, 512, %s2890_s6, [#allocation9], %s2218_s7, %s2218_s7, %s2219_s8  }
 0x869   :  { %2212 = dma.done.wait [#allocation9], 512  }
 0x86a   :  { %2213 = vsyncadd [#allocation9], 4294966784 }
 0x86b   :  { %1742 = vsyncpa [#allocation8], 1 }
 0x86c   :  { %1743 = vsyncpa [#allocation11], 1 }
 0x86d   :  { %1744 = vsyncpa [#allocation9], 1 }

</bundles_post_ra>
